<compile_context>
chip_gen: v7x
topology: tpu7x:2x2x1
jax: 0.10.0
libtpu: 0.0.40
codegen_flags: <defaults>
</compile_context>

<pallas_src>
import jax
import jax.numpy as jnp
from jax.experimental import pallas as pl
from jax.experimental.pallas import tpu as pltpu

# ---------------- small deterministic config (DeepSeekConfig dims) ----------------
BATCH = 2
SEQ = 16
HIDDEN = 576            # config.hidden_size
INTERMEDIATE = 1536     # config.intermediate_size

TOKEN_TILE = 16         # tile of flattened (B*S) tokens  -> parallel grid axis (size 2)
INTER_TILE = 512        # tile of the intermediate dim    -> reduction grid axis (size 3)


# ---------------- Pallas kernel ----------------
def expert_mlp_kernel(x_ref, wg_ref, wu_ref, wd_ref, o_ref, acc_ref):
    """One (token_tile, inter_tile) step of the fused SwiGLU MLP.

    x_ref  : (TT, D)   bf16   token tile
    wg_ref : (D, TI)   bf16   gate_proj weight slice (in, out layout)
    wu_ref : (D, TI)   bf16   up_proj   weight slice
    wd_ref : (TI, D)   bf16   down_proj weight slice
    o_ref  : (TT, D)   f32    output tile (resident across the reduction axis)
    acc_ref: (TT, D)   f32    VMEM accumulator
    """
    j = pl.program_id(1)

    @pl.when(j == 0)
    def _():
        acc_ref[...] = jnp.zeros_like(acc_ref)

    x = x_ref[...]                                                       # (TT, D) bf16

    # Lane-dense MXU matmuls with f32 accumulation.
    g = jnp.dot(x, wg_ref[...], preferred_element_type=jnp.float32)     # (TT, TI) f32
    u = jnp.dot(x, wu_ref[...], preferred_element_type=jnp.float32)     # (TT, TI) f32

    # SiLU(gate) * up, all in f32 on the VPU/EUP.
    h = (g * jax.nn.sigmoid(g)) * u                                      # (TT, TI) f32

    # Partial down-projection for this intermediate slice, accumulated in f32.
    acc_ref[...] += jnp.dot(h.astype(wd_ref.dtype), wd_ref[...],
                            preferred_element_type=jnp.float32)          # (TT, D)

    @pl.when(j == pl.num_programs(1) - 1)
    def _():
        o_ref[...] = acc_ref[...].astype(o_ref.dtype)


# ---------------- wrapper ----------------
def expert_mlp(x, params, *, token_tile=TOKEN_TILE, inter_tile=INTER_TILE,
               compute_dtype=jnp.bfloat16):
    """x: (B, S, HIDDEN) float32 -> (B, S, HIDDEN) float32."""
    B, S, D = x.shape
    wg, wu, wd = params["w_gate"], params["w_up"], params["w_down"]
    I = wg.shape[1]

    T = B * S
    assert T % token_tile == 0, (T, token_tile)
    assert I % inter_tile == 0, (I, inter_tile)

    # Flatten batch*seq into one token axis (bigger M per matmul, fewer grid steps)
    # and narrow only the MXU operands to bf16.
    x2 = x.reshape(T, D).astype(compute_dtype)
    wg = wg.astype(compute_dtype)
    wu = wu.astype(compute_dtype)
    wd = wd.astype(compute_dtype)

    grid = (T // token_tile, I // inter_tile)

    out = pl.pallas_call(
        expert_mlp_kernel,
        out_shape=jax.ShapeDtypeStruct((T, D), jnp.float32),
        grid_spec=pltpu.PrefetchScalarGridSpec(
            num_scalar_prefetch=0,
            grid=grid,
            in_specs=[
                pl.BlockSpec((token_tile, D), lambda i, j: (i, 0)),   # x tokens
                pl.BlockSpec((D, inter_tile), lambda i, j: (0, j)),   # gate_proj slice
                pl.BlockSpec((D, inter_tile), lambda i, j: (0, j)),   # up_proj slice
                pl.BlockSpec((inter_tile, D), lambda i, j: (j, 0)),   # down_proj slice
            ],
            out_specs=pl.BlockSpec((token_tile, D), lambda i, j: (i, 0)),
            scratch_shapes=[pltpu.VMEM((token_tile, D), jnp.float32)],
        ),
        compiler_params=pltpu.CompilerParams(
            dimension_semantics=("parallel", "arbitrary")),
    )(x2, wg, wu, wd)

    return out.reshape(B, S, D)


# ---------------- pure-JAX reference (mirrors the PyTorch forward, f32) ----------------
def reference(x, params):
    g = x @ params["w_gate"]
    u = x @ params["w_up"]
    return (jax.nn.silu(g) * u) @ params["w_down"]


# ---------------- parameter init ----------------
def init_params(key):
    ks = jax.random.split(key, 3)
    std = 0.02
    return {
        # stored as (in, out) == PyTorch nn.Linear weight transposed
        "w_gate": std * jax.random.normal(ks[0], (HIDDEN, INTERMEDIATE), jnp.float32),
        "w_up":   std * jax.random.normal(ks[1], (HIDDEN, INTERMEDIATE), jnp.float32),
        "w_down": std * jax.random.normal(ks[2], (INTERMEDIATE, HIDDEN), jnp.float32),
    }


if __name__ == "__main__":
    key = jax.random.PRNGKey(0)
    pkey, xkey = jax.random.split(key)
    params = init_params(pkey)
    x = jax.random.normal(xkey, (BATCH, SEQ, HIDDEN), jnp.float32)

    out = expert_mlp(x, params)
    out = jax.block_until_ready(out)

    ref = jax.block_until_ready(reference(x, params))
    assert out.shape == (BATCH, SEQ, HIDDEN)
    # bf16 MXU operands + f32 accumulation -> loosened tolerance vs. the f32 reference.
    assert jnp.allclose(out, ref, atol=3e-2, rtol=3e-2), float(jnp.max(jnp.abs(out - ref)))

    print("KERNEL_OK")
</pallas_src>

<mosaic_0001>
module attributes {stable_mosaic.version = 11 : i64} {
  func.func @expert_mlp_kernel(%arg0: i32, %arg1: i32, %arg2: memref<16x576xbf16, #tpu.memory_space<vmem>>, %arg3: memref<576x512xbf16, #tpu.memory_space<vmem>>, %arg4: memref<576x512xbf16, #tpu.memory_space<vmem>>, %arg5: memref<512x576xbf16, #tpu.memory_space<vmem>>, %arg6: memref<16x576xf32, #tpu.memory_space<vmem>>, %arg7: memref<16x576xf32, #tpu.memory_space<vmem>>) attributes {dimension_semantics = [#tpu.dimension_semantics<parallel>, #tpu.dimension_semantics<arbitrary>], iteration_bounds = array<i64: 2, 3>, scalar_prefetch = 0 : i64, scratch_operands = 1 : i64, tpu.core_type = #tpu.core_type<tc>, window_params = [{transform_indices = @transform_0, window_bounds = array<i64: 16, 576>}, {transform_indices = @transform_1, window_bounds = array<i64: 576, 512>}, {transform_indices = @transform_2, window_bounds = array<i64: 576, 512>}, {transform_indices = @transform_3, window_bounds = array<i64: 512, 576>}, {transform_indices = @transform_4, window_bounds = array<i64: 16, 576>}]} {
    %c0_i32 = arith.constant 0 : i32
    %0 = arith.cmpi eq, %arg1, %c0_i32 : i32
    %1 = arith.extui %0 : i1 to i32
    %c0_i32_0 = arith.constant 0 : i32
    %2 = arith.cmpi ne, %1, %c0_i32_0 : i32
    scf.if %2 {
      %cst_16 = arith.constant 0.000000e+00 : f32
      %24 = vector.broadcast %cst_16 : f32 to vector<16x576xf32>
      %c0_17 = arith.constant 0 : index
      %c0_18 = arith.constant 0 : index
      %25 = vector.load %arg7[%c0_17, %c0_18] : memref<16x576xf32, #tpu.memory_space<vmem>>, vector<16x576xf32>
      tpu.vector_store %arg7[%c0_17, %c0_18], %24 {strides = array<i32>} : memref<16x576xf32, #tpu.memory_space<vmem>>, vector<16x576xf32>,
    } else {
    }
    %c0 = arith.constant 0 : index
    %c0_1 = arith.constant 0 : index
    %3 = vector.load %arg2[%c0, %c0_1] : memref<16x576xbf16, #tpu.memory_space<vmem>>, vector<16x576xbf16>
    %c0_2 = arith.constant 0 : index
    %c0_3 = arith.constant 0 : index
    %4 = vector.load %arg3[%c0_2, %c0_3] : memref<576x512xbf16, #tpu.memory_space<vmem>>, vector<576x512xbf16>
    %cst = arith.constant dense<0.000000e+00> : vector<16x512xf32>
    %5 = tpu.matmul %3, %4, %cst {dimension_numbers = #tpu.dot_dimension_numbers<[1], [0], [0], [1], [0, 0, 1, 1], [], []>} : vector<16x576xbf16>, vector<576x512xbf16>, vector<16x512xf32> -> vector<16x512xf32>
    %c0_4 = arith.constant 0 : index
    %c0_5 = arith.constant 0 : index
    %6 = vector.load %arg4[%c0_4, %c0_5] : memref<576x512xbf16, #tpu.memory_space<vmem>>, vector<576x512xbf16>
    %cst_6 = arith.constant dense<0.000000e+00> : vector<16x512xf32>
    %7 = tpu.matmul %3, %6, %cst_6 {dimension_numbers = #tpu.dot_dimension_numbers<[1], [0], [0], [1], [0, 0, 1, 1], [], []>} : vector<16x576xbf16>, vector<576x512xbf16>, vector<16x512xf32> -> vector<16x512xf32>
    %8 = arith.negf %5 : vector<16x512xf32>
    %9 = math.exp %8 : vector<16x512xf32>
    %cst_7 = arith.constant 1.000000e+00 : f32
    %10 = vector.broadcast %cst_7 : f32 to vector<16x512xf32>
    %11 = arith.addf %10, %9 : vector<16x512xf32>
    %12 = arith.divf %10, %11 : vector<16x512xf32>
    %13 = arith.mulf %5, %12 : vector<16x512xf32>
    %14 = arith.mulf %13, %7 : vector<16x512xf32>
    %c0_8 = arith.constant 0 : index
    %c0_9 = arith.constant 0 : index
    %15 = vector.load %arg7[%c0_8, %c0_9] : memref<16x576xf32, #tpu.memory_space<vmem>>, vector<16x576xf32>
    %16 = arith.truncf %14 : vector<16x512xf32> to vector<16x512xbf16>
    %c0_10 = arith.constant 0 : index
    %c0_11 = arith.constant 0 : index
    %17 = vector.load %arg5[%c0_10, %c0_11] : memref<512x576xbf16, #tpu.memory_space<vmem>>, vector<512x576xbf16>
    %cst_12 = arith.constant dense<0.000000e+00> : vector<16x576xf32>
    %18 = tpu.matmul %16, %17, %cst_12 {dimension_numbers = #tpu.dot_dimension_numbers<[1], [0], [0], [1], [0, 0, 1, 1], [], []>} : vector<16x512xbf16>, vector<512x576xbf16>, vector<16x576xf32> -> vector<16x576xf32>
    %19 = arith.addf %15, %18 : vector<16x576xf32>
    %c0_13 = arith.constant 0 : index
    %c0_14 = arith.constant 0 : index
    %20 = vector.load %arg7[%c0_13, %c0_14] : memref<16x576xf32, #tpu.memory_space<vmem>>, vector<16x576xf32>
    tpu.vector_store %arg7[%c0_13, %c0_14], %19 {strides = array<i32>} : memref<16x576xf32, #tpu.memory_space<vmem>>, vector<16x576xf32>,
    %c2_i32 = arith.constant 2 : i32
    %21 = arith.cmpi eq, %arg1, %c2_i32 : i32
    %22 = arith.extui %21 : i1 to i32
    %c0_i32_15 = arith.constant 0 : i32
    %23 = arith.cmpi ne, %22, %c0_i32_15 : i32
    scf.if %23 {
      %c0_16 = arith.constant 0 : index
      %c0_17 = arith.constant 0 : index
      %24 = vector.load %arg7[%c0_16, %c0_17] : memref<16x576xf32, #tpu.memory_space<vmem>>, vector<16x576xf32>
      %c0_18 = arith.constant 0 : index
      %c0_19 = arith.constant 0 : index
      %25 = vector.load %arg6[%c0_18, %c0_19] : memref<16x576xf32, #tpu.memory_space<vmem>>, vector<16x576xf32>
      tpu.vector_store %arg6[%c0_18, %c0_19], %24 {strides = array<i32>} : memref<16x576xf32, #tpu.memory_space<vmem>>, vector<16x576xf32>,
    } else {
    }
    return
  }
  func.func @transform_0(%arg0: i32, %arg1: i32) -> (i32, i32) {
    %c0_i32 = arith.constant 0 : i32
    %c0_i32_0 = arith.constant 0 : i32
    return %arg0, %c0_i32 : i32, i32
  }
  func.func @transform_1(%arg0: i32, %arg1: i32) -> (i32, i32) {
    %c0_i32 = arith.constant 0 : i32
    %c0_i32_0 = arith.constant 0 : i32
    return %c0_i32, %arg1 : i32, i32
  }
  func.func @transform_2(%arg0: i32, %arg1: i32) -> (i32, i32) {
    %c0_i32 = arith.constant 0 : i32
    %c0_i32_0 = arith.constant 0 : i32
    return %c0_i32, %arg1 : i32, i32
  }
  func.func @transform_3(%arg0: i32, %arg1: i32) -> (i32, i32) {
    %c0_i32 = arith.constant 0 : i32
    %c0_i32_0 = arith.constant 0 : i32
    return %arg1, %c0_i32 : i32, i32
  }
  func.func @transform_4(%arg0: i32, %arg1: i32) -> (i32, i32) {
    %c0_i32 = arith.constant 0 : i32
    %c0_i32_0 = arith.constant 0 : i32
    return %arg0, %c0_i32 : i32, i32
  }
}

</mosaic_0001>

<bundles_post_ra>
// kernel: tpu_custom_call.1
= control target key start
LH: loop header
LB: loop body
LE: loop exit
PB: predicated region body
PF: predicated region fallthrough
CT: control target
= control target key end

     0   :  { %s7559_s0 = inlined_call_operand.vmem [shape: bf16[32,576], index: 0, kind: input, shape index: {}]   ;;  %s7560_s1 = inlined_call_operand.vmem [shape: bf16[576,1536], index: 1, kind: input, shape index: {}]   ;;  %s7561_s2 = inlined_call_operand.vmem [shape: bf16[576,1536], index: 2, kind: input, shape index: {}]   ;;  %s7562_s3 = inlined_call_operand.vmem [shape: bf16[1536,576], index: 3, kind: input, shape index: {}]   ;;  %s7563_s4 = inlined_call_operand.hbm [shape: f32[32,576], index: 4, kind: output, shape index: {}]  }
   0x1   :  { %7567 = sst [smem:[#allocation10_spill]] %s7560_s1 }
   0x2   :  { %7568 = sst [smem:[#allocation11_spill]] %s7561_s2 }
   0x3   :  { %9 = vsyncpa [#allocation6], 0 }
   0x4   :  { %11 = vsyncpa [#allocation6 + $0x1], 0  ;;  %s6233_s15 = smov 0   ;;  %s6235_s16 = smov 0  }
   0x5   :  { %s6237_s17 = smov 0   ;;  %s6239_s18 = smov 0  }
   0x6   :  { %s6241_s19 = smov 0   ;;  %s6243_s20 = smov 0  }
   0x7   :  { %s6245_s21 = smov 0   ;;  %s6247_s22 = smov 0  }
   0x8   :  { %s6249_s23 = smov 0   ;;  %s6251_s24 = smov 0  }
   0x9 LB: > { %s4724_s25 = sadd.s32 4294967295, %s6201_s24   ;;  %s4725_s26 = sadd.s32 4294967294, %s6201_s24   ;;  %s6201_s24 = sphi %s6251_s24, %s17_s24   ;;  %s6197_s23 = sphi %s6249_s23, %s7587_s23   ;;  %s6193_s22 = sphi %s6247_s22, %s7586_s22   ;;  %s6189_s21 = sphi %s6245_s21, %s7585_s21   ;;  %s6185_s20 = sphi %s6243_s20, %s7584_s20   ;;  %s6181_s19 = sphi %s6241_s19, %s7583_s19   ;;  %s6177_s18 = sphi %s6239_s18, %s7582_s18   ;;  %s6173_s17 = sphi %s6237_s17, %s7581_s17   ;;  %s6169_s16 = sphi %s6235_s16, %s7580_s16   ;;  %s6165_s15 = sphi %s6233_s15, %s7579_s15  }
   0xa   : > { %s26_s27 = sadd.s32 1, %s6193_s22  ;;  %s29_s28 = sadd.s32 1, %s6197_s23 }
   0xb   : > { %p27_p0 = scmp.ge.s32.totalorder %s26_s27, 3  ;;  %s62_s29 = sadd.s32 1, %s6181_s19 }
   0xc   : > { %p69_p1 = scmp.ne.s32.totalorder %s6181_s19, %s6177_s18  ;;  %p70_p2 = scmp.eq.s32.totalorder %s6201_s24, 0 }
   0xd   : > { %s7589_s27 = smov (%p27_p0, %s26_s27), 0  ;;  %s7591_s28 = smov (!%p27_p0, %s29_s28), %s6197_s23 }
   0xe   : > { %7569 = sst [smem:[#allocation8_spill]] %s7589_s27  ;;  %s59_s30 = ssub.s32 %s6193_s22, %s7589_s27 }
   0xf   : > { %p6296_p3 = por %p70_p2, %p69_p1  ;;  %p31_p4 = scmp.ge.s32.totalorder %s7591_s28, 2 }
  0x10   : > { %p60_p5 = scmp.eq.s32.totalorder %s59_s30, 0  ;;  %s140_s6 = sadd.s32 1, %s6173_s17 }
  0x11   : > { %p150_p6 = scmp.ne.s32.totalorder %s6173_s17, %s6169_s16  ;;  %s7593_s28 = smov (%p31_p4, %s7591_s28), 0 }
  0x12   : > { %7571 = sst [smem:[#allocation9_spill]] %s7593_s28  ;;  %s137_s8 = ssub.s32 %s6197_s23, %s7593_s28 }
  0x13   : > { %s6306_s7 = scalar_select %p60_p5, %s6181_s19, %s62_s29  }
  0x14   : > { %p151_p7 = scmp.eq.s32.totalorder %s4724_s25, 5  ;;  %p138_p8 = scmp.eq.s32.totalorder %s137_s8, 0 }
  0x15   : > { %p156_p9 = scmp.ne.s32.totalorder %s6169_s16, %s6165_s15  ;;  %p157_p11 = scmp.eq.s32.totalorder %s4725_s26, 5 }
  0x16   : > { %p6312_p10 = por %p151_p7, %p150_p6  ;;  %p4727_p13 = scmp.ge.s32.totalorder %s6201_s24, 6 }
  0x17   : > { %s6317_s10 = scalar_select %p138_p8, %s6173_s17, %s140_s6  }
  0x18   : > { %p6319_p12 = por %p157_p11, %p156_p9  ;;  %173 = sbr.rel (%p4727_p13) target bundleno = 197 (0xc5), region = 16 }
  0x1f   : > { %186 = sbr.rel (!%p6296_p3) target bundleno = 114 (0x72), region = 24  ;;  %s188_s12 = sand.u32 (%p6296_p3), 1, %s6181_s19  }
  0x20   : > { %s5209_s13 = sshll.u32 (%p6296_p3), %s6193_s22, 4  ;;  %s5295_s14 = smul.u32 (%p6296_p3), 1152, %s188_s12 }
  0x21   : > { %s7574_s1 = sld [smem:[#allocation10_spill]] (%p6296_p3) }
  0x22   : > { %s6339_s30 = scalar_lea.vmem (%p6296_p3), [#allocation3], %s5295_s14 }
  0x27   : > { %s6331_s26 = scalar_lea.vmem %s7574_s1, %s5209_s13 }
  0x28   : > { %v206_v0 = vld [vmem:[%s6331_s26] sm:$0xff]  ;;  %v208_v1 = vld [vmem:[%s6331_s26 + $0x8] sm:$0xff]  ;;  %v210_v2 = vld [vmem:[%s6331_s26 + $0x30] sm:$0xff] }
  0x29   : > { %v212_v3 = vld [vmem:[%s6331_s26 + $0x38] sm:$0xff]  ;;  %v214_v4 = vld [vmem:[%s6331_s26 + $0x60] sm:$0xff]  ;;  %v216_v5 = vld [vmem:[%s6331_s26 + $0x68] sm:$0xff]  ;;  %207 = vst [vmem:[%s6339_s30] sm:$0xff] %v206_v0 }
  0x2a   : > { %209 = vst [vmem:[%s6339_s30 + $0x8] sm:$0xff] %v208_v1  ;;  %211 = vst [vmem:[%s6339_s30 + $0x10] sm:$0xff] %v210_v2  ;;  %v218_v6 = vld [vmem:[%s6331_s26 + $0x90] sm:$0xff]  ;;  %v220_v7 = vld [vmem:[%s6331_s26 + $0x98] sm:$0xff] }
  0x2b   : > { %213 = vst [vmem:[%s6339_s30 + $0x18] sm:$0xff] %v212_v3  ;;  %215 = vst [vmem:[%s6339_s30 + $0x20] sm:$0xff] %v214_v4  ;;  %v222_v8 = vld [vmem:[%s6331_s26 + $0xc0] sm:$0xff]  ;;  %v224_v9 = vld [vmem:[%s6331_s26 + $0xc8] sm:$0xff] }
  0x2c   : > { %217 = vst [vmem:[%s6339_s30 + $0x28] sm:$0xff] %v216_v5  ;;  %219 = vst [vmem:[%s6339_s30 + $0x30] sm:$0xff] %v218_v6  ;;  %v226_v10 = vld [vmem:[%s6331_s26 + $0xf0] sm:$0xff]  ;;  %v228_v11 = vld [vmem:[%s6331_s26 + $0xf8] sm:$0xff] }
  0x2d   : > { %221 = vst [vmem:[%s6339_s30 + $0x38] sm:$0xff] %v220_v7  ;;  %223 = vst [vmem:[%s6339_s30 + $0x40] sm:$0xff] %v222_v8  ;;  %v230_v12 = vld [vmem:[%s6331_s26 + $0x120] sm:$0xff]  ;;  %v232_v13 = vld [vmem:[%s6331_s26 + $0x128] sm:$0xff] }
  0x2e   : > { %225 = vst [vmem:[%s6339_s30 + $0x48] sm:$0xff] %v224_v9  ;;  %227 = vst [vmem:[%s6339_s30 + $0x50] sm:$0xff] %v226_v10  ;;  %v234_v14 = vld [vmem:[%s6331_s26 + $0x150] sm:$0xff]  ;;  %v236_v15 = vld [vmem:[%s6331_s26 + $0x158] sm:$0xff] }
  0x2f   : > { %229 = vst [vmem:[%s6339_s30 + $0x58] sm:$0xff] %v228_v11  ;;  %231 = vst [vmem:[%s6339_s30 + $0x60] sm:$0xff] %v230_v12  ;;  %v238_v16 = vld [vmem:[%s6331_s26 + $0x180] sm:$0xff]  ;;  %v240_v17 = vld [vmem:[%s6331_s26 + $0x188] sm:$0xff] }
  0x30   : > { %233 = vst [vmem:[%s6339_s30 + $0x68] sm:$0xff] %v232_v13  ;;  %235 = vst [vmem:[%s6339_s30 + $0x70] sm:$0xff] %v234_v14  ;;  %v242_v18 = vld [vmem:[%s6331_s26 + $0x1b0] sm:$0xff]  ;;  %v244_v19 = vld [vmem:[%s6331_s26 + $0x1b8] sm:$0xff] }
  0x31   : > { %237 = vst [vmem:[%s6339_s30 + $0x78] sm:$0xff] %v236_v15  ;;  %239 = vst [vmem:[%s6339_s30 + $0x80] sm:$0xff] %v238_v16  ;;  %v246_v20 = vld [vmem:[%s6331_s26 + $0x1e0] sm:$0xff]  ;;  %v248_v21 = vld [vmem:[%s6331_s26 + $0x1e8] sm:$0xff] }
  0x32   : > { %241 = vst [vmem:[%s6339_s30 + $0x88] sm:$0xff] %v240_v17  ;;  %243 = vst [vmem:[%s6339_s30 + $0x90] sm:$0xff] %v242_v18  ;;  %v250_v22 = vld [vmem:[%s6331_s26 + $0x210] sm:$0xff]  ;;  %v252_v23 = vld [vmem:[%s6331_s26 + $0x218] sm:$0xff] }
  0x33   : > { %245 = vst [vmem:[%s6339_s30 + $0x98] sm:$0xff] %v244_v19  ;;  %247 = vst [vmem:[%s6339_s30 + $0xa0] sm:$0xff] %v246_v20  ;;  %v254_v24 = vld [vmem:[%s6331_s26 + $0x240] sm:$0xff]  ;;  %v256_v25 = vld [vmem:[%s6331_s26 + $0x248] sm:$0xff] }
  0x34   : > { %249 = vst [vmem:[%s6339_s30 + $0xa8] sm:$0xff] %v248_v21  ;;  %251 = vst [vmem:[%s6339_s30 + $0xb0] sm:$0xff] %v250_v22  ;;  %v258_v26 = vld [vmem:[%s6331_s26 + $0x270] sm:$0xff]  ;;  %v260_v27 = vld [vmem:[%s6331_s26 + $0x278] sm:$0xff] }
  0x35   : > { %253 = vst [vmem:[%s6339_s30 + $0xb8] sm:$0xff] %v252_v23  ;;  %255 = vst [vmem:[%s6339_s30 + $0xc0] sm:$0xff] %v254_v24  ;;  %v262_v28 = vld [vmem:[%s6331_s26 + $0x2a0] sm:$0xff]  ;;  %v264_v29 = vld [vmem:[%s6331_s26 + $0x2a8] sm:$0xff] }
  0x36   : > { %257 = vst [vmem:[%s6339_s30 + $0xc8] sm:$0xff] %v256_v25  ;;  %259 = vst [vmem:[%s6339_s30 + $0xd0] sm:$0xff] %v258_v26  ;;  %v266_v30 = vld [vmem:[%s6331_s26 + $0x2d0] sm:$0xff]  ;;  %v268_v31 = vld [vmem:[%s6331_s26 + $0x2d8] sm:$0xff] }
  0x37   : > { %261 = vst [vmem:[%s6339_s30 + $0xd8] sm:$0xff] %v260_v27  ;;  %263 = vst [vmem:[%s6339_s30 + $0xe0] sm:$0xff] %v262_v28  ;;  %v270_v32 = vld [vmem:[%s6331_s26 + $0x300] sm:$0xff]  ;;  %v272_v33 = vld [vmem:[%s6331_s26 + $0x308] sm:$0xff] }
  0x38   : > { %265 = vst [vmem:[%s6339_s30 + $0xe8] sm:$0xff] %v264_v29  ;;  %267 = vst [vmem:[%s6339_s30 + $0xf0] sm:$0xff] %v266_v30  ;;  %v274_v34 = vld [vmem:[%s6331_s26 + $0x330] sm:$0xff]  ;;  %v276_v35 = vld [vmem:[%s6331_s26 + $0x338] sm:$0xff] }
  0x39   : > { %269 = vst [vmem:[%s6339_s30 + $0xf8] sm:$0xff] %v268_v31  ;;  %271 = vst [vmem:[%s6339_s30 + $0x100] sm:$0xff] %v270_v32  ;;  %v278_v36 = vld [vmem:[%s6331_s26 + $0x360] sm:$0xff]  ;;  %v280_v37 = vld [vmem:[%s6331_s26 + $0x368] sm:$0xff] }
  0x3a   : > { %273 = vst [vmem:[%s6339_s30 + $0x108] sm:$0xff] %v272_v33  ;;  %275 = vst [vmem:[%s6339_s30 + $0x110] sm:$0xff] %v274_v34  ;;  %v282_v38 = vld [vmem:[%s6331_s26 + $0x390] sm:$0xff]  ;;  %v284_v39 = vld [vmem:[%s6331_s26 + $0x398] sm:$0xff] }
  0x3b   : > { %277 = vst [vmem:[%s6339_s30 + $0x118] sm:$0xff] %v276_v35  ;;  %279 = vst [vmem:[%s6339_s30 + $0x120] sm:$0xff] %v278_v36  ;;  %v286_v40 = vld [vmem:[%s6331_s26 + $0x3c0] sm:$0xff]  ;;  %v288_v41 = vld [vmem:[%s6331_s26 + $0x3c8] sm:$0xff] }
  0x3c   : > { %281 = vst [vmem:[%s6339_s30 + $0x128] sm:$0xff] %v280_v37  ;;  %283 = vst [vmem:[%s6339_s30 + $0x130] sm:$0xff] %v282_v38  ;;  %v290_v42 = vld [vmem:[%s6331_s26 + $0x3f0] sm:$0xff]  ;;  %v292_v43 = vld [vmem:[%s6331_s26 + $0x3f8] sm:$0xff] }
  0x3d   : > { %285 = vst [vmem:[%s6339_s30 + $0x138] sm:$0xff] %v284_v39  ;;  %287 = vst [vmem:[%s6339_s30 + $0x140] sm:$0xff] %v286_v40  ;;  %v294_v44 = vld [vmem:[%s6331_s26 + $0x420] sm:$0xff]  ;;  %v296_v45 = vld [vmem:[%s6331_s26 + $0x428] sm:$0xff] }
  0x3e   : > { %289 = vst [vmem:[%s6339_s30 + $0x148] sm:$0xff] %v288_v41  ;;  %291 = vst [vmem:[%s6339_s30 + $0x150] sm:$0xff] %v290_v42  ;;  %v298_v46 = vld [vmem:[%s6331_s26 + $0x450] sm:$0xff]  ;;  %v300_v47 = vld [vmem:[%s6331_s26 + $0x458] sm:$0xff] }
  0x3f   : > { %293 = vst [vmem:[%s6339_s30 + $0x158] sm:$0xff] %v292_v43  ;;  %295 = vst [vmem:[%s6339_s30 + $0x160] sm:$0xff] %v294_v44  ;;  %v302_v48 = vld [vmem:[%s6331_s26 + $0x480] sm:$0xff]  ;;  %v304_v49 = vld [vmem:[%s6331_s26 + $0x488] sm:$0xff] }
  0x40   : > { %297 = vst [vmem:[%s6339_s30 + $0x168] sm:$0xff] %v296_v45  ;;  %299 = vst [vmem:[%s6339_s30 + $0x170] sm:$0xff] %v298_v46  ;;  %v306_v50 = vld [vmem:[%s6331_s26 + $0x4b0] sm:$0xff]  ;;  %v308_v51 = vld [vmem:[%s6331_s26 + $0x4b8] sm:$0xff] }
  0x41   : > { %301 = vst [vmem:[%s6339_s30 + $0x178] sm:$0xff] %v300_v47  ;;  %303 = vst [vmem:[%s6339_s30 + $0x180] sm:$0xff] %v302_v48  ;;  %v310_v52 = vld [vmem:[%s6331_s26 + $0x4e0] sm:$0xff]  ;;  %v312_v53 = vld [vmem:[%s6331_s26 + $0x4e8] sm:$0xff] }
  0x42   : > { %305 = vst [vmem:[%s6339_s30 + $0x188] sm:$0xff] %v304_v49  ;;  %307 = vst [vmem:[%s6339_s30 + $0x190] sm:$0xff] %v306_v50  ;;  %v314_v54 = vld [vmem:[%s6331_s26 + $0x510] sm:$0xff]  ;;  %v316_v55 = vld [vmem:[%s6331_s26 + $0x518] sm:$0xff] }
  0x43   : > { %309 = vst [vmem:[%s6339_s30 + $0x198] sm:$0xff] %v308_v51  ;;  %311 = vst [vmem:[%s6339_s30 + $0x1a0] sm:$0xff] %v310_v52  ;;  %v318_v56 = vld [vmem:[%s6331_s26 + $0x540] sm:$0xff]  ;;  %v320_v57 = vld [vmem:[%s6331_s26 + $0x548] sm:$0xff] }
  0x44   : > { %313 = vst [vmem:[%s6339_s30 + $0x1a8] sm:$0xff] %v312_v53  ;;  %315 = vst [vmem:[%s6339_s30 + $0x1b0] sm:$0xff] %v314_v54  ;;  %v322_v58 = vld [vmem:[%s6331_s26 + $0x570] sm:$0xff]  ;;  %v324_v59 = vld [vmem:[%s6331_s26 + $0x578] sm:$0xff] }
  0x45   : > { %317 = vst [vmem:[%s6339_s30 + $0x1b8] sm:$0xff] %v316_v55  ;;  %319 = vst [vmem:[%s6339_s30 + $0x1c0] sm:$0xff] %v318_v56  ;;  %v326_v60 = vld [vmem:[%s6331_s26 + $0x5a0] sm:$0xff]  ;;  %v328_v61 = vld [vmem:[%s6331_s26 + $0x5a8] sm:$0xff] }
  0x46   : > { %321 = vst [vmem:[%s6339_s30 + $0x1c8] sm:$0xff] %v320_v57  ;;  %323 = vst [vmem:[%s6339_s30 + $0x1d0] sm:$0xff] %v322_v58  ;;  %v330_v62 = vld [vmem:[%s6331_s26 + $0x5d0] sm:$0xff]  ;;  %v332_v63 = vld [vmem:[%s6331_s26 + $0x5d8] sm:$0xff] }
  0x47   : > { %325 = vst [vmem:[%s6339_s30 + $0x1d8] sm:$0xff] %v324_v59  ;;  %327 = vst [vmem:[%s6339_s30 + $0x1e0] sm:$0xff] %v326_v60  ;;  %v334_v0 = vld [vmem:[%s6331_s26 + $0x600] sm:$0xff]  ;;  %v336_v1 = vld [vmem:[%s6331_s26 + $0x608] sm:$0xff] }
  0x48   : > { %329 = vst [vmem:[%s6339_s30 + $0x1e8] sm:$0xff] %v328_v61  ;;  %331 = vst [vmem:[%s6339_s30 + $0x1f0] sm:$0xff] %v330_v62  ;;  %v338_v2 = vld [vmem:[%s6331_s26 + $0x630] sm:$0xff]  ;;  %v340_v3 = vld [vmem:[%s6331_s26 + $0x638] sm:$0xff] }
  0x49   : > { %333 = vst [vmem:[%s6339_s30 + $0x1f8] sm:$0xff] %v332_v63  ;;  %335 = vst [vmem:[%s6339_s30 + $0x200] sm:$0xff] %v334_v0  ;;  %v342_v4 = vld [vmem:[%s6331_s26 + $0x660] sm:$0xff]  ;;  %v344_v5 = vld [vmem:[%s6331_s26 + $0x668] sm:$0xff] }
  0x4a   : > { %337 = vst [vmem:[%s6339_s30 + $0x208] sm:$0xff] %v336_v1  ;;  %339 = vst [vmem:[%s6339_s30 + $0x210] sm:$0xff] %v338_v2  ;;  %v346_v6 = vld [vmem:[%s6331_s26 + $0x690] sm:$0xff]  ;;  %v348_v7 = vld [vmem:[%s6331_s26 + $0x698] sm:$0xff] }
  0x4b   : > { %341 = vst [vmem:[%s6339_s30 + $0x218] sm:$0xff] %v340_v3  ;;  %343 = vst [vmem:[%s6339_s30 + $0x220] sm:$0xff] %v342_v4  ;;  %v350_v8 = vld [vmem:[%s6331_s26 + $0x6c0] sm:$0xff]  ;;  %v352_v9 = vld [vmem:[%s6331_s26 + $0x6c8] sm:$0xff] }
  0x4c   : > { %345 = vst [vmem:[%s6339_s30 + $0x228] sm:$0xff] %v344_v5  ;;  %347 = vst [vmem:[%s6339_s30 + $0x230] sm:$0xff] %v346_v6  ;;  %v354_v10 = vld [vmem:[%s6331_s26 + $0x6f0] sm:$0xff]  ;;  %v356_v11 = vld [vmem:[%s6331_s26 + $0x6f8] sm:$0xff] }
  0x4d   : > { %349 = vst [vmem:[%s6339_s30 + $0x238] sm:$0xff] %v348_v7  ;;  %351 = vst [vmem:[%s6339_s30 + $0x240] sm:$0xff] %v350_v8  ;;  %v358_v12 = vld [vmem:[%s6331_s26 + $0x720] sm:$0xff]  ;;  %v360_v13 = vld [vmem:[%s6331_s26 + $0x728] sm:$0xff] }
  0x4e   : > { %353 = vst [vmem:[%s6339_s30 + $0x248] sm:$0xff] %v352_v9  ;;  %355 = vst [vmem:[%s6339_s30 + $0x250] sm:$0xff] %v354_v10  ;;  %v362_v14 = vld [vmem:[%s6331_s26 + $0x750] sm:$0xff]  ;;  %v364_v15 = vld [vmem:[%s6331_s26 + $0x758] sm:$0xff] }
  0x4f   : > { %357 = vst [vmem:[%s6339_s30 + $0x258] sm:$0xff] %v356_v11  ;;  %359 = vst [vmem:[%s6339_s30 + $0x260] sm:$0xff] %v358_v12  ;;  %v366_v16 = vld [vmem:[%s6331_s26 + $0x780] sm:$0xff]  ;;  %v368_v17 = vld [vmem:[%s6331_s26 + $0x788] sm:$0xff] }
  0x50   : > { %361 = vst [vmem:[%s6339_s30 + $0x268] sm:$0xff] %v360_v13  ;;  %363 = vst [vmem:[%s6339_s30 + $0x270] sm:$0xff] %v362_v14  ;;  %v370_v18 = vld [vmem:[%s6331_s26 + $0x7b0] sm:$0xff]  ;;  %v372_v19 = vld [vmem:[%s6331_s26 + $0x7b8] sm:$0xff] }
  0x51   : > { %365 = vst [vmem:[%s6339_s30 + $0x278] sm:$0xff] %v364_v15  ;;  %367 = vst [vmem:[%s6339_s30 + $0x280] sm:$0xff] %v366_v16  ;;  %v374_v20 = vld [vmem:[%s6331_s26 + $0x7e0] sm:$0xff]  ;;  %v376_v21 = vld [vmem:[%s6331_s26 + $0x7e8] sm:$0xff] }
  0x52   : > { %369 = vst [vmem:[%s6339_s30 + $0x288] sm:$0xff] %v368_v17  ;;  %371 = vst [vmem:[%s6339_s30 + $0x290] sm:$0xff] %v370_v18  ;;  %v378_v22 = vld [vmem:[%s6331_s26 + $0x810] sm:$0xff]  ;;  %v380_v23 = vld [vmem:[%s6331_s26 + $0x818] sm:$0xff] }
  0x53   : > { %373 = vst [vmem:[%s6339_s30 + $0x298] sm:$0xff] %v372_v19  ;;  %375 = vst [vmem:[%s6339_s30 + $0x2a0] sm:$0xff] %v374_v20  ;;  %v382_v24 = vld [vmem:[%s6331_s26 + $0x840] sm:$0xff]  ;;  %v384_v25 = vld [vmem:[%s6331_s26 + $0x848] sm:$0xff] }
  0x54   : > { %377 = vst [vmem:[%s6339_s30 + $0x2a8] sm:$0xff] %v376_v21  ;;  %379 = vst [vmem:[%s6339_s30 + $0x2b0] sm:$0xff] %v378_v22  ;;  %v386_v26 = vld [vmem:[%s6331_s26 + $0x870] sm:$0xff]  ;;  %v388_v27 = vld [vmem:[%s6331_s26 + $0x878] sm:$0xff] }
  0x55   : > { %381 = vst [vmem:[%s6339_s30 + $0x2b8] sm:$0xff] %v380_v23  ;;  %383 = vst [vmem:[%s6339_s30 + $0x2c0] sm:$0xff] %v382_v24  ;;  %v390_v28 = vld [vmem:[%s6331_s26 + $0x8a0] sm:$0xff]  ;;  %v392_v29 = vld [vmem:[%s6331_s26 + $0x8a8] sm:$0xff] }
  0x56   : > { %385 = vst [vmem:[%s6339_s30 + $0x2c8] sm:$0xff] %v384_v25  ;;  %387 = vst [vmem:[%s6339_s30 + $0x2d0] sm:$0xff] %v386_v26  ;;  %v394_v30 = vld [vmem:[%s6331_s26 + $0x8d0] sm:$0xff]  ;;  %v396_v31 = vld [vmem:[%s6331_s26 + $0x8d8] sm:$0xff] }
  0x57   : > { %389 = vst [vmem:[%s6339_s30 + $0x2d8] sm:$0xff] %v388_v27  ;;  %391 = vst [vmem:[%s6339_s30 + $0x2e0] sm:$0xff] %v390_v28  ;;  %v398_v32 = vld [vmem:[%s6331_s26 + $0x900] sm:$0xff]  ;;  %v400_v33 = vld [vmem:[%s6331_s26 + $0x908] sm:$0xff] }
  0x58   : > { %393 = vst [vmem:[%s6339_s30 + $0x2e8] sm:$0xff] %v392_v29  ;;  %395 = vst [vmem:[%s6339_s30 + $0x2f0] sm:$0xff] %v394_v30  ;;  %v402_v34 = vld [vmem:[%s6331_s26 + $0x930] sm:$0xff]  ;;  %v404_v35 = vld [vmem:[%s6331_s26 + $0x938] sm:$0xff] }
  0x59   : > { %397 = vst [vmem:[%s6339_s30 + $0x2f8] sm:$0xff] %v396_v31  ;;  %399 = vst [vmem:[%s6339_s30 + $0x300] sm:$0xff] %v398_v32  ;;  %v406_v36 = vld [vmem:[%s6331_s26 + $0x960] sm:$0xff]  ;;  %v408_v37 = vld [vmem:[%s6331_s26 + $0x968] sm:$0xff] }
  0x5a   : > { %401 = vst [vmem:[%s6339_s30 + $0x308] sm:$0xff] %v400_v33  ;;  %403 = vst [vmem:[%s6339_s30 + $0x310] sm:$0xff] %v402_v34  ;;  %v410_v38 = vld [vmem:[%s6331_s26 + $0x990] sm:$0xff]  ;;  %v412_v39 = vld [vmem:[%s6331_s26 + $0x998] sm:$0xff] }
  0x5b   : > { %405 = vst [vmem:[%s6339_s30 + $0x318] sm:$0xff] %v404_v35  ;;  %407 = vst [vmem:[%s6339_s30 + $0x320] sm:$0xff] %v406_v36  ;;  %v414_v40 = vld [vmem:[%s6331_s26 + $0x9c0] sm:$0xff]  ;;  %v416_v41 = vld [vmem:[%s6331_s26 + $0x9c8] sm:$0xff] }
  0x5c   : > { %409 = vst [vmem:[%s6339_s30 + $0x328] sm:$0xff] %v408_v37  ;;  %411 = vst [vmem:[%s6339_s30 + $0x330] sm:$0xff] %v410_v38  ;;  %v418_v42 = vld [vmem:[%s6331_s26 + $0x9f0] sm:$0xff]  ;;  %v420_v43 = vld [vmem:[%s6331_s26 + $0x9f8] sm:$0xff] }
  0x5d   : > { %413 = vst [vmem:[%s6339_s30 + $0x338] sm:$0xff] %v412_v39  ;;  %415 = vst [vmem:[%s6339_s30 + $0x340] sm:$0xff] %v414_v40  ;;  %v422_v44 = vld [vmem:[%s6331_s26 + $0xa20] sm:$0xff]  ;;  %v424_v45 = vld [vmem:[%s6331_s26 + $0xa28] sm:$0xff] }
  0x5e   : > { %417 = vst [vmem:[%s6339_s30 + $0x348] sm:$0xff] %v416_v41  ;;  %419 = vst [vmem:[%s6339_s30 + $0x350] sm:$0xff] %v418_v42  ;;  %v426_v46 = vld [vmem:[%s6331_s26 + $0xa50] sm:$0xff]  ;;  %v428_v47 = vld [vmem:[%s6331_s26 + $0xa58] sm:$0xff] }
  0x5f   : > { %421 = vst [vmem:[%s6339_s30 + $0x358] sm:$0xff] %v420_v43  ;;  %423 = vst [vmem:[%s6339_s30 + $0x360] sm:$0xff] %v422_v44  ;;  %v430_v48 = vld [vmem:[%s6331_s26 + $0xa80] sm:$0xff]  ;;  %v432_v49 = vld [vmem:[%s6331_s26 + $0xa88] sm:$0xff] }
  0x60   : > { %425 = vst [vmem:[%s6339_s30 + $0x368] sm:$0xff] %v424_v45  ;;  %427 = vst [vmem:[%s6339_s30 + $0x370] sm:$0xff] %v426_v46  ;;  %v434_v50 = vld [vmem:[%s6331_s26 + $0xab0] sm:$0xff]  ;;  %v436_v51 = vld [vmem:[%s6331_s26 + $0xab8] sm:$0xff] }
  0x61   : > { %429 = vst [vmem:[%s6339_s30 + $0x378] sm:$0xff] %v428_v47  ;;  %431 = vst [vmem:[%s6339_s30 + $0x380] sm:$0xff] %v430_v48  ;;  %v438_v52 = vld [vmem:[%s6331_s26 + $0xae0] sm:$0xff]  ;;  %v440_v53 = vld [vmem:[%s6331_s26 + $0xae8] sm:$0xff] }
  0x62   : > { %433 = vst [vmem:[%s6339_s30 + $0x388] sm:$0xff] %v432_v49  ;;  %435 = vst [vmem:[%s6339_s30 + $0x390] sm:$0xff] %v434_v50  ;;  %v442_v54 = vld [vmem:[%s6331_s26 + $0xb10] sm:$0xff]  ;;  %v444_v55 = vld [vmem:[%s6331_s26 + $0xb18] sm:$0xff] }
  0x63   : > { %437 = vst [vmem:[%s6339_s30 + $0x398] sm:$0xff] %v436_v51  ;;  %439 = vst [vmem:[%s6339_s30 + $0x3a0] sm:$0xff] %v438_v52  ;;  %v446_v56 = vld [vmem:[%s6331_s26 + $0xb40] sm:$0xff]  ;;  %v448_v57 = vld [vmem:[%s6331_s26 + $0xb48] sm:$0xff] }
  0x64   : > { %441 = vst [vmem:[%s6339_s30 + $0x3a8] sm:$0xff] %v440_v53  ;;  %443 = vst [vmem:[%s6339_s30 + $0x3b0] sm:$0xff] %v442_v54  ;;  %v450_v58 = vld [vmem:[%s6331_s26 + $0xb70] sm:$0xff]  ;;  %v452_v59 = vld [vmem:[%s6331_s26 + $0xb78] sm:$0xff] }
  0x65   : > { %445 = vst [vmem:[%s6339_s30 + $0x3b8] sm:$0xff] %v444_v55  ;;  %447 = vst [vmem:[%s6339_s30 + $0x3c0] sm:$0xff] %v446_v56  ;;  %v454_v60 = vld [vmem:[%s6331_s26 + $0xba0] sm:$0xff]  ;;  %v456_v61 = vld [vmem:[%s6331_s26 + $0xba8] sm:$0xff] }
  0x66   : > { %449 = vst [vmem:[%s6339_s30 + $0x3c8] sm:$0xff] %v448_v57  ;;  %451 = vst [vmem:[%s6339_s30 + $0x3d0] sm:$0xff] %v450_v58  ;;  %v458_v62 = vld [vmem:[%s6331_s26 + $0xbd0] sm:$0xff]  ;;  %v460_v63 = vld [vmem:[%s6331_s26 + $0xbd8] sm:$0xff] }
  0x67   : > { %453 = vst [vmem:[%s6339_s30 + $0x3d8] sm:$0xff] %v452_v59  ;;  %455 = vst [vmem:[%s6339_s30 + $0x3e0] sm:$0xff] %v454_v60  ;;  %v462_v0 = vld [vmem:[%s6331_s26 + $0xc00] sm:$0xff]  ;;  %v464_v1 = vld [vmem:[%s6331_s26 + $0xc08] sm:$0xff] }
  0x68   : > { %457 = vst [vmem:[%s6339_s30 + $0x3e8] sm:$0xff] %v456_v61  ;;  %459 = vst [vmem:[%s6339_s30 + $0x3f0] sm:$0xff] %v458_v62  ;;  %v466_v2 = vld [vmem:[%s6331_s26 + $0xc30] sm:$0xff]  ;;  %v468_v3 = vld [vmem:[%s6331_s26 + $0xc38] sm:$0xff] }
  0x69   : > { %461 = vst [vmem:[%s6339_s30 + $0x3f8] sm:$0xff] %v460_v63  ;;  %463 = vst [vmem:[%s6339_s30 + $0x400] sm:$0xff] %v462_v0  ;;  %v470_v4 = vld [vmem:[%s6331_s26 + $0xc60] sm:$0xff]  ;;  %v472_v5 = vld [vmem:[%s6331_s26 + $0xc68] sm:$0xff] }
  0x6a   : > { %465 = vst [vmem:[%s6339_s30 + $0x408] sm:$0xff] %v464_v1  ;;  %467 = vst [vmem:[%s6339_s30 + $0x410] sm:$0xff] %v466_v2  ;;  %v474_v6 = vld [vmem:[%s6331_s26 + $0xc90] sm:$0xff]  ;;  %v476_v7 = vld [vmem:[%s6331_s26 + $0xc98] sm:$0xff] }
  0x6b   : > { %469 = vst [vmem:[%s6339_s30 + $0x418] sm:$0xff] %v468_v3  ;;  %471 = vst [vmem:[%s6339_s30 + $0x420] sm:$0xff] %v470_v4  ;;  %v478_v8 = vld [vmem:[%s6331_s26 + $0xcc0] sm:$0xff]  ;;  %v480_v9 = vld [vmem:[%s6331_s26 + $0xcc8] sm:$0xff] }
  0x6c   : > { %473 = vst [vmem:[%s6339_s30 + $0x428] sm:$0xff] %v472_v5  ;;  %475 = vst [vmem:[%s6339_s30 + $0x430] sm:$0xff] %v474_v6  ;;  %v482_v10 = vld [vmem:[%s6331_s26 + $0xcf0] sm:$0xff]  ;;  %v484_v11 = vld [vmem:[%s6331_s26 + $0xcf8] sm:$0xff] }
  0x6d   : > { %477 = vst [vmem:[%s6339_s30 + $0x438] sm:$0xff] %v476_v7  ;;  %479 = vst [vmem:[%s6339_s30 + $0x440] sm:$0xff] %v478_v8  ;;  %v486_v12 = vld [vmem:[%s6331_s26 + $0xd20] sm:$0xff]  ;;  %v488_v13 = vld [vmem:[%s6331_s26 + $0xd28] sm:$0xff] }
  0x6e   : > { %481 = vst [vmem:[%s6339_s30 + $0x448] sm:$0xff] %v480_v9  ;;  %483 = vst [vmem:[%s6339_s30 + $0x450] sm:$0xff] %v482_v10  ;;  %v490_v14 = vld [vmem:[%s6331_s26 + $0xd50] sm:$0xff]  ;;  %v492_v15 = vld [vmem:[%s6331_s26 + $0xd58] sm:$0xff] }
  0x6f   : > { %485 = vst [vmem:[%s6339_s30 + $0x458] sm:$0xff] %v484_v11  ;;  %487 = vst [vmem:[%s6339_s30 + $0x460] sm:$0xff] %v486_v12 }
  0x70   : > { %489 = vst [vmem:[%s6339_s30 + $0x468] sm:$0xff] %v488_v13  ;;  %491 = vst [vmem:[%s6339_s30 + $0x470] sm:$0xff] %v490_v14 }
  0x71   : > { %493 = vst [vmem:[%s6339_s30 + $0x478] sm:$0xff] %v492_v15 }
  0x72 PF: > { %499 = sbr.rel (!%p6296_p3) target bundleno = 197 (0xc5), region = 47  ;;  %s501_s6 = sand.u32 (%p6296_p3), 1, %s6181_s19  }
  0x73   : > { %s5210_s8 = sshll.u32 (%p6296_p3), %s6193_s22, 4  ;;  %s5296_s12 = smul.u32 (%p6296_p3), 1152, %s501_s6 }
  0x74   : > { %s7575_s2 = sld [smem:[#allocation11_spill]] (%p6296_p3) }
  0x75   : > { %s6638_s5 = scalar_lea.vmem (%p6296_p3), [#allocation4], %s5296_s12 }
  0x7a   : > { %s6630_s25 = scalar_lea.vmem %s7575_s2, %s5210_s8 }
  0x7b   : > { %v519_v16 = vld [vmem:[%s6630_s25] sm:$0xff]  ;;  %v521_v17 = vld [vmem:[%s6630_s25 + $0x8] sm:$0xff]  ;;  %v523_v18 = vld [vmem:[%s6630_s25 + $0x30] sm:$0xff] }
  0x7c   : > { %v525_v19 = vld [vmem:[%s6630_s25 + $0x38] sm:$0xff]  ;;  %v527_v20 = vld [vmem:[%s6630_s25 + $0x60] sm:$0xff]  ;;  %v529_v21 = vld [vmem:[%s6630_s25 + $0x68] sm:$0xff]  ;;  %520 = vst [vmem:[%s6638_s5] sm:$0xff] %v519_v16 }
  0x7d   : > { %522 = vst [vmem:[%s6638_s5 + $0x8] sm:$0xff] %v521_v17  ;;  %524 = vst [vmem:[%s6638_s5 + $0x10] sm:$0xff] %v523_v18  ;;  %v531_v22 = vld [vmem:[%s6630_s25 + $0x90] sm:$0xff]  ;;  %v533_v23 = vld [vmem:[%s6630_s25 + $0x98] sm:$0xff] }
  0x7e   : > { %526 = vst [vmem:[%s6638_s5 + $0x18] sm:$0xff] %v525_v19  ;;  %528 = vst [vmem:[%s6638_s5 + $0x20] sm:$0xff] %v527_v20  ;;  %v535_v24 = vld [vmem:[%s6630_s25 + $0xc0] sm:$0xff]  ;;  %v537_v25 = vld [vmem:[%s6630_s25 + $0xc8] sm:$0xff] }
  0x7f   : > { %530 = vst [vmem:[%s6638_s5 + $0x28] sm:$0xff] %v529_v21  ;;  %532 = vst [vmem:[%s6638_s5 + $0x30] sm:$0xff] %v531_v22  ;;  %v539_v26 = vld [vmem:[%s6630_s25 + $0xf0] sm:$0xff]  ;;  %v541_v27 = vld [vmem:[%s6630_s25 + $0xf8] sm:$0xff] }
  0x80   : > { %534 = vst [vmem:[%s6638_s5 + $0x38] sm:$0xff] %v533_v23  ;;  %536 = vst [vmem:[%s6638_s5 + $0x40] sm:$0xff] %v535_v24  ;;  %v543_v28 = vld [vmem:[%s6630_s25 + $0x120] sm:$0xff]  ;;  %v545_v29 = vld [vmem:[%s6630_s25 + $0x128] sm:$0xff] }
  0x81   : > { %538 = vst [vmem:[%s6638_s5 + $0x48] sm:$0xff] %v537_v25  ;;  %540 = vst [vmem:[%s6638_s5 + $0x50] sm:$0xff] %v539_v26  ;;  %v547_v30 = vld [vmem:[%s6630_s25 + $0x150] sm:$0xff]  ;;  %v549_v31 = vld [vmem:[%s6630_s25 + $0x158] sm:$0xff] }
  0x82   : > { %542 = vst [vmem:[%s6638_s5 + $0x58] sm:$0xff] %v541_v27  ;;  %544 = vst [vmem:[%s6638_s5 + $0x60] sm:$0xff] %v543_v28  ;;  %v551_v32 = vld [vmem:[%s6630_s25 + $0x180] sm:$0xff]  ;;  %v553_v33 = vld [vmem:[%s6630_s25 + $0x188] sm:$0xff] }
  0x83   : > { %546 = vst [vmem:[%s6638_s5 + $0x68] sm:$0xff] %v545_v29  ;;  %548 = vst [vmem:[%s6638_s5 + $0x70] sm:$0xff] %v547_v30  ;;  %v555_v34 = vld [vmem:[%s6630_s25 + $0x1b0] sm:$0xff]  ;;  %v557_v35 = vld [vmem:[%s6630_s25 + $0x1b8] sm:$0xff] }
  0x84   : > { %550 = vst [vmem:[%s6638_s5 + $0x78] sm:$0xff] %v549_v31  ;;  %552 = vst [vmem:[%s6638_s5 + $0x80] sm:$0xff] %v551_v32  ;;  %v559_v36 = vld [vmem:[%s6630_s25 + $0x1e0] sm:$0xff]  ;;  %v561_v37 = vld [vmem:[%s6630_s25 + $0x1e8] sm:$0xff] }
  0x85   : > { %554 = vst [vmem:[%s6638_s5 + $0x88] sm:$0xff] %v553_v33  ;;  %556 = vst [vmem:[%s6638_s5 + $0x90] sm:$0xff] %v555_v34  ;;  %v563_v38 = vld [vmem:[%s6630_s25 + $0x210] sm:$0xff]  ;;  %v565_v39 = vld [vmem:[%s6630_s25 + $0x218] sm:$0xff] }
  0x86   : > { %558 = vst [vmem:[%s6638_s5 + $0x98] sm:$0xff] %v557_v35  ;;  %560 = vst [vmem:[%s6638_s5 + $0xa0] sm:$0xff] %v559_v36  ;;  %v567_v40 = vld [vmem:[%s6630_s25 + $0x240] sm:$0xff]  ;;  %v569_v41 = vld [vmem:[%s6630_s25 + $0x248] sm:$0xff] }
  0x87   : > { %562 = vst [vmem:[%s6638_s5 + $0xa8] sm:$0xff] %v561_v37  ;;  %564 = vst [vmem:[%s6638_s5 + $0xb0] sm:$0xff] %v563_v38  ;;  %v571_v42 = vld [vmem:[%s6630_s25 + $0x270] sm:$0xff]  ;;  %v573_v43 = vld [vmem:[%s6630_s25 + $0x278] sm:$0xff] }
  0x88   : > { %566 = vst [vmem:[%s6638_s5 + $0xb8] sm:$0xff] %v565_v39  ;;  %568 = vst [vmem:[%s6638_s5 + $0xc0] sm:$0xff] %v567_v40  ;;  %v575_v44 = vld [vmem:[%s6630_s25 + $0x2a0] sm:$0xff]  ;;  %v577_v45 = vld [vmem:[%s6630_s25 + $0x2a8] sm:$0xff] }
  0x89   : > { %570 = vst [vmem:[%s6638_s5 + $0xc8] sm:$0xff] %v569_v41  ;;  %572 = vst [vmem:[%s6638_s5 + $0xd0] sm:$0xff] %v571_v42  ;;  %v579_v46 = vld [vmem:[%s6630_s25 + $0x2d0] sm:$0xff]  ;;  %v581_v47 = vld [vmem:[%s6630_s25 + $0x2d8] sm:$0xff] }
  0x8a   : > { %574 = vst [vmem:[%s6638_s5 + $0xd8] sm:$0xff] %v573_v43  ;;  %576 = vst [vmem:[%s6638_s5 + $0xe0] sm:$0xff] %v575_v44  ;;  %v583_v48 = vld [vmem:[%s6630_s25 + $0x300] sm:$0xff]  ;;  %v585_v49 = vld [vmem:[%s6630_s25 + $0x308] sm:$0xff] }
  0x8b   : > { %578 = vst [vmem:[%s6638_s5 + $0xe8] sm:$0xff] %v577_v45  ;;  %580 = vst [vmem:[%s6638_s5 + $0xf0] sm:$0xff] %v579_v46  ;;  %v587_v50 = vld [vmem:[%s6630_s25 + $0x330] sm:$0xff]  ;;  %v589_v51 = vld [vmem:[%s6630_s25 + $0x338] sm:$0xff] }
  0x8c   : > { %582 = vst [vmem:[%s6638_s5 + $0xf8] sm:$0xff] %v581_v47  ;;  %584 = vst [vmem:[%s6638_s5 + $0x100] sm:$0xff] %v583_v48  ;;  %v591_v52 = vld [vmem:[%s6630_s25 + $0x360] sm:$0xff]  ;;  %v593_v53 = vld [vmem:[%s6630_s25 + $0x368] sm:$0xff] }
  0x8d   : > { %586 = vst [vmem:[%s6638_s5 + $0x108] sm:$0xff] %v585_v49  ;;  %588 = vst [vmem:[%s6638_s5 + $0x110] sm:$0xff] %v587_v50  ;;  %v595_v54 = vld [vmem:[%s6630_s25 + $0x390] sm:$0xff]  ;;  %v597_v55 = vld [vmem:[%s6630_s25 + $0x398] sm:$0xff] }
  0x8e   : > { %590 = vst [vmem:[%s6638_s5 + $0x118] sm:$0xff] %v589_v51  ;;  %592 = vst [vmem:[%s6638_s5 + $0x120] sm:$0xff] %v591_v52  ;;  %v599_v56 = vld [vmem:[%s6630_s25 + $0x3c0] sm:$0xff]  ;;  %v601_v57 = vld [vmem:[%s6630_s25 + $0x3c8] sm:$0xff] }
  0x8f   : > { %594 = vst [vmem:[%s6638_s5 + $0x128] sm:$0xff] %v593_v53  ;;  %596 = vst [vmem:[%s6638_s5 + $0x130] sm:$0xff] %v595_v54  ;;  %v603_v58 = vld [vmem:[%s6630_s25 + $0x3f0] sm:$0xff]  ;;  %v605_v59 = vld [vmem:[%s6630_s25 + $0x3f8] sm:$0xff] }
  0x90   : > { %598 = vst [vmem:[%s6638_s5 + $0x138] sm:$0xff] %v597_v55  ;;  %600 = vst [vmem:[%s6638_s5 + $0x140] sm:$0xff] %v599_v56  ;;  %v607_v60 = vld [vmem:[%s6630_s25 + $0x420] sm:$0xff]  ;;  %v609_v61 = vld [vmem:[%s6630_s25 + $0x428] sm:$0xff] }
  0x91   : > { %602 = vst [vmem:[%s6638_s5 + $0x148] sm:$0xff] %v601_v57  ;;  %604 = vst [vmem:[%s6638_s5 + $0x150] sm:$0xff] %v603_v58  ;;  %v611_v62 = vld [vmem:[%s6630_s25 + $0x450] sm:$0xff]  ;;  %v613_v63 = vld [vmem:[%s6630_s25 + $0x458] sm:$0xff] }
  0x92   : > { %606 = vst [vmem:[%s6638_s5 + $0x158] sm:$0xff] %v605_v59  ;;  %608 = vst [vmem:[%s6638_s5 + $0x160] sm:$0xff] %v607_v60  ;;  %v615_v0 = vld [vmem:[%s6630_s25 + $0x480] sm:$0xff]  ;;  %v617_v1 = vld [vmem:[%s6630_s25 + $0x488] sm:$0xff] }
  0x93   : > { %610 = vst [vmem:[%s6638_s5 + $0x168] sm:$0xff] %v609_v61  ;;  %612 = vst [vmem:[%s6638_s5 + $0x170] sm:$0xff] %v611_v62  ;;  %v619_v2 = vld [vmem:[%s6630_s25 + $0x4b0] sm:$0xff]  ;;  %v621_v3 = vld [vmem:[%s6630_s25 + $0x4b8] sm:$0xff] }
  0x94   : > { %614 = vst [vmem:[%s6638_s5 + $0x178] sm:$0xff] %v613_v63  ;;  %616 = vst [vmem:[%s6638_s5 + $0x180] sm:$0xff] %v615_v0  ;;  %v623_v4 = vld [vmem:[%s6630_s25 + $0x4e0] sm:$0xff]  ;;  %v625_v5 = vld [vmem:[%s6630_s25 + $0x4e8] sm:$0xff] }
  0x95   : > { %618 = vst [vmem:[%s6638_s5 + $0x188] sm:$0xff] %v617_v1  ;;  %620 = vst [vmem:[%s6638_s5 + $0x190] sm:$0xff] %v619_v2  ;;  %v627_v6 = vld [vmem:[%s6630_s25 + $0x510] sm:$0xff]  ;;  %v629_v7 = vld [vmem:[%s6630_s25 + $0x518] sm:$0xff] }
  0x96   : > { %622 = vst [vmem:[%s6638_s5 + $0x198] sm:$0xff] %v621_v3  ;;  %624 = vst [vmem:[%s6638_s5 + $0x1a0] sm:$0xff] %v623_v4  ;;  %v631_v8 = vld [vmem:[%s6630_s25 + $0x540] sm:$0xff]  ;;  %v633_v9 = vld [vmem:[%s6630_s25 + $0x548] sm:$0xff] }
  0x97   : > { %626 = vst [vmem:[%s6638_s5 + $0x1a8] sm:$0xff] %v625_v5  ;;  %628 = vst [vmem:[%s6638_s5 + $0x1b0] sm:$0xff] %v627_v6  ;;  %v635_v10 = vld [vmem:[%s6630_s25 + $0x570] sm:$0xff]  ;;  %v637_v11 = vld [vmem:[%s6630_s25 + $0x578] sm:$0xff] }
  0x98   : > { %630 = vst [vmem:[%s6638_s5 + $0x1b8] sm:$0xff] %v629_v7  ;;  %632 = vst [vmem:[%s6638_s5 + $0x1c0] sm:$0xff] %v631_v8  ;;  %v639_v12 = vld [vmem:[%s6630_s25 + $0x5a0] sm:$0xff]  ;;  %v641_v13 = vld [vmem:[%s6630_s25 + $0x5a8] sm:$0xff] }
  0x99   : > { %634 = vst [vmem:[%s6638_s5 + $0x1c8] sm:$0xff] %v633_v9  ;;  %636 = vst [vmem:[%s6638_s5 + $0x1d0] sm:$0xff] %v635_v10  ;;  %v643_v14 = vld [vmem:[%s6630_s25 + $0x5d0] sm:$0xff]  ;;  %v645_v15 = vld [vmem:[%s6630_s25 + $0x5d8] sm:$0xff] }
  0x9a   : > { %638 = vst [vmem:[%s6638_s5 + $0x1d8] sm:$0xff] %v637_v11  ;;  %640 = vst [vmem:[%s6638_s5 + $0x1e0] sm:$0xff] %v639_v12  ;;  %v647_v16 = vld [vmem:[%s6630_s25 + $0x600] sm:$0xff]  ;;  %v649_v17 = vld [vmem:[%s6630_s25 + $0x608] sm:$0xff] }
  0x9b   : > { %642 = vst [vmem:[%s6638_s5 + $0x1e8] sm:$0xff] %v641_v13  ;;  %644 = vst [vmem:[%s6638_s5 + $0x1f0] sm:$0xff] %v643_v14  ;;  %v651_v18 = vld [vmem:[%s6630_s25 + $0x630] sm:$0xff]  ;;  %v653_v19 = vld [vmem:[%s6630_s25 + $0x638] sm:$0xff] }
  0x9c   : > { %646 = vst [vmem:[%s6638_s5 + $0x1f8] sm:$0xff] %v645_v15  ;;  %648 = vst [vmem:[%s6638_s5 + $0x200] sm:$0xff] %v647_v16  ;;  %v655_v20 = vld [vmem:[%s6630_s25 + $0x660] sm:$0xff]  ;;  %v657_v21 = vld [vmem:[%s6630_s25 + $0x668] sm:$0xff] }
  0x9d   : > { %650 = vst [vmem:[%s6638_s5 + $0x208] sm:$0xff] %v649_v17  ;;  %652 = vst [vmem:[%s6638_s5 + $0x210] sm:$0xff] %v651_v18  ;;  %v659_v22 = vld [vmem:[%s6630_s25 + $0x690] sm:$0xff]  ;;  %v661_v23 = vld [vmem:[%s6630_s25 + $0x698] sm:$0xff] }
  0x9e   : > { %654 = vst [vmem:[%s6638_s5 + $0x218] sm:$0xff] %v653_v19  ;;  %656 = vst [vmem:[%s6638_s5 + $0x220] sm:$0xff] %v655_v20  ;;  %v663_v24 = vld [vmem:[%s6630_s25 + $0x6c0] sm:$0xff]  ;;  %v665_v25 = vld [vmem:[%s6630_s25 + $0x6c8] sm:$0xff] }
  0x9f   : > { %658 = vst [vmem:[%s6638_s5 + $0x228] sm:$0xff] %v657_v21  ;;  %660 = vst [vmem:[%s6638_s5 + $0x230] sm:$0xff] %v659_v22  ;;  %v667_v26 = vld [vmem:[%s6630_s25 + $0x6f0] sm:$0xff]  ;;  %v669_v27 = vld [vmem:[%s6630_s25 + $0x6f8] sm:$0xff] }
  0xa0   : > { %662 = vst [vmem:[%s6638_s5 + $0x238] sm:$0xff] %v661_v23  ;;  %664 = vst [vmem:[%s6638_s5 + $0x240] sm:$0xff] %v663_v24  ;;  %v671_v28 = vld [vmem:[%s6630_s25 + $0x720] sm:$0xff]  ;;  %v673_v29 = vld [vmem:[%s6630_s25 + $0x728] sm:$0xff] }
  0xa1   : > { %666 = vst [vmem:[%s6638_s5 + $0x248] sm:$0xff] %v665_v25  ;;  %668 = vst [vmem:[%s6638_s5 + $0x250] sm:$0xff] %v667_v26  ;;  %v675_v30 = vld [vmem:[%s6630_s25 + $0x750] sm:$0xff]  ;;  %v677_v31 = vld [vmem:[%s6630_s25 + $0x758] sm:$0xff] }
  0xa2   : > { %670 = vst [vmem:[%s6638_s5 + $0x258] sm:$0xff] %v669_v27  ;;  %672 = vst [vmem:[%s6638_s5 + $0x260] sm:$0xff] %v671_v28  ;;  %v679_v32 = vld [vmem:[%s6630_s25 + $0x780] sm:$0xff]  ;;  %v681_v33 = vld [vmem:[%s6630_s25 + $0x788] sm:$0xff] }
  0xa3   : > { %674 = vst [vmem:[%s6638_s5 + $0x268] sm:$0xff] %v673_v29  ;;  %676 = vst [vmem:[%s6638_s5 + $0x270] sm:$0xff] %v675_v30  ;;  %v683_v34 = vld [vmem:[%s6630_s25 + $0x7b0] sm:$0xff]  ;;  %v685_v35 = vld [vmem:[%s6630_s25 + $0x7b8] sm:$0xff] }
  0xa4   : > { %678 = vst [vmem:[%s6638_s5 + $0x278] sm:$0xff] %v677_v31  ;;  %680 = vst [vmem:[%s6638_s5 + $0x280] sm:$0xff] %v679_v32  ;;  %v687_v36 = vld [vmem:[%s6630_s25 + $0x7e0] sm:$0xff]  ;;  %v689_v37 = vld [vmem:[%s6630_s25 + $0x7e8] sm:$0xff] }
  0xa5   : > { %682 = vst [vmem:[%s6638_s5 + $0x288] sm:$0xff] %v681_v33  ;;  %684 = vst [vmem:[%s6638_s5 + $0x290] sm:$0xff] %v683_v34  ;;  %v691_v38 = vld [vmem:[%s6630_s25 + $0x810] sm:$0xff]  ;;  %v693_v39 = vld [vmem:[%s6630_s25 + $0x818] sm:$0xff] }
  0xa6   : > { %686 = vst [vmem:[%s6638_s5 + $0x298] sm:$0xff] %v685_v35  ;;  %688 = vst [vmem:[%s6638_s5 + $0x2a0] sm:$0xff] %v687_v36  ;;  %v695_v40 = vld [vmem:[%s6630_s25 + $0x840] sm:$0xff]  ;;  %v697_v41 = vld [vmem:[%s6630_s25 + $0x848] sm:$0xff] }
  0xa7   : > { %690 = vst [vmem:[%s6638_s5 + $0x2a8] sm:$0xff] %v689_v37  ;;  %692 = vst [vmem:[%s6638_s5 + $0x2b0] sm:$0xff] %v691_v38  ;;  %v699_v42 = vld [vmem:[%s6630_s25 + $0x870] sm:$0xff]  ;;  %v701_v43 = vld [vmem:[%s6630_s25 + $0x878] sm:$0xff] }
  0xa8   : > { %694 = vst [vmem:[%s6638_s5 + $0x2b8] sm:$0xff] %v693_v39  ;;  %696 = vst [vmem:[%s6638_s5 + $0x2c0] sm:$0xff] %v695_v40  ;;  %v703_v44 = vld [vmem:[%s6630_s25 + $0x8a0] sm:$0xff]  ;;  %v705_v45 = vld [vmem:[%s6630_s25 + $0x8a8] sm:$0xff] }
  0xa9   : > { %698 = vst [vmem:[%s6638_s5 + $0x2c8] sm:$0xff] %v697_v41  ;;  %700 = vst [vmem:[%s6638_s5 + $0x2d0] sm:$0xff] %v699_v42  ;;  %v707_v46 = vld [vmem:[%s6630_s25 + $0x8d0] sm:$0xff]  ;;  %v709_v47 = vld [vmem:[%s6630_s25 + $0x8d8] sm:$0xff] }
  0xaa   : > { %702 = vst [vmem:[%s6638_s5 + $0x2d8] sm:$0xff] %v701_v43  ;;  %704 = vst [vmem:[%s6638_s5 + $0x2e0] sm:$0xff] %v703_v44  ;;  %v711_v48 = vld [vmem:[%s6630_s25 + $0x900] sm:$0xff]  ;;  %v713_v49 = vld [vmem:[%s6630_s25 + $0x908] sm:$0xff] }
  0xab   : > { %706 = vst [vmem:[%s6638_s5 + $0x2e8] sm:$0xff] %v705_v45  ;;  %708 = vst [vmem:[%s6638_s5 + $0x2f0] sm:$0xff] %v707_v46  ;;  %v715_v50 = vld [vmem:[%s6630_s25 + $0x930] sm:$0xff]  ;;  %v717_v51 = vld [vmem:[%s6630_s25 + $0x938] sm:$0xff] }
  0xac   : > { %710 = vst [vmem:[%s6638_s5 + $0x2f8] sm:$0xff] %v709_v47  ;;  %712 = vst [vmem:[%s6638_s5 + $0x300] sm:$0xff] %v711_v48  ;;  %v719_v52 = vld [vmem:[%s6630_s25 + $0x960] sm:$0xff]  ;;  %v721_v53 = vld [vmem:[%s6630_s25 + $0x968] sm:$0xff] }
  0xad   : > { %714 = vst [vmem:[%s6638_s5 + $0x308] sm:$0xff] %v713_v49  ;;  %716 = vst [vmem:[%s6638_s5 + $0x310] sm:$0xff] %v715_v50  ;;  %v723_v54 = vld [vmem:[%s6630_s25 + $0x990] sm:$0xff]  ;;  %v725_v55 = vld [vmem:[%s6630_s25 + $0x998] sm:$0xff] }
  0xae   : > { %718 = vst [vmem:[%s6638_s5 + $0x318] sm:$0xff] %v717_v51  ;;  %720 = vst [vmem:[%s6638_s5 + $0x320] sm:$0xff] %v719_v52  ;;  %v727_v56 = vld [vmem:[%s6630_s25 + $0x9c0] sm:$0xff]  ;;  %v729_v57 = vld [vmem:[%s6630_s25 + $0x9c8] sm:$0xff] }
  0xaf   : > { %722 = vst [vmem:[%s6638_s5 + $0x328] sm:$0xff] %v721_v53  ;;  %724 = vst [vmem:[%s6638_s5 + $0x330] sm:$0xff] %v723_v54  ;;  %v731_v58 = vld [vmem:[%s6630_s25 + $0x9f0] sm:$0xff]  ;;  %v733_v59 = vld [vmem:[%s6630_s25 + $0x9f8] sm:$0xff] }
  0xb0   : > { %726 = vst [vmem:[%s6638_s5 + $0x338] sm:$0xff] %v725_v55  ;;  %728 = vst [vmem:[%s6638_s5 + $0x340] sm:$0xff] %v727_v56  ;;  %v735_v60 = vld [vmem:[%s6630_s25 + $0xa20] sm:$0xff]  ;;  %v737_v61 = vld [vmem:[%s6630_s25 + $0xa28] sm:$0xff] }
  0xb1   : > { %730 = vst [vmem:[%s6638_s5 + $0x348] sm:$0xff] %v729_v57  ;;  %732 = vst [vmem:[%s6638_s5 + $0x350] sm:$0xff] %v731_v58  ;;  %v739_v62 = vld [vmem:[%s6630_s25 + $0xa50] sm:$0xff]  ;;  %v741_v63 = vld [vmem:[%s6630_s25 + $0xa58] sm:$0xff] }
  0xb2   : > { %734 = vst [vmem:[%s6638_s5 + $0x358] sm:$0xff] %v733_v59  ;;  %736 = vst [vmem:[%s6638_s5 + $0x360] sm:$0xff] %v735_v60  ;;  %v743_v0 = vld [vmem:[%s6630_s25 + $0xa80] sm:$0xff]  ;;  %v745_v1 = vld [vmem:[%s6630_s25 + $0xa88] sm:$0xff] }
  0xb3   : > { %738 = vst [vmem:[%s6638_s5 + $0x368] sm:$0xff] %v737_v61  ;;  %740 = vst [vmem:[%s6638_s5 + $0x370] sm:$0xff] %v739_v62  ;;  %v747_v2 = vld [vmem:[%s6630_s25 + $0xab0] sm:$0xff]  ;;  %v749_v3 = vld [vmem:[%s6630_s25 + $0xab8] sm:$0xff] }
  0xb4   : > { %742 = vst [vmem:[%s6638_s5 + $0x378] sm:$0xff] %v741_v63  ;;  %744 = vst [vmem:[%s6638_s5 + $0x380] sm:$0xff] %v743_v0  ;;  %v751_v4 = vld [vmem:[%s6630_s25 + $0xae0] sm:$0xff]  ;;  %v753_v5 = vld [vmem:[%s6630_s25 + $0xae8] sm:$0xff] }
  0xb5   : > { %746 = vst [vmem:[%s6638_s5 + $0x388] sm:$0xff] %v745_v1  ;;  %748 = vst [vmem:[%s6638_s5 + $0x390] sm:$0xff] %v747_v2  ;;  %v755_v6 = vld [vmem:[%s6630_s25 + $0xb10] sm:$0xff]  ;;  %v757_v7 = vld [vmem:[%s6630_s25 + $0xb18] sm:$0xff] }
  0xb6   : > { %750 = vst [vmem:[%s6638_s5 + $0x398] sm:$0xff] %v749_v3  ;;  %752 = vst [vmem:[%s6638_s5 + $0x3a0] sm:$0xff] %v751_v4  ;;  %v759_v8 = vld [vmem:[%s6630_s25 + $0xb40] sm:$0xff]  ;;  %v761_v9 = vld [vmem:[%s6630_s25 + $0xb48] sm:$0xff] }
  0xb7   : > { %754 = vst [vmem:[%s6638_s5 + $0x3a8] sm:$0xff] %v753_v5  ;;  %756 = vst [vmem:[%s6638_s5 + $0x3b0] sm:$0xff] %v755_v6  ;;  %v763_v10 = vld [vmem:[%s6630_s25 + $0xb70] sm:$0xff]  ;;  %v765_v11 = vld [vmem:[%s6630_s25 + $0xb78] sm:$0xff] }
  0xb8   : > { %758 = vst [vmem:[%s6638_s5 + $0x3b8] sm:$0xff] %v757_v7  ;;  %760 = vst [vmem:[%s6638_s5 + $0x3c0] sm:$0xff] %v759_v8  ;;  %v767_v12 = vld [vmem:[%s6630_s25 + $0xba0] sm:$0xff]  ;;  %v769_v13 = vld [vmem:[%s6630_s25 + $0xba8] sm:$0xff] }
  0xb9   : > { %762 = vst [vmem:[%s6638_s5 + $0x3c8] sm:$0xff] %v761_v9  ;;  %764 = vst [vmem:[%s6638_s5 + $0x3d0] sm:$0xff] %v763_v10  ;;  %v771_v14 = vld [vmem:[%s6630_s25 + $0xbd0] sm:$0xff]  ;;  %v773_v15 = vld [vmem:[%s6630_s25 + $0xbd8] sm:$0xff] }
  0xba   : > { %766 = vst [vmem:[%s6638_s5 + $0x3d8] sm:$0xff] %v765_v11  ;;  %768 = vst [vmem:[%s6638_s5 + $0x3e0] sm:$0xff] %v767_v12  ;;  %v775_v16 = vld [vmem:[%s6630_s25 + $0xc00] sm:$0xff]  ;;  %v777_v17 = vld [vmem:[%s6630_s25 + $0xc08] sm:$0xff] }
  0xbb   : > { %770 = vst [vmem:[%s6638_s5 + $0x3e8] sm:$0xff] %v769_v13  ;;  %772 = vst [vmem:[%s6638_s5 + $0x3f0] sm:$0xff] %v771_v14  ;;  %v779_v18 = vld [vmem:[%s6630_s25 + $0xc30] sm:$0xff]  ;;  %v781_v19 = vld [vmem:[%s6630_s25 + $0xc38] sm:$0xff] }
  0xbc   : > { %774 = vst [vmem:[%s6638_s5 + $0x3f8] sm:$0xff] %v773_v15  ;;  %776 = vst [vmem:[%s6638_s5 + $0x400] sm:$0xff] %v775_v16  ;;  %v783_v20 = vld [vmem:[%s6630_s25 + $0xc60] sm:$0xff]  ;;  %v785_v21 = vld [vmem:[%s6630_s25 + $0xc68] sm:$0xff] }
  0xbd   : > { %778 = vst [vmem:[%s6638_s5 + $0x408] sm:$0xff] %v777_v17  ;;  %780 = vst [vmem:[%s6638_s5 + $0x410] sm:$0xff] %v779_v18  ;;  %v787_v22 = vld [vmem:[%s6630_s25 + $0xc90] sm:$0xff]  ;;  %v789_v23 = vld [vmem:[%s6630_s25 + $0xc98] sm:$0xff] }
  0xbe   : > { %782 = vst [vmem:[%s6638_s5 + $0x418] sm:$0xff] %v781_v19  ;;  %784 = vst [vmem:[%s6638_s5 + $0x420] sm:$0xff] %v783_v20  ;;  %v791_v24 = vld [vmem:[%s6630_s25 + $0xcc0] sm:$0xff]  ;;  %v793_v25 = vld [vmem:[%s6630_s25 + $0xcc8] sm:$0xff] }
  0xbf   : > { %786 = vst [vmem:[%s6638_s5 + $0x428] sm:$0xff] %v785_v21  ;;  %788 = vst [vmem:[%s6638_s5 + $0x430] sm:$0xff] %v787_v22  ;;  %v795_v26 = vld [vmem:[%s6630_s25 + $0xcf0] sm:$0xff]  ;;  %v797_v27 = vld [vmem:[%s6630_s25 + $0xcf8] sm:$0xff] }
  0xc0   : > { %790 = vst [vmem:[%s6638_s5 + $0x438] sm:$0xff] %v789_v23  ;;  %792 = vst [vmem:[%s6638_s5 + $0x440] sm:$0xff] %v791_v24  ;;  %v799_v28 = vld [vmem:[%s6630_s25 + $0xd20] sm:$0xff]  ;;  %v801_v29 = vld [vmem:[%s6630_s25 + $0xd28] sm:$0xff] }
  0xc1   : > { %794 = vst [vmem:[%s6638_s5 + $0x448] sm:$0xff] %v793_v25  ;;  %796 = vst [vmem:[%s6638_s5 + $0x450] sm:$0xff] %v795_v26  ;;  %v803_v30 = vld [vmem:[%s6630_s25 + $0xd50] sm:$0xff]  ;;  %v805_v31 = vld [vmem:[%s6630_s25 + $0xd58] sm:$0xff] }
  0xc2   : > { %798 = vst [vmem:[%s6638_s5 + $0x458] sm:$0xff] %v797_v27  ;;  %800 = vst [vmem:[%s6638_s5 + $0x460] sm:$0xff] %v799_v28 }
  0xc3   : > { %802 = vst [vmem:[%s6638_s5 + $0x468] sm:$0xff] %v801_v29  ;;  %804 = vst [vmem:[%s6638_s5 + $0x470] sm:$0xff] %v803_v30 }
  0xc4   : > { %806 = vst [vmem:[%s6638_s5 + $0x478] sm:$0xff] %v805_v31 }
  0xc5 PF: > { %p4732_p0 = scmp.ge.s32.totalorder %s6201_s24, 1  ;;  %p821_p1 = scmp.lt.s32.totalorder %s6201_s24, 7 }
  0xc7   : > { %p822_p2 = pnand %p4732_p0, %p821_p1 }
  0xc8   : > { %s828_s29 = sand.u32 (!%p822_p2), 1, %s6177_s18   ;;  %s7565_s26 = sand.u32 (!%p822_p2), 1, %s6169_s16  }
  0xc9   : > { %825 = sbr.rel (%p822_p2) target bundleno = 1080 (0x438), region = 74  ;;  %s4733_s6 = sshll.u32 (!%p822_p2), %s6189_s21, 1 }
  0xca   : > { %s5297_s30 = smul.u32 (!%p822_p2), 1152, %s828_s29  ;;  %p877_p3 = scmp.lt.s32.totalorder (!%p822_p2), %s4733_s6, 3 }
  0xcb   : > { %s5298_s8 = smul.u32 (!%p822_p2), 80, %s7565_s26  ;;  %s4735_s12 = sshll.u32 (!%p822_p2), %s6185_s20, 6 }
  0xcc   : > { %p886_p4 = scmp.lt.s32.totalorder (!%p822_p2), %s4735_s12, 191  ;;  %s6940_s29 = scalar_lea.vmem (!%p822_p2), [#allocation3], %s5297_s30 }
  0xcd   : > { %s6942_s26 = scalar_lea.vmem (!%p822_p2), [#allocation4], %s5297_s30  ;;  %s6944_s27 = scalar_lea.vmem (!%p822_p2), [#allocation5], %s5298_s8 }
  0xce   : > { %p4737_p5 = scmp.ne.s32.totalorder (!%p822_p2), %s6185_s20, 0 }
  0xd0   : > { %s7595_s6 = smov (!%p877_p3, %s4733_s6), 3  ;;  %s7597_s12 = smov (!%p886_p4, %s4735_s12), 191 }
  0xd1   : > { %s5299_s13 = smul.u32 20, %s7595_s6  ;;  %vm902_vm0 = vcmask (!%p4737_p5), 523264   ;;  %v6203_v32 = vmov (!%p4737_p5), 0.0  }
  0xd2   : > { %s5300_s1 = smul.u32 20, %s7597_s12  ;;  %898 = vst [vmem:[#allocation2] sm:$0xff] (!%p4737_p5), %v6203_v32  ;;  %899 = vst [vmem:[#allocation2 + $0x8] sm:$0xff] (!%p4737_p5), %v6203_v32 }
  0xd3   : > { %s6933_s5 = scalar_lea.vmem %s7559_s0, %s5299_s13  ;;  %897 = sbr.rel (%p4737_p5) target bundleno = 218 (0xda), region = 86  ;;  %900 = vst [vmem:[#allocation2 + $0x10] sm:$0xff] (!%p4737_p5), %v6203_v32  ;;  %901 = vst [vmem:[#allocation2 + $0x18] sm:$0xff] (!%p4737_p5), %v6203_v32 }
  0xd4   : > { %s6938_s18 = scalar_lea.vmem %s7562_s3, %s5300_s1  ;;  %904 = vst [vmem:[#allocation2 + $0x28] sm:$0xff] (!%p4737_p5), %v6203_v32  ;;  %905 = vst [vmem:[#allocation2 + $0x30] sm:$0xff] (!%p4737_p5), %v6203_v32 }
  0xd5   : > { %906 = vst [vmem:[#allocation2 + $0x38] sm:$0xff] (!%p4737_p5), %v6203_v32  ;;  %907 = vst [vmem:[#allocation2 + $0x40] sm:$0xff] (!%p4737_p5), %v6203_v32 }
  0xd6   : > { %903 = vst.msk [vmem:[#allocation2 + $0x20] sm:$0xff] (!%p4737_p5), %vm902_vm0, %v6203_v32  ;;  %908 = vst.msk [vmem:[#allocation2 + $0x48] sm:$0xff] (!%p4737_p5), %vm902_vm0, %v6203_v32 }
  0xda PF: > { %v5393_v33 = vld [vmem:[%s6940_s29 + $0x4] ss:$16 sps:$4 sm:$0xff]   ;;  %v5395_v34 = vld [vmem:[%s6940_s29 + $0xc] ss:$16 sps:$4 sm:$0xff]   ;;  %v5397_v35 = vld [vmem:[%s6940_s29] ss:$16 sps:$4 sm:$0xff]  }
  0xdb   : > { %1808 = vmatprep.subr.bf16.mxu0 %v5393_v33  ;;  %v5398_v36 = vld [vmem:[%s6940_s29 + $0x8] ss:$16 sps:$4 sm:$0xff]   ;;  %1937 = vmatprep.subr.bf16.mxu1 %v5395_v34  ;;  %v5399_v37 = vld [vmem:[%s6940_s29 + $0x24] ss:$16 sps:$4 sm:$0xff]   ;;  %v5401_v38 = vld [vmem:[%s6940_s29 + $0x2c] ss:$16 sps:$4 sm:$0xff]  }
  0xdc   : > { %1809 = vmatpush1.bf16.msra.mxu0 %v5397_v35  ;;  %1938 = vmatpush1.bf16.msra.mxu1 %v5398_v36  ;;  %v5403_v39 = vld [vmem:[%s6940_s29 + $0x20] ss:$16 sps:$4 sm:$0xff]   ;;  %v5404_v40 = vld [vmem:[%s6940_s29 + $0x28] ss:$16 sps:$4 sm:$0xff]   ;;  %v5405_v41 = vld [vmem:[%s6940_s29 + $0x44] ss:$16 sps:$4 sm:$0xff]  }
  0xdd   : > { %1810 = vmatprep.subr.bf16.mxu0 %v5399_v37  ;;  %1939 = vmatprep.subr.bf16.mxu1 %v5401_v38  ;;  %v5407_v42 = vld [vmem:[%s6940_s29 + $0x4c] ss:$16 sps:$4 sm:$0xff]   ;;  %v5409_v43 = vld [vmem:[%s6940_s29 + $0x40] ss:$16 sps:$4 sm:$0xff]   ;;  %v5410_v44 = vld [vmem:[%s6940_s29 + $0x48] ss:$16 sps:$4 sm:$0xff]  }
  0xde   : > { %v5411_v45 = vld [vmem:[%s6940_s29 + $0x64] ss:$16 sps:$4 sm:$0xff]   ;;  %v5413_v46 = vld [vmem:[%s6940_s29 + $0x6c] ss:$16 sps:$4 sm:$0xff]   ;;  %v5415_v47 = vld [vmem:[%s6940_s29 + $0x60] ss:$16 sps:$4 sm:$0xff]  }
  0xdf   : > { %v5416_v48 = vld [vmem:[%s6940_s29 + $0x68] ss:$16 sps:$4 sm:$0xff]   ;;  %v5417_v49 = vld [vmem:[%s6940_s29 + $0x84] ss:$16 sps:$4 sm:$0xff]   ;;  %v5419_v50 = vld [vmem:[%s6940_s29 + $0x8c] ss:$16 sps:$4 sm:$0xff]  }
  0xe0   : > { %1811 = vmatpush1.bf16.msra.mxu0 %v5403_v39  ;;  %1940 = vmatpush1.bf16.msra.mxu1 %v5404_v40  ;;  %v5421_v51 = vld [vmem:[%s6940_s29 + $0x80] ss:$16 sps:$4 sm:$0xff]   ;;  %v5422_v52 = vld [vmem:[%s6940_s29 + $0x88] ss:$16 sps:$4 sm:$0xff]   ;;  %v5423_v53 = vld [vmem:[%s6940_s29 + $0xa4] ss:$16 sps:$4 sm:$0xff]  }
  0xe1   : > { %1812 = vmatprep.subr.bf16.mxu0 %v5405_v41  ;;  %1941 = vmatprep.subr.bf16.mxu1 %v5407_v42  ;;  %v5425_v54 = vld [vmem:[%s6940_s29 + $0xac] ss:$16 sps:$4 sm:$0xff]   ;;  %v5427_v55 = vld [vmem:[%s6940_s29 + $0xa0] ss:$16 sps:$4 sm:$0xff]   ;;  %v5428_v56 = vld [vmem:[%s6940_s29 + $0xa8] ss:$16 sps:$4 sm:$0xff]  }
  0xe2   : > { %v5429_v57 = vld [vmem:[%s6940_s29 + $0xc4] ss:$16 sps:$4 sm:$0xff]   ;;  %v5431_v58 = vld [vmem:[%s6940_s29 + $0xcc] ss:$16 sps:$4 sm:$0xff]   ;;  %v5433_v59 = vld [vmem:[%s6940_s29 + $0xc0] ss:$16 sps:$4 sm:$0xff]  }
  0xe3   : > { %v5434_v60 = vld [vmem:[%s6940_s29 + $0xc8] ss:$16 sps:$4 sm:$0xff]   ;;  %v5435_v61 = vld [vmem:[%s6940_s29 + $0xe4] ss:$16 sps:$4 sm:$0xff]   ;;  %v5437_v62 = vld [vmem:[%s6940_s29 + $0xec] ss:$16 sps:$4 sm:$0xff]  }
  0xe4   : > { %1813 = vmatpush1.bf16.msra.mxu0 %v5409_v43  ;;  %1942 = vmatpush1.bf16.msra.mxu1 %v5410_v44  ;;  %v5439_v63 = vld [vmem:[%s6940_s29 + $0xe0] ss:$16 sps:$4 sm:$0xff]   ;;  %v5440_v0 = vld [vmem:[%s6940_s29 + $0xe8] ss:$16 sps:$4 sm:$0xff]   ;;  %v5441_v1 = vld [vmem:[%s6940_s29 + $0x104] ss:$16 sps:$4 sm:$0xff]  }
  0xe5   : > { %1814 = vmatprep.subr.bf16.mxu0 %v5411_v45  ;;  %1943 = vmatprep.subr.bf16.mxu1 %v5413_v46  ;;  %v5443_v2 = vld [vmem:[%s6940_s29 + $0x10c] ss:$16 sps:$4 sm:$0xff]   ;;  %v5445_v3 = vld [vmem:[%s6940_s29 + $0x100] ss:$16 sps:$4 sm:$0xff]   ;;  %v5446_v4 = vld [vmem:[%s6940_s29 + $0x108] ss:$16 sps:$4 sm:$0xff]  }
  0xe6   : > { %v5447_v5 = vld [vmem:[%s6940_s29 + $0x124] ss:$16 sps:$4 sm:$0xff]   ;;  %v5449_v6 = vld [vmem:[%s6940_s29 + $0x12c] ss:$16 sps:$4 sm:$0xff]   ;;  %v5451_v7 = vld [vmem:[%s6940_s29 + $0x120] ss:$16 sps:$4 sm:$0xff]  }
  0xe7   : > { %v5452_v8 = vld [vmem:[%s6940_s29 + $0x128] ss:$16 sps:$4 sm:$0xff]   ;;  %v5453_v9 = vld [vmem:[%s6940_s29 + $0x144] ss:$16 sps:$4 sm:$0xff]   ;;  %v5455_v10 = vld [vmem:[%s6940_s29 + $0x14c] ss:$16 sps:$4 sm:$0xff]  }
  0xe8   : > { %1815 = vmatpush1.bf16.msra.mxu0 %v5415_v47  ;;  %1944 = vmatpush1.bf16.msra.mxu1 %v5416_v48  ;;  %v5457_v11 = vld [vmem:[%s6940_s29 + $0x140] ss:$16 sps:$4 sm:$0xff]   ;;  %v5458_v12 = vld [vmem:[%s6940_s29 + $0x148] ss:$16 sps:$4 sm:$0xff]   ;;  %v5459_v13 = vld [vmem:[%s6940_s29 + $0x164] ss:$16 sps:$4 sm:$0xff]  }
  0xe9   : > { %1816 = vmatprep.subr.bf16.mxu0 %v5417_v49  ;;  %1945 = vmatprep.subr.bf16.mxu1 %v5419_v50  ;;  %v5461_v14 = vld [vmem:[%s6940_s29 + $0x16c] ss:$16 sps:$4 sm:$0xff]   ;;  %v5463_v15 = vld [vmem:[%s6940_s29 + $0x160] ss:$16 sps:$4 sm:$0xff]   ;;  %v6995_v16 = vld [vmem:[%s6933_s5 + $0x4] ss:$20 sps:$4 sm:$0xff]  }
  0xea   : > { %v5464_v17 = vld [vmem:[%s6940_s29 + $0x168] ss:$16 sps:$4 sm:$0xff]   ;;  %v5465_v18 = vld [vmem:[%s6940_s29 + $0x184] ss:$16 sps:$4 sm:$0xff]   ;;  %v5467_v19 = vld [vmem:[%s6940_s29 + $0x18c] ss:$16 sps:$4 sm:$0xff]   ;;  %1840 = vmatprep.mubr.bf16.mxu0 %v6995_v16  ;;  %1969 = vmatprep.mubr.bf16.mxu1 %v6995_v16 }
  0xeb   : > { %v5469_v20 = vld [vmem:[%s6940_s29 + $0x180] ss:$16 sps:$4 sm:$0xff]   ;;  %v5470_v21 = vld [vmem:[%s6940_s29 + $0x188] ss:$16 sps:$4 sm:$0xff]   ;;  %v5471_v22 = vld [vmem:[%s6940_s29 + $0x1a4] ss:$16 sps:$4 sm:$0xff]  }
  0xec   : > { %1817 = vmatpush1.bf16.msra.mxu0 %v5421_v51  ;;  %1946 = vmatpush1.bf16.msra.mxu1 %v5422_v52  ;;  %v5473_v23 = vld [vmem:[%s6940_s29 + $0x1ac] ss:$16 sps:$4 sm:$0xff]   ;;  %v5475_v24 = vld [vmem:[%s6940_s29 + $0x1a0] ss:$16 sps:$4 sm:$0xff]   ;;  %v5476_v25 = vld [vmem:[%s6940_s29 + $0x1a8] ss:$16 sps:$4 sm:$0xff]  }
  0xed   : > { %1818 = vmatprep.subr.bf16.mxu0 %v5423_v53  ;;  %1947 = vmatprep.subr.bf16.mxu1 %v5425_v54  ;;  %v5477_v26 = vld [vmem:[%s6940_s29 + $0x1c4] ss:$16 sps:$4 sm:$0xff]   ;;  %v5479_v27 = vld [vmem:[%s6940_s29 + $0x1cc] ss:$16 sps:$4 sm:$0xff]   ;;  %v5481_v28 = vld [vmem:[%s6940_s29 + $0x1c0] ss:$16 sps:$4 sm:$0xff]  }
  0xee   : > { %v5482_v29 = vld [vmem:[%s6940_s29 + $0x1c8] ss:$16 sps:$4 sm:$0xff]   ;;  %v5483_v30 = vld [vmem:[%s6940_s29 + $0x1e4] ss:$16 sps:$4 sm:$0xff]   ;;  %v5485_v31 = vld [vmem:[%s6940_s29 + $0x1ec] ss:$16 sps:$4 sm:$0xff]  }
  0xef   : > { %v5487_v32 = vld [vmem:[%s6940_s29 + $0x1e0] ss:$16 sps:$4 sm:$0xff]   ;;  %v5488_v33 = vld [vmem:[%s6940_s29 + $0x1e8] ss:$16 sps:$4 sm:$0xff]   ;;  %v5493_v34 = vld [vmem:[%s6940_s29 + $0x204] ss:$16 sps:$4 sm:$0xff]  }
  0xf0   : > { %1819 = vmatpush1.bf16.msra.mxu0 %v5427_v55  ;;  %1948 = vmatpush1.bf16.msra.mxu1 %v5428_v56  ;;  %v5496_v35 = vld [vmem:[%s6940_s29 + $0x20c] ss:$16 sps:$4 sm:$0xff]   ;;  %v5491_v36 = vld [vmem:[%s6940_s29 + $0x200] ss:$16 sps:$4 sm:$0xff]   ;;  %v5494_v37 = vld [vmem:[%s6940_s29 + $0x208] ss:$16 sps:$4 sm:$0xff]  }
  0xf1   : > { %1820 = vmatprep.subr.bf16.mxu0 %v5429_v57  ;;  %1949 = vmatprep.subr.bf16.mxu1 %v5431_v58  ;;  %v5497_v38 = vld [vmem:[%s6933_s5] ss:$20 sps:$4 sm:$0xff]   ;;  %v5503_v40 = vld [vmem:[%s6940_s29 + $0x22c] ss:$16 sps:$4 sm:$0xff]   ;;  %v5501_v42 = vld [vmem:[%s6940_s29 + $0x228] ss:$16 sps:$4 sm:$0xff]  }
  0xf2   : > { %v5500_v39 = vld [vmem:[%s6940_s29 + $0x224] ss:$16 sps:$4 sm:$0xff]   ;;  %v5498_v41 = vld [vmem:[%s6940_s29 + $0x220] ss:$16 sps:$4 sm:$0xff]   ;;  %v5509_v44 = vld [vmem:[%s6940_s29 + $0x24c] ss:$16 sps:$4 sm:$0xff]  }
  0xf3   : > { %v5506_v43 = vld [vmem:[%s6940_s29 + $0x244] ss:$16 sps:$4 sm:$0xff]   ;;  %v5504_v45 = vld [vmem:[%s6940_s29 + $0x240] ss:$16 sps:$4 sm:$0xff]   ;;  %v5507_v46 = vld [vmem:[%s6940_s29 + $0x248] ss:$16 sps:$4 sm:$0xff]  }
  0xf4   : > { %1821 = vmatpush1.bf16.msra.mxu0 %v5433_v59  ;;  %1950 = vmatpush1.bf16.msra.mxu1 %v5434_v60  ;;  %v5512_v47 = vld [vmem:[%s6940_s29 + $0x264] ss:$16 sps:$4 sm:$0xff]   ;;  %v5515_v48 = vld [vmem:[%s6940_s29 + $0x26c] ss:$16 sps:$4 sm:$0xff]   ;;  %v5510_v49 = vld [vmem:[%s6940_s29 + $0x260] ss:$16 sps:$4 sm:$0xff]  }
  0xf5   : > { %1822 = vmatprep.subr.bf16.mxu0 %v5435_v61  ;;  %1951 = vmatprep.subr.bf16.mxu1 %v5437_v62  ;;  %v5513_v50 = vld [vmem:[%s6940_s29 + $0x268] ss:$16 sps:$4 sm:$0xff]   ;;  %v5518_v51 = vld [vmem:[%s6940_s29 + $0x284] ss:$16 sps:$4 sm:$0xff]   ;;  %v5521_v52 = vld [vmem:[%s6940_s29 + $0x28c] ss:$16 sps:$4 sm:$0xff]  }
  0xf6   : > { %v5516_v53 = vld [vmem:[%s6940_s29 + $0x280] ss:$16 sps:$4 sm:$0xff]   ;;  %v5519_v54 = vld [vmem:[%s6940_s29 + $0x288] ss:$16 sps:$4 sm:$0xff]   ;;  %v5524_v55 = vld [vmem:[%s6940_s29 + $0x2a4] ss:$16 sps:$4 sm:$0xff]  }
  0xf7   : > { %v5527_v56 = vld [vmem:[%s6940_s29 + $0x2ac] ss:$16 sps:$4 sm:$0xff]   ;;  %v5522_v57 = vld [vmem:[%s6940_s29 + $0x2a0] ss:$16 sps:$4 sm:$0xff]   ;;  %v5525_v58 = vld [vmem:[%s6940_s29 + $0x2a8] ss:$16 sps:$4 sm:$0xff]  }
  0xf8   : > { %1823 = vmatpush1.bf16.msra.mxu0 %v5439_v63  ;;  %1952 = vmatpush1.bf16.msra.mxu1 %v5440_v0  ;;  %v5530_v59 = vld [vmem:[%s6940_s29 + $0x2c4] ss:$16 sps:$4 sm:$0xff]   ;;  %v5533_v60 = vld [vmem:[%s6940_s29 + $0x2cc] ss:$16 sps:$4 sm:$0xff]   ;;  %v5528_v61 = vld [vmem:[%s6940_s29 + $0x2c0] ss:$16 sps:$4 sm:$0xff]  }
  0xf9   : > { %1824 = vmatprep.subr.bf16.mxu0 %v5441_v1  ;;  %1953 = vmatprep.subr.bf16.mxu1 %v5443_v2  ;;  %v7045_v62 = vld [vmem:[%s6933_s5 + $0xc] ss:$20 sps:$4 sm:$0xff]   ;;  %v5531_v63 = vld [vmem:[%s6940_s29 + $0x2c8] ss:$16 sps:$4 sm:$0xff]   ;;  %v5536_v0 = vld [vmem:[%s6940_s29 + $0x2e4] ss:$16 sps:$4 sm:$0xff]  }
  0xfa   : > { %v5539_v1 = vld [vmem:[%s6940_s29 + $0x2ec] ss:$16 sps:$4 sm:$0xff]   ;;  %v5534_v2 = vld [vmem:[%s6940_s29 + $0x2e0] ss:$16 sps:$4 sm:$0xff]   ;;  %vm1804_vm1 = vcmask 523264   ;;  %p5203_p6 = scmp.ne.s32.totalorder %s6185_s20, 2 }
  0xfc   : > { %1825 = vmatpush1.bf16.msra.mxu0 %v5445_v3  ;;  %1954 = vmatpush1.bf16.msra.mxu1 %v5446_v4  ;;  %v5537_v3 = vld [vmem:[%s6940_s29 + $0x2e8] ss:$16 sps:$4 sm:$0xff]   ;;  %v5542_v4 = vld [vmem:[%s6940_s29 + $0x304] ss:$16 sps:$4 sm:$0xff]  }
  0xfd   : > { %1826 = vmatprep.subr.bf16.mxu0 %v5447_v5  ;;  %1955 = vmatprep.subr.bf16.mxu1 %v5449_v6  ;;  %v5545_v5 = vld [vmem:[%s6940_s29 + $0x30c] ss:$16 sps:$4 sm:$0xff]   ;;  %v5540_v6 = vld [vmem:[%s6940_s29 + $0x300] ss:$16 sps:$4 sm:$0xff]  }
 0x100   : > { %1827 = vmatpush1.bf16.msra.mxu0 %v5451_v7  ;;  %1956 = vmatpush1.bf16.msra.mxu1 %v5452_v8  ;;  %v5543_v7 = vld [vmem:[%s6940_s29 + $0x308] ss:$16 sps:$4 sm:$0xff]   ;;  %v5548_v8 = vld [vmem:[%s6940_s29 + $0x324] ss:$16 sps:$4 sm:$0xff]  }
 0x101   : > { %1828 = vmatprep.subr.bf16.mxu0 %v5453_v9  ;;  %1957 = vmatprep.subr.bf16.mxu1 %v5455_v10  ;;  %v5551_v9 = vld [vmem:[%s6940_s29 + $0x32c] ss:$16 sps:$4 sm:$0xff]   ;;  %v5546_v10 = vld [vmem:[%s6940_s29 + $0x320] ss:$16 sps:$4 sm:$0xff]  }
 0x104   : > { %1829 = vmatpush1.bf16.msra.mxu0 %v5457_v11  ;;  %1958 = vmatpush1.bf16.msra.mxu1 %v5458_v12  ;;  %v5549_v11 = vld [vmem:[%s6940_s29 + $0x328] ss:$16 sps:$4 sm:$0xff]   ;;  %v5554_v12 = vld [vmem:[%s6940_s29 + $0x344] ss:$16 sps:$4 sm:$0xff]  }
 0x105   : > { %1830 = vmatprep.subr.bf16.mxu0 %v5459_v13  ;;  %1959 = vmatprep.subr.bf16.mxu1 %v5461_v14  ;;  %v5557_v13 = vld [vmem:[%s6940_s29 + $0x34c] ss:$16 sps:$4 sm:$0xff]   ;;  %v5552_v14 = vld [vmem:[%s6940_s29 + $0x340] ss:$16 sps:$4 sm:$0xff]  }
 0x108   : > { %1831 = vmatpush1.bf16.msra.mxu0 %v5463_v15  ;;  %1960 = vmatpush1.bf16.msra.mxu1 %v5464_v17  ;;  %v5555_v15 = vld [vmem:[%s6940_s29 + $0x348] ss:$16 sps:$4 sm:$0xff]   ;;  %v5560_v17 = vld [vmem:[%s6940_s29 + $0x364] ss:$16 sps:$4 sm:$0xff]  }
 0x109   : > { %1832 = vmatprep.subr.bf16.mxu0 %v5465_v18  ;;  %1961 = vmatprep.subr.bf16.mxu1 %v5467_v19  ;;  %v5563_v18 = vld [vmem:[%s6940_s29 + $0x36c] ss:$16 sps:$4 sm:$0xff]   ;;  %v5558_v19 = vld [vmem:[%s6940_s29 + $0x360] ss:$16 sps:$4 sm:$0xff]  }
 0x10c   : > { %1833 = vmatpush1.bf16.msra.mxu0 %v5469_v20  ;;  %1962 = vmatpush1.bf16.msra.mxu1 %v5470_v21  ;;  %v5561_v20 = vld [vmem:[%s6940_s29 + $0x368] ss:$16 sps:$4 sm:$0xff]   ;;  %v5566_v21 = vld [vmem:[%s6940_s29 + $0x384] ss:$16 sps:$4 sm:$0xff]  }
 0x10d   : > { %1834 = vmatprep.subr.bf16.mxu0 %v5471_v22  ;;  %1963 = vmatprep.subr.bf16.mxu1 %v5473_v23  ;;  %v5569_v22 = vld [vmem:[%s6940_s29 + $0x38c] ss:$16 sps:$4 sm:$0xff]   ;;  %v5564_v23 = vld [vmem:[%s6940_s29 + $0x380] ss:$16 sps:$4 sm:$0xff]  }
 0x110   : > { %1835 = vmatpush1.bf16.msra.mxu0 %v5475_v24  ;;  %1964 = vmatpush1.bf16.msra.mxu1 %v5476_v25  ;;  %v5567_v24 = vld [vmem:[%s6940_s29 + $0x388] ss:$16 sps:$4 sm:$0xff]   ;;  %v5572_v25 = vld [vmem:[%s6940_s29 + $0x3a4] ss:$16 sps:$4 sm:$0xff]  }
 0x111   : > { %1836 = vmatprep.subr.bf16.mxu0 %v5477_v26  ;;  %1965 = vmatprep.subr.bf16.mxu1 %v5479_v27  ;;  %v5575_v26 = vld [vmem:[%s6940_s29 + $0x3ac] ss:$16 sps:$4 sm:$0xff]   ;;  %v5570_v27 = vld [vmem:[%s6940_s29 + $0x3a0] ss:$16 sps:$4 sm:$0xff]  }
 0x114   : > { %1837 = vmatpush1.bf16.msra.mxu0 %v5481_v28  ;;  %1966 = vmatpush1.bf16.msra.mxu1 %v5482_v29  ;;  %v5573_v28 = vld [vmem:[%s6940_s29 + $0x3a8] ss:$16 sps:$4 sm:$0xff]   ;;  %v5578_v29 = vld [vmem:[%s6940_s29 + $0x3c4] ss:$16 sps:$4 sm:$0xff]  }
 0x115   : > { %1838 = vmatprep.subr.bf16.mxu0 %v5483_v30  ;;  %1967 = vmatprep.subr.bf16.mxu1 %v5485_v31  ;;  %v5581_v30 = vld [vmem:[%s6940_s29 + $0x3cc] ss:$16 sps:$4 sm:$0xff]   ;;  %v5576_v31 = vld [vmem:[%s6940_s29 + $0x3c0] ss:$16 sps:$4 sm:$0xff]  }
 0x118   : > { %1839 = vmatpush1.bf16.msra.mxu0 %v5487_v32  ;;  %1968 = vmatpush1.bf16.msra.mxu1 %v5488_v33  ;;  %v5579_v32 = vld [vmem:[%s6940_s29 + $0x3c8] ss:$16 sps:$4 sm:$0xff]   ;;  %v5584_v33 = vld [vmem:[%s6940_s29 + $0x3e4] ss:$16 sps:$4 sm:$0xff]  }
 0x119   : > { %1851 = vmatprep.subr.bf16.mxu0 %v5493_v34  ;;  %1980 = vmatprep.subr.bf16.mxu1 %v5496_v35  ;;  %v5587_v34 = vld [vmem:[%s6940_s29 + $0x3ec] ss:$16 sps:$4 sm:$0xff]   ;;  %v5582_v35 = vld [vmem:[%s6940_s29 + $0x3e0] ss:$16 sps:$4 sm:$0xff]  }
 0x11b   : > { %1841 = vmatmul.mubr.bf16.vlgmr.msra.gmra.mrb[0].mxu0 %v5497_v38  ;;  %1970 = vmatmul.mubr.bf16.vlgmr.msra.gmra.mrb[0].mxu1 %v5497_v38  ;;  %v5595_v38 = vld [vmem:[%s6940_s29 + $0x40c] ss:$16 sps:$4 sm:$0xff]  }
 0x11c   : > { %1852 = vmatpush1.bf16.msra.mxu0 %v5491_v36  ;;  %1981 = vmatpush1.bf16.msra.mxu1 %v5494_v37  ;;  %v5585_v36 = vld [vmem:[%s6940_s29 + $0x3e8] ss:$16 sps:$4 sm:$0xff]   ;;  %v5592_v37 = vld [vmem:[%s6940_s29 + $0x404] ss:$16 sps:$4 sm:$0xff]  }
 0x11d   : > { %1853 = vmatprep.subr.bf16.mxu0 %v5500_v39  ;;  %1982 = vmatprep.subr.bf16.mxu1 %v5503_v40  ;;  %v5590_v39 = vld [vmem:[%s6940_s29 + $0x400] ss:$16 sps:$4 sm:$0xff]   ;;  %v5596_v40 = vld [vmem:[%s6933_s5 + $0x8] ss:$20 sps:$4 sm:$0xff]  }
 0x11e   : > { %1883 = vmatprep.mubr.bf16.mxu0 %v7045_v62  ;;  %2012 = vmatprep.mubr.bf16.mxu1 %v7045_v62 }
 0x120   : > { %1854 = vmatpush1.bf16.msra.mxu0 %v5498_v41  ;;  %1983 = vmatpush1.bf16.msra.mxu1 %v5501_v42  ;;  %v5593_v41 = vld [vmem:[%s6940_s29 + $0x408] ss:$16 sps:$4 sm:$0xff]   ;;  %v5599_v42 = vld [vmem:[%s6940_s29 + $0x424] ss:$16 sps:$4 sm:$0xff]  }
 0x121   : > { %1855 = vmatprep.subr.bf16.mxu0 %v5506_v43  ;;  %1984 = vmatprep.subr.bf16.mxu1 %v5509_v44  ;;  %v5602_v43 = vld [vmem:[%s6940_s29 + $0x42c] ss:$16 sps:$4 sm:$0xff]   ;;  %v5597_v44 = vld [vmem:[%s6940_s29 + $0x420] ss:$16 sps:$4 sm:$0xff]  }
 0x124   : > { %1856 = vmatpush1.bf16.msra.mxu0 %v5504_v45  ;;  %1985 = vmatpush1.bf16.msra.mxu1 %v5507_v46  ;;  %v5600_v45 = vld [vmem:[%s6940_s29 + $0x428] ss:$16 sps:$4 sm:$0xff]   ;;  %v5605_v46 = vld [vmem:[%s6940_s29 + $0x444] ss:$16 sps:$4 sm:$0xff]  }
 0x125   : > { %1857 = vmatprep.subr.bf16.mxu0 %v5512_v47  ;;  %1986 = vmatprep.subr.bf16.mxu1 %v5515_v48  ;;  %v5608_v47 = vld [vmem:[%s6940_s29 + $0x44c] ss:$16 sps:$4 sm:$0xff]   ;;  %v6204_v48 = vmov 0  }
 0x128   : > { %1858 = vmatpush1.bf16.msra.mxu0 %v5510_v49  ;;  %1987 = vmatpush1.bf16.msra.mxu1 %v5513_v50  ;;  %v5603_v49 = vld [vmem:[%s6940_s29 + $0x440] ss:$16 sps:$4 sm:$0xff]   ;;  %v5606_v50 = vld [vmem:[%s6940_s29 + $0x448] ss:$16 sps:$4 sm:$0xff]  }
 0x129   : > { %1859 = vmatprep.subr.bf16.mxu0 %v5518_v51  ;;  %1988 = vmatprep.subr.bf16.mxu1 %v5521_v52  ;;  %v5611_v51 = vld [vmem:[%s6940_s29 + $0x464] ss:$16 sps:$4 sm:$0xff]   ;;  %v5614_v52 = vld [vmem:[%s6940_s29 + $0x46c] ss:$16 sps:$4 sm:$0xff]  }
 0x12c   : > { %1860 = vmatpush1.bf16.msra.mxu0 %v5516_v53  ;;  %1989 = vmatpush1.bf16.msra.mxu1 %v5519_v54  ;;  %v5609_v53 = vld [vmem:[%s6940_s29 + $0x460] ss:$16 sps:$4 sm:$0xff]   ;;  %v5612_v54 = vld [vmem:[%s6940_s29 + $0x468] ss:$16 sps:$4 sm:$0xff]  }
 0x12d   : > { %1861 = vmatprep.subr.bf16.mxu0 %v5524_v55  ;;  %1990 = vmatprep.subr.bf16.mxu1 %v5527_v56  ;;  %v5618_v55 = vld [vmem:[%s6942_s26 + $0x4] ss:$16 sps:$4 sm:$0xff]   ;;  %v5621_v56 = vld [vmem:[%s6942_s26 + $0xc] ss:$16 sps:$4 sm:$0xff]  }
 0x130   : > { %1862 = vmatpush1.bf16.msra.mxu0 %v5522_v57  ;;  %1991 = vmatpush1.bf16.msra.mxu1 %v5525_v58  ;;  %v5615_v57 = vld [vmem:[%s6933_s5 + $0x10] ss:$20 sps:$4 sm:$0xff]  }
 0x131   : > { %1863 = vmatprep.subr.bf16.mxu0 %v5530_v59  ;;  %1992 = vmatprep.subr.bf16.mxu1 %v5533_v60  ;;  %v5616_v58 = vld [vmem:[%s6942_s26] ss:$16 sps:$4 sm:$0xff]   ;;  %v5619_v59 = vld [vmem:[%s6942_s26 + $0x8] ss:$16 sps:$4 sm:$0xff]   ;;  %v5624_v60 = vld [vmem:[%s6942_s26 + $0x24] ss:$16 sps:$4 sm:$0xff]  }
 0x134   : > { %1864 = vmatpush1.bf16.msra.mxu0 %v5528_v61  ;;  %1993 = vmatpush1.bf16.msra.mxu1 %v5531_v63  ;;  %v5627_v61 = vld [vmem:[%s6942_s26 + $0x2c] ss:$16 sps:$4 sm:$0xff]   ;;  %v5622_v63 = vld [vmem:[%s6942_s26 + $0x20] ss:$16 sps:$4 sm:$0xff]  }
 0x135   : > { %1865 = vmatprep.subr.bf16.mxu0 %v5536_v0  ;;  %1994 = vmatprep.subr.bf16.mxu1 %v5539_v1  ;;  %v5625_v0 = vld [vmem:[%s6942_s26 + $0x28] ss:$16 sps:$4 sm:$0xff]   ;;  %v5630_v1 = vld [vmem:[%s6942_s26 + $0x44] ss:$16 sps:$4 sm:$0xff]  }
 0x138   : > { %1866 = vmatpush1.bf16.msra.mxu0 %v5534_v2  ;;  %1995 = vmatpush1.bf16.msra.mxu1 %v5537_v3  ;;  %v5633_v2 = vld [vmem:[%s6942_s26 + $0x4c] ss:$16 sps:$4 sm:$0xff]   ;;  %v5628_v3 = vld [vmem:[%s6942_s26 + $0x40] ss:$16 sps:$4 sm:$0xff]  }
 0x139   : > { %1867 = vmatprep.subr.bf16.mxu0 %v5542_v4  ;;  %1996 = vmatprep.subr.bf16.mxu1 %v5545_v5  ;;  %v5631_v4 = vld [vmem:[%s6942_s26 + $0x48] ss:$16 sps:$4 sm:$0xff]   ;;  %v5636_v5 = vld [vmem:[%s6942_s26 + $0x64] ss:$16 sps:$4 sm:$0xff]  }
 0x13c   : > { %1868 = vmatpush1.bf16.msra.mxu0 %v5540_v6  ;;  %1997 = vmatpush1.bf16.msra.mxu1 %v5543_v7  ;;  %v5639_v6 = vld [vmem:[%s6942_s26 + $0x6c] ss:$16 sps:$4 sm:$0xff]   ;;  %v5634_v7 = vld [vmem:[%s6942_s26 + $0x60] ss:$16 sps:$4 sm:$0xff]  }
 0x13d   : > { %1869 = vmatprep.subr.bf16.mxu0 %v5548_v8  ;;  %1998 = vmatprep.subr.bf16.mxu1 %v5551_v9  ;;  %v5637_v8 = vld [vmem:[%s6942_s26 + $0x68] ss:$16 sps:$4 sm:$0xff]   ;;  %v5645_v9 = vld [vmem:[%s6942_s26 + $0x8c] ss:$16 sps:$4 sm:$0xff]  }
 0x140   : > { %1870 = vmatpush1.bf16.msra.mxu0 %v5546_v10  ;;  %1999 = vmatpush1.bf16.msra.mxu1 %v5549_v11  ;;  %v5640_v10 = vld [vmem:[%s6942_s26 + $0x80] ss:$16 sps:$4 sm:$0xff]   ;;  %v5643_v11 = vld [vmem:[%s6942_s26 + $0x88] ss:$16 sps:$4 sm:$0xff]  }
 0x141   : > { %1871 = vmatprep.subr.bf16.mxu0 %v5554_v12  ;;  %2000 = vmatprep.subr.bf16.mxu1 %v5557_v13  ;;  %v5648_v12 = vld [vmem:[%s6942_s26 + $0xa4] ss:$16 sps:$4 sm:$0xff]   ;;  %v5651_v13 = vld [vmem:[%s6942_s26 + $0xac] ss:$16 sps:$4 sm:$0xff]  }
 0x144   : > { %1872 = vmatpush1.bf16.msra.mxu0 %v5552_v14  ;;  %2001 = vmatpush1.bf16.msra.mxu1 %v5555_v15  ;;  %v5646_v14 = vld [vmem:[%s6942_s26 + $0xa0] ss:$16 sps:$4 sm:$0xff]   ;;  %v5649_v15 = vld [vmem:[%s6942_s26 + $0xa8] ss:$16 sps:$4 sm:$0xff]  }
 0x145   : > { %1873 = vmatprep.subr.bf16.mxu0 %v5560_v17  ;;  %2002 = vmatprep.subr.bf16.mxu1 %v5563_v18  ;;  %v5654_v17 = vld [vmem:[%s6942_s26 + $0xc4] ss:$16 sps:$4 sm:$0xff]   ;;  %v5657_v18 = vld [vmem:[%s6942_s26 + $0xcc] ss:$16 sps:$4 sm:$0xff]  }
 0x148   : > { %1874 = vmatpush1.bf16.msra.mxu0 %v5558_v19  ;;  %2003 = vmatpush1.bf16.msra.mxu1 %v5561_v20  ;;  %v5652_v19 = vld [vmem:[%s6942_s26 + $0xc0] ss:$16 sps:$4 sm:$0xff]   ;;  %v5655_v20 = vld [vmem:[%s6942_s26 + $0xc8] ss:$16 sps:$4 sm:$0xff]  }
 0x149   : > { %1875 = vmatprep.subr.bf16.mxu0 %v5566_v21  ;;  %2004 = vmatprep.subr.bf16.mxu1 %v5569_v22  ;;  %v5660_v21 = vld [vmem:[%s6942_s26 + $0xe4] ss:$16 sps:$4 sm:$0xff]   ;;  %v5663_v22 = vld [vmem:[%s6942_s26 + $0xec] ss:$16 sps:$4 sm:$0xff]  }
 0x14c   : > { %1876 = vmatpush1.bf16.msra.mxu0 %v5564_v23  ;;  %2005 = vmatpush1.bf16.msra.mxu1 %v5567_v24  ;;  %v5658_v23 = vld [vmem:[%s6942_s26 + $0xe0] ss:$16 sps:$4 sm:$0xff]   ;;  %v5661_v24 = vld [vmem:[%s6942_s26 + $0xe8] ss:$16 sps:$4 sm:$0xff]  }
 0x14d   : > { %1877 = vmatprep.subr.bf16.mxu0 %v5572_v25  ;;  %2006 = vmatprep.subr.bf16.mxu1 %v5575_v26  ;;  %v5666_v25 = vld [vmem:[%s6942_s26 + $0x104] ss:$16 sps:$4 sm:$0xff]   ;;  %v5669_v26 = vld [vmem:[%s6942_s26 + $0x10c] ss:$16 sps:$4 sm:$0xff]  }
 0x150   : > { %1878 = vmatpush1.bf16.msra.mxu0 %v5570_v27  ;;  %2007 = vmatpush1.bf16.msra.mxu1 %v5573_v28  ;;  %v5664_v27 = vld [vmem:[%s6942_s26 + $0x100] ss:$16 sps:$4 sm:$0xff]   ;;  %v5667_v28 = vld [vmem:[%s6942_s26 + $0x108] ss:$16 sps:$4 sm:$0xff]  }
 0x151   : > { %1879 = vmatprep.subr.bf16.mxu0 %v5578_v29  ;;  %2008 = vmatprep.subr.bf16.mxu1 %v5581_v30  ;;  %v5672_v29 = vld [vmem:[%s6942_s26 + $0x124] ss:$16 sps:$4 sm:$0xff]   ;;  %v5675_v30 = vld [vmem:[%s6942_s26 + $0x12c] ss:$16 sps:$4 sm:$0xff]  }
 0x154   : > { %1880 = vmatpush1.bf16.msra.mxu0 %v5576_v31  ;;  %2009 = vmatpush1.bf16.msra.mxu1 %v5579_v32  ;;  %v5670_v31 = vld [vmem:[%s6942_s26 + $0x120] ss:$16 sps:$4 sm:$0xff]   ;;  %v5673_v32 = vld [vmem:[%s6942_s26 + $0x128] ss:$16 sps:$4 sm:$0xff]  }
 0x155   : > { %1881 = vmatprep.subr.bf16.mxu0 %v5584_v33  ;;  %2010 = vmatprep.subr.bf16.mxu1 %v5587_v34  ;;  %v5678_v33 = vld [vmem:[%s6942_s26 + $0x144] ss:$16 sps:$4 sm:$0xff]   ;;  %v5681_v34 = vld [vmem:[%s6942_s26 + $0x14c] ss:$16 sps:$4 sm:$0xff]  }
 0x158   : > { %1882 = vmatpush1.bf16.msra.mxu0 %v5582_v35  ;;  %2011 = vmatpush1.bf16.msra.mxu1 %v5585_v36  ;;  %v5676_v35 = vld [vmem:[%s6942_s26 + $0x140] ss:$16 sps:$4 sm:$0xff]   ;;  %v5679_v36 = vld [vmem:[%s6942_s26 + $0x148] ss:$16 sps:$4 sm:$0xff]  }
 0x159   : > { %1894 = vmatprep.subr.bf16.mxu0 %v5592_v37  ;;  %2023 = vmatprep.subr.bf16.mxu1 %v5595_v38  ;;  %v5684_v37 = vld [vmem:[%s6942_s26 + $0x164] ss:$16 sps:$4 sm:$0xff]   ;;  %v5687_v38 = vld [vmem:[%s6942_s26 + $0x16c] ss:$16 sps:$4 sm:$0xff]  }
 0x15b   : > { %1884 = vmatmul.mubr.bf16.vlgmr.msra.gmra.mrb[0].mxu0 %v5596_v40  ;;  %2013 = vmatmul.mubr.bf16.vlgmr.msra.gmra.mrb[0].mxu1 %v5596_v40  ;;  %v5685_v40 = vld [vmem:[%s6942_s26 + $0x168] ss:$16 sps:$4 sm:$0xff]  }
 0x15c   : > { %1895 = vmatpush1.bf16.msra.mxu0 %v5590_v39  ;;  %2024 = vmatpush1.bf16.msra.mxu1 %v5593_v41  ;;  %v5682_v39 = vld [vmem:[%s6942_s26 + $0x160] ss:$16 sps:$4 sm:$0xff]   ;;  %v5690_v41 = vld [vmem:[%s6942_s26 + $0x184] ss:$16 sps:$4 sm:$0xff]  }
 0x15d   : > { %1896 = vmatprep.subr.bf16.mxu0 %v5599_v42  ;;  %2025 = vmatprep.subr.bf16.mxu1 %v5602_v43  ;;  %v5693_v42 = vld [vmem:[%s6942_s26 + $0x18c] ss:$16 sps:$4 sm:$0xff]   ;;  %v5688_v43 = vld [vmem:[%s6942_s26 + $0x180] ss:$16 sps:$4 sm:$0xff]  }
 0x15e   : > { %1926 = vmatprep.mubr.bf16.mxu0 %v6204_v48  ;;  %2055 = vmatprep.mubr.bf16.mxu1 %v6204_v48 }
 0x160   : > { %1897 = vmatpush1.bf16.msra.mxu0 %v5597_v44  ;;  %2026 = vmatpush1.bf16.msra.mxu1 %v5600_v45  ;;  %v5691_v44 = vld [vmem:[%s6942_s26 + $0x188] ss:$16 sps:$4 sm:$0xff]   ;;  %v5696_v45 = vld [vmem:[%s6942_s26 + $0x1a4] ss:$16 sps:$4 sm:$0xff]  }
 0x161   : > { %1898 = vmatprep.subr.bf16.mxu0 %v5605_v46  ;;  %2027 = vmatprep.subr.bf16.mxu1 %v5608_v47  ;;  %v5699_v46 = vld [vmem:[%s6942_s26 + $0x1ac] ss:$16 sps:$4 sm:$0xff]   ;;  %v5694_v47 = vld [vmem:[%s6942_s26 + $0x1a0] ss:$16 sps:$4 sm:$0xff]  }
 0x164   : > { %1899 = vmatpush1.bf16.msra.mxu0 %v5603_v49  ;;  %2028 = vmatpush1.bf16.msra.mxu1 %v5606_v50  ;;  %v5697_v49 = vld [vmem:[%s6942_s26 + $0x1a8] ss:$16 sps:$4 sm:$0xff]   ;;  %v5702_v50 = vld [vmem:[%s6942_s26 + $0x1c4] ss:$16 sps:$4 sm:$0xff]  }
 0x165   : > { %1900 = vmatprep.subr.bf16.mxu0 %v5611_v51  ;;  %2029 = vmatprep.subr.bf16.mxu1 %v5614_v52  ;;  %v5705_v51 = vld [vmem:[%s6942_s26 + $0x1cc] ss:$16 sps:$4 sm:$0xff]   ;;  %v5700_v52 = vld [vmem:[%s6942_s26 + $0x1c0] ss:$16 sps:$4 sm:$0xff]  }
 0x168   : > { %1901 = vmatpush1.bf16.msra.mxu0 %v5609_v53  ;;  %2030 = vmatpush1.bf16.msra.mxu1 %v5612_v54  ;;  %v5703_v53 = vld [vmem:[%s6942_s26 + $0x1c8] ss:$16 sps:$4 sm:$0xff]   ;;  %v5708_v54 = vld [vmem:[%s6942_s26 + $0x1e4] ss:$16 sps:$4 sm:$0xff]  }
 0x169   : > { %2930 = vmatprep.subr.bf16.mxu0 %v5618_v55  ;;  %3059 = vmatprep.subr.bf16.mxu1 %v5621_v56  ;;  %v5711_v55 = vld [vmem:[%s6942_s26 + $0x1ec] ss:$16 sps:$4 sm:$0xff]   ;;  %v5706_v56 = vld [vmem:[%s6942_s26 + $0x1e0] ss:$16 sps:$4 sm:$0xff]  }
 0x16b   : > { %4887 = vmatmul.mubr.msk.bf16.vlgmr.msra.gmra.mrb[0].mxu0 %vm1804_vm1, %v5615_v57  ;;  %4888 = vmatmul.mubr.msk.bf16.vlgmr.msra.gmra.mrb[0].mxu1 %vm1804_vm1, %v5615_v57  ;;  %v5709_v57 = vld [vmem:[%s6942_s26 + $0x1e8] ss:$16 sps:$4 sm:$0xff]  }
 0x16c   : > { %2931 = vmatpush1.bf16.msra.mxu0 %v5616_v58  ;;  %3060 = vmatpush1.bf16.msra.mxu1 %v5619_v59  ;;  %v5714_v58 = vld [vmem:[%s6942_s26 + $0x204] ss:$16 sps:$4 sm:$0xff]   ;;  %v5717_v59 = vld [vmem:[%s6942_s26 + $0x20c] ss:$16 sps:$4 sm:$0xff]  }
 0x16d   : > { %2932 = vmatprep.subr.bf16.mxu0 %v5624_v60  ;;  %3061 = vmatprep.subr.bf16.mxu1 %v5627_v61  ;;  %v5712_v60 = vld [vmem:[%s6942_s26 + $0x200] ss:$16 sps:$4 sm:$0xff]   ;;  %v5715_v61 = vld [vmem:[%s6942_s26 + $0x208] ss:$16 sps:$4 sm:$0xff]  }
 0x16e   : > { %2962 = vmatprep.mubr.bf16.mxu0 %v6995_v16  ;;  %3091 = vmatprep.mubr.bf16.mxu1 %v6995_v16  ;;  %v5642_v16 = vld [vmem:[%s6942_s26 + $0x84] ss:$16 sps:$4 sm:$0xff]  }
 0x170   : > { %2933 = vmatpush1.bf16.msra.mxu0 %v5622_v63  ;;  %3062 = vmatpush1.bf16.msra.mxu1 %v5625_v0  ;;  %v5720_v63 = vld [vmem:[%s6942_s26 + $0x224] ss:$16 sps:$4 sm:$0xff]   ;;  %v5723_v0 = vld [vmem:[%s6942_s26 + $0x22c] ss:$16 sps:$4 sm:$0xff]  }
 0x171   : > { %2934 = vmatprep.subr.bf16.mxu0 %v5630_v1  ;;  %3063 = vmatprep.subr.bf16.mxu1 %v5633_v2  ;;  %v5718_v1 = vld [vmem:[%s6942_s26 + $0x220] ss:$16 sps:$4 sm:$0xff]   ;;  %v5721_v2 = vld [vmem:[%s6942_s26 + $0x228] ss:$16 sps:$4 sm:$0xff]  }
 0x174   : > { %2935 = vmatpush1.bf16.msra.mxu0 %v5628_v3  ;;  %3064 = vmatpush1.bf16.msra.mxu1 %v5631_v4  ;;  %v6088_v3 = vld [vmem:[%s6933_s5] ss:$20 sps:$4 sm:$0xff]  }
 0x175   : > { %2936 = vmatprep.subr.bf16.mxu0 %v5636_v5  ;;  %3065 = vmatprep.subr.bf16.mxu1 %v5639_v6  ;;  %v5726_v4 = vld [vmem:[%s6942_s26 + $0x244] ss:$16 sps:$4 sm:$0xff]   ;;  %v5729_v5 = vld [vmem:[%s6942_s26 + $0x24c] ss:$16 sps:$4 sm:$0xff]   ;;  %v5724_v6 = vld [vmem:[%s6942_s26 + $0x240] ss:$16 sps:$4 sm:$0xff]  }
 0x178   : > { %2937 = vmatpush1.bf16.msra.mxu0 %v5634_v7  ;;  %3066 = vmatpush1.bf16.msra.mxu1 %v5637_v8  ;;  %v5727_v7 = vld [vmem:[%s6942_s26 + $0x248] ss:$16 sps:$4 sm:$0xff]   ;;  %v5732_v8 = vld [vmem:[%s6942_s26 + $0x264] ss:$16 sps:$4 sm:$0xff]  }
 0x179   : > { %2938 = vmatprep.subr.bf16.mxu0 %v5642_v16  ;;  %3067 = vmatprep.subr.bf16.mxu1 %v5645_v9  ;;  %v5735_v16 = vld [vmem:[%s6942_s26 + $0x26c] ss:$16 sps:$4 sm:$0xff]   ;;  %v5730_v9 = vld [vmem:[%s6942_s26 + $0x260] ss:$16 sps:$4 sm:$0xff]  }
 0x17c   : > { %2939 = vmatpush1.bf16.msra.mxu0 %v5640_v10  ;;  %3068 = vmatpush1.bf16.msra.mxu1 %v5643_v11  ;;  %v5733_v10 = vld [vmem:[%s6942_s26 + $0x268] ss:$16 sps:$4 sm:$0xff]   ;;  %v5738_v11 = vld [vmem:[%s6942_s26 + $0x284] ss:$16 sps:$4 sm:$0xff]  }
 0x17d   : > { %2940 = vmatprep.subr.bf16.mxu0 %v5648_v12  ;;  %3069 = vmatprep.subr.bf16.mxu1 %v5651_v13  ;;  %v5741_v12 = vld [vmem:[%s6942_s26 + $0x28c] ss:$16 sps:$4 sm:$0xff]   ;;  %v5739_v13 = vld [vmem:[%s6942_s26 + $0x288] ss:$16 sps:$4 sm:$0xff]  }
 0x180   : > { %2941 = vmatpush1.bf16.msra.mxu0 %v5646_v14  ;;  %3070 = vmatpush1.bf16.msra.mxu1 %v5649_v15  ;;  %v5744_v14 = vld [vmem:[%s6942_s26 + $0x2a4] ss:$16 sps:$4 sm:$0xff]   ;;  %v5747_v15 = vld [vmem:[%s6942_s26 + $0x2ac] ss:$16 sps:$4 sm:$0xff]  }
 0x181   : > { %2942 = vmatprep.subr.bf16.mxu0 %v5654_v17  ;;  %3071 = vmatprep.subr.bf16.mxu1 %v5657_v18  ;;  %v5742_v17 = vld [vmem:[%s6942_s26 + $0x2a0] ss:$16 sps:$4 sm:$0xff]   ;;  %v5745_v18 = vld [vmem:[%s6942_s26 + $0x2a8] ss:$16 sps:$4 sm:$0xff]  }
 0x184   : > { %2943 = vmatpush1.bf16.msra.mxu0 %v5652_v19  ;;  %3072 = vmatpush1.bf16.msra.mxu1 %v5655_v20  ;;  %v5750_v19 = vld [vmem:[%s6942_s26 + $0x2c4] ss:$16 sps:$4 sm:$0xff]   ;;  %v5753_v20 = vld [vmem:[%s6942_s26 + $0x2cc] ss:$16 sps:$4 sm:$0xff]  }
 0x185   : > { %2944 = vmatprep.subr.bf16.mxu0 %v5660_v21  ;;  %3073 = vmatprep.subr.bf16.mxu1 %v5663_v22  ;;  %v5748_v21 = vld [vmem:[%s6942_s26 + $0x2c0] ss:$16 sps:$4 sm:$0xff]   ;;  %v5751_v22 = vld [vmem:[%s6942_s26 + $0x2c8] ss:$16 sps:$4 sm:$0xff]  }
 0x188   : > { %2945 = vmatpush1.bf16.msra.mxu0 %v5658_v23  ;;  %3074 = vmatpush1.bf16.msra.mxu1 %v5661_v24  ;;  %v5756_v23 = vld [vmem:[%s6942_s26 + $0x2e4] ss:$16 sps:$4 sm:$0xff]   ;;  %v5759_v24 = vld [vmem:[%s6942_s26 + $0x2ec] ss:$16 sps:$4 sm:$0xff]  }
 0x189   : > { %2946 = vmatprep.subr.bf16.mxu0 %v5666_v25  ;;  %3075 = vmatprep.subr.bf16.mxu1 %v5669_v26  ;;  %v5754_v25 = vld [vmem:[%s6942_s26 + $0x2e0] ss:$16 sps:$4 sm:$0xff]   ;;  %v5757_v26 = vld [vmem:[%s6942_s26 + $0x2e8] ss:$16 sps:$4 sm:$0xff]  }
 0x18c   : > { %2947 = vmatpush1.bf16.msra.mxu0 %v5664_v27  ;;  %3076 = vmatpush1.bf16.msra.mxu1 %v5667_v28  ;;  %v5762_v27 = vld [vmem:[%s6942_s26 + $0x304] ss:$16 sps:$4 sm:$0xff]   ;;  %v5765_v28 = vld [vmem:[%s6942_s26 + $0x30c] ss:$16 sps:$4 sm:$0xff]  }
 0x18d   : > { %2948 = vmatprep.subr.bf16.mxu0 %v5672_v29  ;;  %3077 = vmatprep.subr.bf16.mxu1 %v5675_v30  ;;  %v5760_v29 = vld [vmem:[%s6942_s26 + $0x300] ss:$16 sps:$4 sm:$0xff]   ;;  %v5763_v30 = vld [vmem:[%s6942_s26 + $0x308] ss:$16 sps:$4 sm:$0xff]  }
 0x190   : > { %2949 = vmatpush1.bf16.msra.mxu0 %v5670_v31  ;;  %3078 = vmatpush1.bf16.msra.mxu1 %v5673_v32  ;;  %v5768_v31 = vld [vmem:[%s6942_s26 + $0x324] ss:$16 sps:$4 sm:$0xff]   ;;  %v5771_v32 = vld [vmem:[%s6942_s26 + $0x32c] ss:$16 sps:$4 sm:$0xff]  }
 0x191   : > { %2950 = vmatprep.subr.bf16.mxu0 %v5678_v33  ;;  %3079 = vmatprep.subr.bf16.mxu1 %v5681_v34  ;;  %v5766_v33 = vld [vmem:[%s6942_s26 + $0x320] ss:$16 sps:$4 sm:$0xff]   ;;  %v5769_v34 = vld [vmem:[%s6942_s26 + $0x328] ss:$16 sps:$4 sm:$0xff]  }
 0x194   : > { %2951 = vmatpush1.bf16.msra.mxu0 %v5676_v35  ;;  %3080 = vmatpush1.bf16.msra.mxu1 %v5679_v36  ;;  %v5774_v35 = vld [vmem:[%s6942_s26 + $0x344] ss:$16 sps:$4 sm:$0xff]   ;;  %v5777_v36 = vld [vmem:[%s6942_s26 + $0x34c] ss:$16 sps:$4 sm:$0xff]  }
 0x195   : > { %2952 = vmatprep.subr.bf16.mxu0 %v5684_v37  ;;  %3081 = vmatprep.subr.bf16.mxu1 %v5687_v38  ;;  %v5772_v37 = vld [vmem:[%s6942_s26 + $0x340] ss:$16 sps:$4 sm:$0xff]   ;;  %v5775_v38 = vld [vmem:[%s6942_s26 + $0x348] ss:$16 sps:$4 sm:$0xff]  }
 0x198   : > { %2953 = vmatpush1.bf16.msra.mxu0 %v5682_v39  ;;  %3082 = vmatpush1.bf16.msra.mxu1 %v5685_v40  ;;  %v5780_v39 = vld [vmem:[%s6942_s26 + $0x364] ss:$16 sps:$4 sm:$0xff]   ;;  %v5783_v40 = vld [vmem:[%s6942_s26 + $0x36c] ss:$16 sps:$4 sm:$0xff]  }
 0x199   : > { %2954 = vmatprep.subr.bf16.mxu0 %v5690_v41  ;;  %3083 = vmatprep.subr.bf16.mxu1 %v5693_v42  ;;  %v5778_v41 = vld [vmem:[%s6942_s26 + $0x360] ss:$16 sps:$4 sm:$0xff]   ;;  %v5781_v42 = vld [vmem:[%s6942_s26 + $0x368] ss:$16 sps:$4 sm:$0xff]  }
 0x19c   : > { %2955 = vmatpush1.bf16.msra.mxu0 %v5688_v43  ;;  %3084 = vmatpush1.bf16.msra.mxu1 %v5691_v44  ;;  %v5786_v43 = vld [vmem:[%s6942_s26 + $0x384] ss:$16 sps:$4 sm:$0xff]   ;;  %v5789_v44 = vld [vmem:[%s6942_s26 + $0x38c] ss:$16 sps:$4 sm:$0xff]  }
 0x19d   : > { %2956 = vmatprep.subr.bf16.mxu0 %v5696_v45  ;;  %3085 = vmatprep.subr.bf16.mxu1 %v5699_v46  ;;  %v5784_v45 = vld [vmem:[%s6942_s26 + $0x380] ss:$16 sps:$4 sm:$0xff]   ;;  %v5787_v46 = vld [vmem:[%s6942_s26 + $0x388] ss:$16 sps:$4 sm:$0xff]  }
 0x1a0   : > { %2957 = vmatpush1.bf16.msra.mxu0 %v5694_v47  ;;  %3086 = vmatpush1.bf16.msra.mxu1 %v5697_v49  ;;  %v5792_v47 = vld [vmem:[%s6942_s26 + $0x3a4] ss:$16 sps:$4 sm:$0xff]   ;;  %v5795_v49 = vld [vmem:[%s6942_s26 + $0x3ac] ss:$16 sps:$4 sm:$0xff]  }
 0x1a1   : > { %2958 = vmatprep.subr.bf16.mxu0 %v5702_v50  ;;  %3087 = vmatprep.subr.bf16.mxu1 %v5705_v51  ;;  %v5790_v50 = vld [vmem:[%s6942_s26 + $0x3a0] ss:$16 sps:$4 sm:$0xff]   ;;  %v5793_v51 = vld [vmem:[%s6942_s26 + $0x3a8] ss:$16 sps:$4 sm:$0xff]  }
 0x1a4   : > { %2959 = vmatpush1.bf16.msra.mxu0 %v5700_v52  ;;  %3088 = vmatpush1.bf16.msra.mxu1 %v5703_v53  ;;  %v5798_v52 = vld [vmem:[%s6942_s26 + $0x3c4] ss:$16 sps:$4 sm:$0xff]   ;;  %v5801_v53 = vld [vmem:[%s6942_s26 + $0x3cc] ss:$16 sps:$4 sm:$0xff]  }
 0x1a5   : > { %2960 = vmatprep.subr.bf16.mxu0 %v5708_v54  ;;  %3089 = vmatprep.subr.bf16.mxu1 %v5711_v55  ;;  %v5796_v54 = vld [vmem:[%s6942_s26 + $0x3c0] ss:$16 sps:$4 sm:$0xff]   ;;  %v5799_v55 = vld [vmem:[%s6942_s26 + $0x3c8] ss:$16 sps:$4 sm:$0xff]  }
 0x1a8   : > { %2961 = vmatpush1.bf16.msra.mxu0 %v5706_v56  ;;  %3090 = vmatpush1.bf16.msra.mxu1 %v5709_v57  ;;  %v5804_v56 = vld [vmem:[%s6942_s26 + $0x3e4] ss:$16 sps:$4 sm:$0xff]   ;;  %v5807_v57 = vld [vmem:[%s6942_s26 + $0x3ec] ss:$16 sps:$4 sm:$0xff]  }
 0x1a9   : > { %2973 = vmatprep.subr.bf16.mxu0 %v5714_v58  ;;  %3102 = vmatprep.subr.bf16.mxu1 %v5717_v59  ;;  %v5802_v58 = vld [vmem:[%s6942_s26 + $0x3e0] ss:$16 sps:$4 sm:$0xff]   ;;  %v5805_v59 = vld [vmem:[%s6942_s26 + $0x3e8] ss:$16 sps:$4 sm:$0xff]  }
 0x1ab   : > { %2963 = vmatmul.mubr.bf16.vlgmr.msra.gmra.mrb[4].mxu0 %v6088_v3  ;;  %3092 = vmatmul.mubr.bf16.vlgmr.msra.gmra.mrb[4].mxu1 %v6088_v3  ;;  %v6089_v3 = vld [vmem:[%s6933_s5 + $0x8] ss:$20 sps:$4 sm:$0xff]  }
 0x1ac   : > { %2974 = vmatpush1.bf16.msra.mxu0 %v5712_v60  ;;  %3103 = vmatpush1.bf16.msra.mxu1 %v5715_v61  ;;  %v5810_v60 = vld [vmem:[%s6942_s26 + $0x404] ss:$16 sps:$4 sm:$0xff]   ;;  %v5813_v61 = vld [vmem:[%s6942_s26 + $0x40c] ss:$16 sps:$4 sm:$0xff]  }
 0x1ad   : > { %2975 = vmatprep.subr.bf16.mxu0 %v5720_v63  ;;  %3104 = vmatprep.subr.bf16.mxu1 %v5723_v0  ;;  %v5808_v63 = vld [vmem:[%s6942_s26 + $0x400] ss:$16 sps:$4 sm:$0xff]   ;;  %v5811_v0 = vld [vmem:[%s6942_s26 + $0x408] ss:$16 sps:$4 sm:$0xff]  }
 0x1ae   : > { %3005 = vmatprep.mubr.bf16.mxu0 %v7045_v62  ;;  %3134 = vmatprep.mubr.bf16.mxu1 %v7045_v62  ;;  %v5736_v62 = vld [vmem:[%s6942_s26 + $0x280] ss:$16 sps:$4 sm:$0xff]  }
 0x1b0   : > { %2976 = vmatpush1.bf16.msra.mxu0 %v5718_v1  ;;  %3105 = vmatpush1.bf16.msra.mxu1 %v5721_v2  ;;  %v5816_v1 = vld [vmem:[%s6942_s26 + $0x424] ss:$16 sps:$4 sm:$0xff]   ;;  %v5819_v2 = vld [vmem:[%s6942_s26 + $0x42c] ss:$16 sps:$4 sm:$0xff]  }
 0x1b1   : > { %2977 = vmatprep.subr.bf16.mxu0 %v5726_v4  ;;  %3106 = vmatprep.subr.bf16.mxu1 %v5729_v5  ;;  %v5814_v4 = vld [vmem:[%s6942_s26 + $0x420] ss:$16 sps:$4 sm:$0xff]   ;;  %v5817_v5 = vld [vmem:[%s6942_s26 + $0x428] ss:$16 sps:$4 sm:$0xff]  }
 0x1b4   : > { %2978 = vmatpush1.bf16.msra.mxu0 %v5724_v6  ;;  %3107 = vmatpush1.bf16.msra.mxu1 %v5727_v7  ;;  %v5822_v6 = vld [vmem:[%s6942_s26 + $0x444] ss:$16 sps:$4 sm:$0xff]   ;;  %v5825_v7 = vld [vmem:[%s6942_s26 + $0x44c] ss:$16 sps:$4 sm:$0xff]  }
 0x1b5   : > { %2979 = vmatprep.subr.bf16.mxu0 %v5732_v8  ;;  %3108 = vmatprep.subr.bf16.mxu1 %v5735_v16  ;;  %v5820_v8 = vld [vmem:[%s6942_s26 + $0x440] ss:$16 sps:$4 sm:$0xff]   ;;  %v5823_v16 = vld [vmem:[%s6942_s26 + $0x448] ss:$16 sps:$4 sm:$0xff]  }
 0x1b8   : > { %2980 = vmatpush1.bf16.msra.mxu0 %v5730_v9  ;;  %3109 = vmatpush1.bf16.msra.mxu1 %v5733_v10  ;;  %v5828_v9 = vld [vmem:[%s6942_s26 + $0x464] ss:$16 sps:$4 sm:$0xff]   ;;  %v5831_v10 = vld [vmem:[%s6942_s26 + $0x46c] ss:$16 sps:$4 sm:$0xff]  }
 0x1b9   : > { %2981 = vmatprep.subr.bf16.mxu0 %v5738_v11  ;;  %3110 = vmatprep.subr.bf16.mxu1 %v5741_v12  ;;  %v5826_v11 = vld [vmem:[%s6942_s26 + $0x460] ss:$16 sps:$4 sm:$0xff]   ;;  %v5829_v12 = vld [vmem:[%s6942_s26 + $0x468] ss:$16 sps:$4 sm:$0xff]  }
 0x1bc   : > { %2982 = vmatpush1.bf16.msra.mxu0 %v5736_v62  ;;  %3111 = vmatpush1.bf16.msra.mxu1 %v5739_v13  ;;  %v5837_v62 = vld [vmem:[%s6938_s18 + $0xc] ss:$20 sps:$4 sm:$0xff]  }
 0x1bd   : > { %2983 = vmatprep.subr.bf16.mxu0 %v5744_v14  ;;  %3112 = vmatprep.subr.bf16.mxu1 %v5747_v15  ;;  %v5832_v13 = vld [vmem:[%s6938_s18] ss:$20 sps:$4 sm:$0xff]   ;;  %v5835_v14 = vld [vmem:[%s6938_s18 + $0x8] ss:$20 sps:$4 sm:$0xff]  }
 0x1be   : > { %v5840_v15 = vld [vmem:[%s6938_s18 + $0x2c] ss:$20 sps:$4 sm:$0xff]  }
 0x1c0   : > { %2984 = vmatpush1.bf16.msra.mxu0 %v5742_v17  ;;  %3113 = vmatpush1.bf16.msra.mxu1 %v5745_v18  ;;  %v5843_v17 = vld [vmem:[%s6938_s18 + $0x34] ss:$20 sps:$4 sm:$0xff]   ;;  %v6090_v18 = vld [vmem:[%s6933_s5 + $0x10] ss:$20 sps:$4 sm:$0xff]  }
 0x1c1   : > { %2985 = vmatprep.subr.bf16.mxu0 %v5750_v19  ;;  %3114 = vmatprep.subr.bf16.mxu1 %v5753_v20  ;;  %v5838_v19 = vld [vmem:[%s6938_s18 + $0x28] ss:$20 sps:$4 sm:$0xff]   ;;  %v5841_v20 = vld [vmem:[%s6938_s18 + $0x30] ss:$20 sps:$4 sm:$0xff]  }
 0x1c4   : > { %2986 = vmatpush1.bf16.msra.mxu0 %v5748_v21  ;;  %3115 = vmatpush1.bf16.msra.mxu1 %v5751_v22  ;;  %v5846_v21 = vld [vmem:[%s6938_s18 + $0x54] ss:$20 sps:$4 sm:$0xff]   ;;  %v5849_v22 = vld [vmem:[%s6938_s18 + $0x5c] ss:$20 sps:$4 sm:$0xff]  }
 0x1c5   : > { %2987 = vmatprep.subr.bf16.mxu0 %v5756_v23  ;;  %3116 = vmatprep.subr.bf16.mxu1 %v5759_v24  ;;  %v5844_v23 = vld [vmem:[%s6938_s18 + $0x50] ss:$20 sps:$4 sm:$0xff]   ;;  %v5847_v24 = vld [vmem:[%s6938_s18 + $0x58] ss:$20 sps:$4 sm:$0xff]  }
 0x1c8   : > { %2988 = vmatpush1.bf16.msra.mxu0 %v5754_v25  ;;  %3117 = vmatpush1.bf16.msra.mxu1 %v5757_v26  ;;  %v5852_v25 = vld [vmem:[%s6938_s18 + $0x7c] ss:$20 sps:$4 sm:$0xff]   ;;  %v5855_v26 = vld [vmem:[%s6938_s18 + $0x84] ss:$20 sps:$4 sm:$0xff]  }
 0x1c9   : > { %2989 = vmatprep.subr.bf16.mxu0 %v5762_v27  ;;  %3118 = vmatprep.subr.bf16.mxu1 %v5765_v28  ;;  %v5850_v27 = vld [vmem:[%s6938_s18 + $0x78] ss:$20 sps:$4 sm:$0xff]   ;;  %v5853_v28 = vld [vmem:[%s6938_s18 + $0x80] ss:$20 sps:$4 sm:$0xff]  }
 0x1cc   : > { %2990 = vmatpush1.bf16.msra.mxu0 %v5760_v29  ;;  %3119 = vmatpush1.bf16.msra.mxu1 %v5763_v30  ;;  %v5858_v29 = vld [vmem:[%s6938_s18 + $0xa4] ss:$20 sps:$4 sm:$0xff]   ;;  %v5861_v30 = vld [vmem:[%s6938_s18 + $0xac] ss:$20 sps:$4 sm:$0xff]  }
 0x1cd   : > { %2991 = vmatprep.subr.bf16.mxu0 %v5768_v31  ;;  %3120 = vmatprep.subr.bf16.mxu1 %v5771_v32  ;;  %v5856_v31 = vld [vmem:[%s6938_s18 + $0xa0] ss:$20 sps:$4 sm:$0xff]   ;;  %v5859_v32 = vld [vmem:[%s6938_s18 + $0xa8] ss:$20 sps:$4 sm:$0xff]  }
 0x1d0   : > { %2992 = vmatpush1.bf16.msra.mxu0 %v5766_v33  ;;  %3121 = vmatpush1.bf16.msra.mxu1 %v5769_v34  ;;  %v5864_v33 = vld [vmem:[%s6938_s18 + $0xcc] ss:$20 sps:$4 sm:$0xff]   ;;  %v5867_v34 = vld [vmem:[%s6938_s18 + $0xd4] ss:$20 sps:$4 sm:$0xff]  }
 0x1d1   : > { %2993 = vmatprep.subr.bf16.mxu0 %v5774_v35  ;;  %3122 = vmatprep.subr.bf16.mxu1 %v5777_v36  ;;  %v5862_v35 = vld [vmem:[%s6938_s18 + $0xc8] ss:$20 sps:$4 sm:$0xff]   ;;  %v5865_v36 = vld [vmem:[%s6938_s18 + $0xd0] ss:$20 sps:$4 sm:$0xff]  }
 0x1d4   : > { %2994 = vmatpush1.bf16.msra.mxu0 %v5772_v37  ;;  %3123 = vmatpush1.bf16.msra.mxu1 %v5775_v38  ;;  %v5870_v37 = vld [vmem:[%s6938_s18 + $0xf4] ss:$20 sps:$4 sm:$0xff]   ;;  %v5873_v38 = vld [vmem:[%s6938_s18 + $0xfc] ss:$20 sps:$4 sm:$0xff]  }
 0x1d5   : > { %2995 = vmatprep.subr.bf16.mxu0 %v5780_v39  ;;  %3124 = vmatprep.subr.bf16.mxu1 %v5783_v40  ;;  %v5868_v39 = vld [vmem:[%s6938_s18 + $0xf0] ss:$20 sps:$4 sm:$0xff]   ;;  %v5871_v40 = vld [vmem:[%s6938_s18 + $0xf8] ss:$20 sps:$4 sm:$0xff]  }
 0x1d8   : > { %2996 = vmatpush1.bf16.msra.mxu0 %v5778_v41  ;;  %3125 = vmatpush1.bf16.msra.mxu1 %v5781_v42  ;;  %v5876_v41 = vld [vmem:[%s6938_s18 + $0x11c] ss:$20 sps:$4 sm:$0xff]   ;;  %v5879_v42 = vld [vmem:[%s6938_s18 + $0x124] ss:$20 sps:$4 sm:$0xff]  }
 0x1d9   : > { %2997 = vmatprep.subr.bf16.mxu0 %v5786_v43  ;;  %3126 = vmatprep.subr.bf16.mxu1 %v5789_v44  ;;  %v5874_v43 = vld [vmem:[%s6938_s18 + $0x118] ss:$20 sps:$4 sm:$0xff]   ;;  %v5877_v44 = vld [vmem:[%s6938_s18 + $0x120] ss:$20 sps:$4 sm:$0xff]  }
 0x1dc   : > { %2998 = vmatpush1.bf16.msra.mxu0 %v5784_v45  ;;  %3127 = vmatpush1.bf16.msra.mxu1 %v5787_v46  ;;  %v5882_v45 = vld [vmem:[%s6938_s18 + $0x144] ss:$20 sps:$4 sm:$0xff]   ;;  %v5885_v46 = vld [vmem:[%s6938_s18 + $0x14c] ss:$20 sps:$4 sm:$0xff]  }
 0x1dd   : > { %2999 = vmatprep.subr.bf16.mxu0 %v5792_v47  ;;  %3128 = vmatprep.subr.bf16.mxu1 %v5795_v49  ;;  %v5880_v47 = vld [vmem:[%s6938_s18 + $0x140] ss:$20 sps:$4 sm:$0xff]   ;;  %v5883_v49 = vld [vmem:[%s6938_s18 + $0x148] ss:$20 sps:$4 sm:$0xff]  }
 0x1e0   : > { %3000 = vmatpush1.bf16.msra.mxu0 %v5790_v50  ;;  %3129 = vmatpush1.bf16.msra.mxu1 %v5793_v51  ;;  %v5888_v50 = vld [vmem:[%s6938_s18 + $0x16c] ss:$20 sps:$4 sm:$0xff]   ;;  %v5891_v51 = vld [vmem:[%s6938_s18 + $0x174] ss:$20 sps:$4 sm:$0xff]  }
 0x1e1   : > { %3001 = vmatprep.subr.bf16.mxu0 %v5798_v52  ;;  %3130 = vmatprep.subr.bf16.mxu1 %v5801_v53  ;;  %v5886_v52 = vld [vmem:[%s6938_s18 + $0x168] ss:$20 sps:$4 sm:$0xff]   ;;  %v5889_v53 = vld [vmem:[%s6938_s18 + $0x170] ss:$20 sps:$4 sm:$0xff]  }
 0x1e4   : > { %3002 = vmatpush1.bf16.msra.mxu0 %v5796_v54  ;;  %3131 = vmatpush1.bf16.msra.mxu1 %v5799_v55  ;;  %v5894_v54 = vld [vmem:[%s6938_s18 + $0x194] ss:$20 sps:$4 sm:$0xff]   ;;  %v5897_v55 = vld [vmem:[%s6938_s18 + $0x19c] ss:$20 sps:$4 sm:$0xff]  }
 0x1e5   : > { %3003 = vmatprep.subr.bf16.mxu0 %v5804_v56  ;;  %3132 = vmatprep.subr.bf16.mxu1 %v5807_v57  ;;  %v5892_v56 = vld [vmem:[%s6938_s18 + $0x190] ss:$20 sps:$4 sm:$0xff]   ;;  %v5895_v57 = vld [vmem:[%s6938_s18 + $0x198] ss:$20 sps:$4 sm:$0xff]  }
 0x1e8   : > { %3004 = vmatpush1.bf16.msra.mxu0 %v5802_v58  ;;  %3133 = vmatpush1.bf16.msra.mxu1 %v5805_v59  ;;  %v5900_v58 = vld [vmem:[%s6938_s18 + $0x1bc] ss:$20 sps:$4 sm:$0xff]   ;;  %v5903_v59 = vld [vmem:[%s6938_s18 + $0x1c4] ss:$20 sps:$4 sm:$0xff]  }
 0x1e9   : > { %3016 = vmatprep.subr.bf16.mxu0 %v5810_v60  ;;  %3145 = vmatprep.subr.bf16.mxu1 %v5813_v61  ;;  %v5898_v60 = vld [vmem:[%s6938_s18 + $0x1b8] ss:$20 sps:$4 sm:$0xff]   ;;  %v5901_v61 = vld [vmem:[%s6938_s18 + $0x1c0] ss:$20 sps:$4 sm:$0xff]  }
 0x1eb   : > { %3006 = vmatmul.mubr.bf16.vlgmr.msra.gmra.mrb[4].mxu0 %v6089_v3  ;;  %3135 = vmatmul.mubr.bf16.vlgmr.msra.gmra.mrb[4].mxu1 %v6089_v3  ;;  %v5912_v3 = vld [vmem:[%s6938_s18 + $0x20c] ss:$20 sps:$4 sm:$0xff]  }
 0x1ec   : > { %3017 = vmatpush1.bf16.msra.mxu0 %v5808_v63  ;;  %3146 = vmatpush1.bf16.msra.mxu1 %v5811_v0  ;;  %v5906_v63 = vld [vmem:[%s6938_s18 + $0x1e4] ss:$20 sps:$4 sm:$0xff]   ;;  %v5909_v0 = vld [vmem:[%s6938_s18 + $0x1ec] ss:$20 sps:$4 sm:$0xff]  }
 0x1ed   : > { %3018 = vmatprep.subr.bf16.mxu0 %v5816_v1  ;;  %3147 = vmatprep.subr.bf16.mxu1 %v5819_v2  ;;  %v5904_v1 = vld [vmem:[%s6938_s18 + $0x1e0] ss:$20 sps:$4 sm:$0xff]   ;;  %v5907_v2 = vld [vmem:[%s6938_s18 + $0x1e8] ss:$20 sps:$4 sm:$0xff]  }
 0x1ee   : > { %3048 = vmatprep.mubr.bf16.mxu0 %v6204_v48  ;;  %3177 = vmatprep.mubr.bf16.mxu1 %v6204_v48  ;;  %v5834_v48 = vld [vmem:[%s6938_s18 + $0x4] ss:$20 sps:$4 sm:$0xff]  }
 0x1f0   : > { %3019 = vmatpush1.bf16.msra.mxu0 %v5814_v4  ;;  %3148 = vmatpush1.bf16.msra.mxu1 %v5817_v5  ;;  %v5915_v4 = vld [vmem:[%s6938_s18 + $0x214] ss:$20 sps:$4 sm:$0xff]  }
 0x1f1   : > { %3020 = vmatprep.subr.bf16.mxu0 %v5822_v6  ;;  %3149 = vmatprep.subr.bf16.mxu1 %v5825_v7  ;;  %v5910_v5 = vld [vmem:[%s6938_s18 + $0x208] ss:$20 sps:$4 sm:$0xff]   ;;  %v5913_v6 = vld [vmem:[%s6938_s18 + $0x210] ss:$20 sps:$4 sm:$0xff]  }
 0x1f4   : > { %3021 = vmatpush1.bf16.msra.mxu0 %v5820_v8  ;;  %3150 = vmatpush1.bf16.msra.mxu1 %v5823_v16 }
 0x1f5   : > { %3022 = vmatprep.subr.bf16.mxu0 %v5828_v9  ;;  %3151 = vmatprep.subr.bf16.mxu1 %v5831_v10 }
 0x1f8   : > { %3023 = vmatpush1.bf16.msra.mxu0 %v5826_v11  ;;  %3152 = vmatpush1.bf16.msra.mxu1 %v5829_v12 }
 0x1f9   : > { %4290 = vmatprep.subr.bf16.mxu0 %v5834_v48  ;;  %4376 = vmatprep.subr.bf16.mxu1 %v5837_v62  ;;  %v5916_v62 = vld [vmem:[%s6938_s18 + $0x230] ss:$20 sps:$4 sm:$0xff]  }
 0x1fb   : > { %5033 = vmatmul.mubr.msk.bf16.vlgmr.msra.gmra.mrb[4].mxu0 %vm1804_vm1, %v6090_v18  ;;  %5034 = vmatmul.mubr.msk.bf16.vlgmr.msra.gmra.mrb[4].mxu1 %vm1804_vm1, %v6090_v18  ;;  %v5924_v18 = vld [vmem:[%s6938_s18 + $0x25c] ss:$20 sps:$4 sm:$0xff]  }
 0x1fc   : > { %4291 = vmatpush1.bf16.msra.mxu0 %v5832_v13  ;;  %4377 = vmatpush1.bf16.msra.mxu1 %v5835_v14  ;;  %v5918_v13 = vld [vmem:[%s6938_s18 + $0x234] ss:$20 sps:$4 sm:$0xff]   ;;  %v5919_v14 = vld [vmem:[%s6938_s18 + $0x238] ss:$20 sps:$4 sm:$0xff]  }
 0x1fd   : > { %4292 = vmatprep.subr.bf16.mxu0 %v5840_v15  ;;  %4378 = vmatprep.subr.bf16.mxu1 %v5843_v17  ;;  %v5921_v15 = vld [vmem:[%s6938_s18 + $0x23c] ss:$20 sps:$4 sm:$0xff]   ;;  %v5922_v17 = vld [vmem:[%s6938_s18 + $0x258] ss:$20 sps:$4 sm:$0xff]  }
 0x200   : > { %4293 = vmatpush1.bf16.msra.mxu0 %v5838_v19  ;;  %4379 = vmatpush1.bf16.msra.mxu1 %v5841_v20  ;;  %v5925_v19 = vld [vmem:[%s6938_s18 + $0x260] ss:$20 sps:$4 sm:$0xff]   ;;  %v5927_v20 = vld [vmem:[%s6938_s18 + $0x264] ss:$20 sps:$4 sm:$0xff]  }
 0x201   : > { %4294 = vmatprep.subr.bf16.mxu0 %v5846_v21  ;;  %4380 = vmatprep.subr.bf16.mxu1 %v5849_v22  ;;  %v5930_v21 = vld [vmem:[%s6938_s18 + $0x284] ss:$20 sps:$4 sm:$0xff]   ;;  %v5933_v22 = vld [vmem:[%s6938_s18 + $0x28c] ss:$20 sps:$4 sm:$0xff]  }
 0x204   : > { %4295 = vmatpush1.bf16.msra.mxu0 %v5844_v23  ;;  %4381 = vmatpush1.bf16.msra.mxu1 %v5847_v24 }
 0x205   : > { %4296 = vmatprep.subr.bf16.mxu0 %v5852_v25  ;;  %4382 = vmatprep.subr.bf16.mxu1 %v5855_v26 }
 0x208   : > { %4297 = vmatpush1.bf16.msra.mxu0 %v5850_v27  ;;  %4383 = vmatpush1.bf16.msra.mxu1 %v5853_v28 }
 0x209   : > { %4298 = vmatprep.subr.bf16.mxu0 %v5858_v29  ;;  %4384 = vmatprep.subr.bf16.mxu1 %v5861_v30 }
 0x20c   : > { %4299 = vmatpush1.bf16.msra.mxu0 %v5856_v31  ;;  %4385 = vmatpush1.bf16.msra.mxu1 %v5859_v32 }
 0x20d   : > { %4300 = vmatprep.subr.bf16.mxu0 %v5864_v33  ;;  %4386 = vmatprep.subr.bf16.mxu1 %v5867_v34 }
 0x210   : > { %4301 = vmatpush1.bf16.msra.mxu0 %v5862_v35  ;;  %4387 = vmatpush1.bf16.msra.mxu1 %v5865_v36 }
 0x211   : > { %4302 = vmatprep.subr.bf16.mxu0 %v5870_v37  ;;  %4388 = vmatprep.subr.bf16.mxu1 %v5873_v38 }
 0x214   : > { %4303 = vmatpush1.bf16.msra.mxu0 %v5868_v39  ;;  %4389 = vmatpush1.bf16.msra.mxu1 %v5871_v40 }
 0x215   : > { %4304 = vmatprep.subr.bf16.mxu0 %v5876_v41  ;;  %4390 = vmatprep.subr.bf16.mxu1 %v5879_v42 }
 0x218   : > { %4305 = vmatpush1.bf16.msra.mxu0 %v5874_v43  ;;  %4391 = vmatpush1.bf16.msra.mxu1 %v5877_v44 }
 0x219   : > { %4306 = vmatprep.subr.bf16.mxu0 %v5882_v45  ;;  %4392 = vmatprep.subr.bf16.mxu1 %v5885_v46 }
 0x21c   : > { %4307 = vmatpush1.bf16.msra.mxu0 %v5880_v47  ;;  %4393 = vmatpush1.bf16.msra.mxu1 %v5883_v49 }
 0x21d   : > { %4308 = vmatprep.subr.bf16.mxu0 %v5888_v50  ;;  %4394 = vmatprep.subr.bf16.mxu1 %v5891_v51 }
 0x220   : > { %4309 = vmatpush1.bf16.msra.mxu0 %v5886_v52  ;;  %4395 = vmatpush1.bf16.msra.mxu1 %v5889_v53 }
 0x221   : > { %4310 = vmatprep.subr.bf16.mxu0 %v5894_v54  ;;  %4396 = vmatprep.subr.bf16.mxu1 %v5897_v55 }
 0x224   : > { %4311 = vmatpush1.bf16.msra.mxu0 %v5892_v56  ;;  %4397 = vmatpush1.bf16.msra.mxu1 %v5895_v57 }
 0x225   : > { %4312 = vmatprep.subr.bf16.mxu0 %v5900_v58  ;;  %4398 = vmatprep.subr.bf16.mxu1 %v5903_v59 }
 0x228   : > { %4313 = vmatpush1.bf16.msra.mxu0 %v5898_v60  ;;  %4399 = vmatpush1.bf16.msra.mxu1 %v5901_v61 }
 0x229   : > { %4314 = vmatprep.subr.bf16.mxu0 %v5906_v63  ;;  %4400 = vmatprep.subr.bf16.mxu1 %v5909_v0 }
 0x22c   : > { %4315 = vmatpush1.bf16.msra.mxu0 %v5904_v1  ;;  %4401 = vmatpush1.bf16.msra.mxu1 %v5907_v2 }
 0x22d   : > { %4316 = vmatprep.subr.bf16.mxu0 %v5912_v3  ;;  %4402 = vmatprep.subr.bf16.mxu1 %v5915_v4 }
 0x230   : > { %4317 = vmatpush1.bf16.msra.mxu0 %v5910_v5  ;;  %4403 = vmatpush1.bf16.msra.mxu1 %v5913_v6 }
 0x231   : > { %4318 = vmatprep.subr.bf16.mxu0 %v5918_v13  ;;  %4404 = vmatprep.subr.bf16.mxu1 %v5921_v15 }
 0x234   : > { %4319 = vmatpush1.bf16.msra.mxu0 %v5916_v62  ;;  %4405 = vmatpush1.bf16.msra.mxu1 %v5919_v14 }
 0x235   : > { %4320 = vmatprep.subr.bf16.mxu0 %v5924_v18  ;;  %4406 = vmatprep.subr.bf16.mxu1 %v5927_v20  ;;  %v5931_v20 = vld [vmem:[%s6938_s18 + $0x288] ss:$20 sps:$4 sm:$0xff]  }
 0x238   : > { %4321 = vmatpush1.bf16.msra.mxu0 %v5922_v17  ;;  %4407 = vmatpush1.bf16.msra.mxu1 %v5925_v19  ;;  %v5928_v19 = vld [vmem:[%s6938_s18 + $0x280] ss:$20 sps:$4 sm:$0xff]  }
 0x239   : > { %4333 = vmatprep.subr.bf16.mxu0 %v5930_v21  ;;  %4419 = vmatprep.subr.bf16.mxu1 %v5933_v22  ;;  %v5936_v21 = vld [vmem:[%s6938_s18 + $0x2ac] ss:$20 sps:$4 sm:$0xff]   ;;  %v5939_v22 = vld [vmem:[%s6938_s18 + $0x2b4] ss:$20 sps:$4 sm:$0xff]  }
 0x23e   : > { %v7319_v7 = vpop.f32.mrb[0].mxu0  ;;  %v7321_v8 = vpop.f32.mrb[0].mxu1 }
 0x23f   : > { %v7323_v16 = vpop.f32.mrb[1].mxu0  ;;  %v7325_v9 = vpop.f32.mrb[1].mxu1  ;;  %v5035_v23 = vmul.f32 -1.442695, %v7319_v7  ;;  %v5037_v24 = vmul.f32 -1.442695, %v7321_v8 }
 0x240   : > { %v7327_v10 = vpop.f32.mrb[2].mxu0  ;;  %v7329_v11 = vpop.f32.mrb[2].mxu1  ;;  %v5036_v25 = vmul.f32 -1.442695, %v7323_v16  ;;  %v5038_v26 = vmul.f32 -1.442695, %v7325_v9 }
 0x241   : > { %v7331_v12 = vpop.f32.mrb[3].mxu0  ;;  %v7333_v48 = vpop.f32.mrb[3].mxu1  ;;  %6056 = vpow2.f32 %v5035_v23  ;;  %v5039_v27 = vmul.f32 -1.442695, %v7327_v10  ;;  %v5041_v28 = vmul.f32 -1.442695, %v7329_v11 }
 0x242   : > { %6058 = vpow2.f32 %v5037_v24  ;;  %v5040_v29 = vmul.f32 -1.442695, %v7331_v12  ;;  %v5042_v30 = vmul.f32 -1.442695, %v7333_v48  ;;  %v5934_v23 = vld [vmem:[%s6938_s18 + $0x2a8] ss:$20 sps:$4 sm:$0xff]  }
 0x243   : > { %6060 = vpow2.f32 %v5036_v25  ;;  %v5937_v24 = vld [vmem:[%s6938_s18 + $0x2b0] ss:$20 sps:$4 sm:$0xff]   ;;  %v5942_v25 = vld [vmem:[%s6938_s18 + $0x2d4] ss:$20 sps:$4 sm:$0xff]  }
 0x244   : > { %6062 = vpow2.f32 %v5038_v26  ;;  %v5945_v26 = vld [vmem:[%s6938_s18 + $0x2dc] ss:$20 sps:$4 sm:$0xff]  }
 0x245   : > { %6064 = vpow2.f32 %v5039_v27  ;;  %v5940_v27 = vld [vmem:[%s6938_s18 + $0x2d0] ss:$20 sps:$4 sm:$0xff]  }
 0x246   : > { %6066 = vpow2.f32 %v5041_v28  ;;  %v5943_v28 = vld [vmem:[%s6938_s18 + $0x2d8] ss:$20 sps:$4 sm:$0xff]  }
 0x247   : > { %6068 = vpow2.f32 %v5040_v29  ;;  %v5948_v29 = vld [vmem:[%s6938_s18 + $0x2fc] ss:$20 sps:$4 sm:$0xff]  }
 0x248   : > { %6070 = vpow2.f32 %v5042_v30  ;;  %v5951_v30 = vld [vmem:[%s6938_s18 + $0x304] ss:$20 sps:$4 sm:$0xff]  }
 0x24b   : > { %v6057_v31 = vpop.eup %6056 }
 0x24c   : > { %v6059_v32 = vpop.eup %6058  ;;  %v3212_v35 = vadd.f32 1.0, %v6057_v31  ;;  %v5946_v31 = vld [vmem:[%s6938_s18 + $0x2f8] ss:$20 sps:$4 sm:$0xff]  }
 0x24d   : > { %v6061_v33 = vpop.eup %6060  ;;  %v3214_v37 = vadd.f32 1.0, %v6059_v32  ;;  %v5949_v32 = vld [vmem:[%s6938_s18 + $0x300] ss:$20 sps:$4 sm:$0xff]  }
 0x24e   : > { %v6063_v34 = vpop.eup %6062  ;;  %v3213_v39 = vadd.f32 1.0, %v6061_v33  ;;  %6072 = vrcp.f32 %v3212_v35  ;;  %v5954_v33 = vld [vmem:[%s6938_s18 + $0x324] ss:$20 sps:$4 sm:$0xff]   ;;  %v5952_v35 = vld [vmem:[%s6938_s18 + $0x320] ss:$20 sps:$4 sm:$0xff]  }
 0x24f   : > { %v6065_v36 = vpop.eup %6064  ;;  %v3215_v41 = vadd.f32 1.0, %v6063_v34  ;;  %6074 = vrcp.f32 %v3214_v37  ;;  %v5957_v34 = vld [vmem:[%s6938_s18 + $0x32c] ss:$20 sps:$4 sm:$0xff]  }
 0x250   : > { %v6067_v38 = vpop.eup %6066  ;;  %v3216_v43 = vadd.f32 1.0, %v6065_v36  ;;  %6076 = vrcp.f32 %v3213_v39  ;;  %v5955_v36 = vld [vmem:[%s6938_s18 + $0x328] ss:$20 sps:$4 sm:$0xff]   ;;  %v5960_v37 = vld [vmem:[%s6938_s18 + $0x34c] ss:$20 sps:$4 sm:$0xff]  }
 0x251   : > { %v6069_v40 = vpop.eup %6068  ;;  %v3218_v44 = vadd.f32 1.0, %v6067_v38  ;;  %6078 = vrcp.f32 %v3215_v41  ;;  %v5963_v38 = vld [vmem:[%s6938_s18 + $0x354] ss:$20 sps:$4 sm:$0xff]  }
 0x252   : > { %v6071_v42 = vpop.eup %6070  ;;  %v3217_v45 = vadd.f32 1.0, %v6069_v40  ;;  %6080 = vrcp.f32 %v3216_v43  ;;  %v5958_v39 = vld [vmem:[%s6938_s18 + $0x348] ss:$20 sps:$4 sm:$0xff]   ;;  %v5961_v40 = vld [vmem:[%s6938_s18 + $0x350] ss:$20 sps:$4 sm:$0xff]  }
 0x253   : > { %v3219_v46 = vadd.f32 1.0, %v6071_v42  ;;  %6082 = vrcp.f32 %v3218_v44  ;;  %v5966_v41 = vld [vmem:[%s6938_s18 + $0x374] ss:$20 sps:$4 sm:$0xff]   ;;  %v5969_v42 = vld [vmem:[%s6938_s18 + $0x37c] ss:$20 sps:$4 sm:$0xff]  }
 0x254   : > { %6084 = vrcp.f32 %v3217_v45  ;;  %v5964_v43 = vld [vmem:[%s6938_s18 + $0x370] ss:$20 sps:$4 sm:$0xff]   ;;  %v5967_v44 = vld [vmem:[%s6938_s18 + $0x378] ss:$20 sps:$4 sm:$0xff]  }
 0x255   : > { %6086 = vrcp.f32 %v3219_v46  ;;  %v5972_v45 = vld [vmem:[%s6938_s18 + $0x39c] ss:$20 sps:$4 sm:$0xff]   ;;  %v5975_v46 = vld [vmem:[%s6938_s18 + $0x3a4] ss:$20 sps:$4 sm:$0xff]  }
 0x258   : > { %v6073_v47 = vpop.eup %6072 }
 0x259   : > { %v6075_v49 = vpop.eup %6074  ;;  %v3236_v56 = vmul.f32 %v6073_v47, %v7319_v7  ;;  %v5970_v47 = vld [vmem:[%s6938_s18 + $0x398] ss:$20 sps:$4 sm:$0xff]  }
 0x25a   : > { %v6077_v50 = vpop.eup %6076  ;;  %v3238_v57 = vmul.f32 %v6075_v49, %v7321_v8  ;;  %v5973_v49 = vld [vmem:[%s6938_s18 + $0x3a0] ss:$20 sps:$4 sm:$0xff]  }
 0x25b   : > { %v6079_v51 = vpop.eup %6078  ;;  %v3237_v58 = vmul.f32 %v6077_v50, %v7323_v16  ;;  %v5978_v50 = vld [vmem:[%s6938_s18 + $0x3c4] ss:$20 sps:$4 sm:$0xff]  }
 0x25c   : > { %v6081_v52 = vpop.eup %6080  ;;  %v3239_v59 = vmul.f32 %v6079_v51, %v7325_v9  ;;  %v5981_v51 = vld [vmem:[%s6938_s18 + $0x3cc] ss:$20 sps:$4 sm:$0xff]  }
 0x25d   : > { %v6083_v53 = vpop.eup %6082  ;;  %v3240_v63 = vmul.f32 %v6081_v52, %v7327_v10  ;;  %v5976_v52 = vld [vmem:[%s6938_s18 + $0x3c0] ss:$20 sps:$4 sm:$0xff]  }
 0x25e   : > { %v6085_v54 = vpop.eup %6084  ;;  %v3242_v0 = vmul.f32 %v6083_v53, %v7329_v11  ;;  %v5979_v53 = vld [vmem:[%s6938_s18 + $0x3c8] ss:$20 sps:$4 sm:$0xff]  }
 0x25f   : > { %v6087_v55 = vpop.eup %6086  ;;  %v3241_v5 = vmul.f32 %v6085_v54, %v7331_v12  ;;  %v5984_v54 = vld [vmem:[%s6938_s18 + $0x3ec] ss:$20 sps:$4 sm:$0xff]  }
 0x260   : > { %v3243_v6 = vmul.f32 %v6087_v55, %v7333_v48  ;;  %v5987_v55 = vld [vmem:[%s6938_s18 + $0x3f4] ss:$20 sps:$4 sm:$0xff]  }
 0x2ce   : > { %v3050_v60 = vpop.f32.mrb[4].mxu0  ;;  %v3179_v61 = vpop.f32.mrb[4].mxu1 }
 0x2cf   : > { %v3244_v1 = vmul.f32 %v3236_v56, %v3050_v60  ;;  %v3246_v2 = vmul.f32 %v3238_v57, %v3179_v61  ;;  %v3052_v3 = vpop.f32.mrb[5].mxu0  ;;  %v3181_v4 = vpop.f32.mrb[5].mxu1  ;;  %v5982_v56 = vld [vmem:[%s6938_s18 + $0x3e8] ss:$20 sps:$4 sm:$0xff]   ;;  %v5985_v57 = vld [vmem:[%s6938_s18 + $0x3f0] ss:$20 sps:$4 sm:$0xff]  }
 0x2d0   : > { %v3245_v7 = vmul.f32 %v3237_v58, %v3052_v3  ;;  %v3247_v8 = vmul.f32 %v3239_v59, %v3181_v4  ;;  %v3054_v16 = vpop.f32.mrb[6].mxu0  ;;  %v3183_v9 = vpop.f32.mrb[6].mxu1  ;;  %v5990_v58 = vld [vmem:[%s6938_s18 + $0x414] ss:$20 sps:$4 sm:$0xff]   ;;  %v5993_v59 = vld [vmem:[%s6938_s18 + $0x41c] ss:$20 sps:$4 sm:$0xff]  }
 0x2d1   : > { %v3248_v62 = vmul.f32 %v3240_v63, %v3054_v16  ;;  %v3250_v10 = vmul.f32 %v3242_v0, %v3183_v9  ;;  %v3056_v13 = vpop.f32.mrb[7].mxu0  ;;  %v3185_v11 = vpop.f32.mrb[7].mxu1  ;;  %v5988_v60 = vld [vmem:[%s6938_s18 + $0x410] ss:$20 sps:$4 sm:$0xff]   ;;  %v5991_v61 = vld [vmem:[%s6938_s18 + $0x418] ss:$20 sps:$4 sm:$0xff]  }
 0x2d2   : > { %v3249_v14 = vmul.f32 %v3241_v5, %v3056_v13  ;;  %v3251_v15 = vmul.f32 %v3243_v6, %v3185_v11  ;;  %v5996_v63 = vld [vmem:[%s6938_s18 + $0x43c] ss:$20 sps:$4 sm:$0xff]   ;;  %v5999_v0 = vld [vmem:[%s6938_s18 + $0x444] ss:$20 sps:$4 sm:$0xff]   ;;  %v6005_v4 = vld [vmem:[%s6938_s18 + $0x46c] ss:$20 sps:$4 sm:$0xff]  }
 0x2d3   : > { %v7361_v17 = vpack.c.bf16 %v3248_v62, %v3244_v1  ;;  %v7363_v12 = vpack.c.bf16 %v3250_v10, %v3246_v2  ;;  %v5994_v1 = vld [vmem:[%s6938_s18 + $0x438] ss:$20 sps:$4 sm:$0xff]   ;;  %v5997_v2 = vld [vmem:[%s6938_s18 + $0x440] ss:$20 sps:$4 sm:$0xff]   ;;  %v6003_v6 = vld [vmem:[%s6938_s18 + $0x468] ss:$20 sps:$4 sm:$0xff]  }
 0x2d4   : > { %v7365_v48 = vpack.c.bf16 %v3249_v14, %v3245_v7  ;;  %v7367_v18 = vpack.c.bf16 %v3251_v15, %v3247_v8  ;;  %v6002_v3 = vld [vmem:[%s6938_s18 + $0x464] ss:$20 sps:$4 sm:$0xff]   ;;  %v6000_v5 = vld [vmem:[%s6938_s18 + $0x460] ss:$20 sps:$4 sm:$0xff]   ;;  %v6006_v16 = vld [vmem:[%s6938_s18 + $0x488] ss:$20 sps:$4 sm:$0xff]  }
 0x2d5   : > { %v6008_v7 = vld [vmem:[%s6938_s18 + $0x48c] ss:$20 sps:$4 sm:$0xff]   ;;  %v6011_v8 = vld [vmem:[%s6938_s18 + $0x494] ss:$20 sps:$4 sm:$0xff]   ;;  %v6009_v9 = vld [vmem:[%s6938_s18 + $0x490] ss:$20 sps:$4 sm:$0xff]  }
 0x2d6   : > { %4322 = vmatprep.mubr.bf16.mxu0 %v7365_v48  ;;  %4408 = vmatprep.mubr.bf16.mxu1 %v7365_v48  ;;  %v6014_v62 = vld [vmem:[%s6938_s18 + $0x4b4] ss:$20 sps:$4 sm:$0xff]   ;;  %v6017_v10 = vld [vmem:[%s6938_s18 + $0x4bc] ss:$20 sps:$4 sm:$0xff]   ;;  %v6015_v11 = vld [vmem:[%s6938_s18 + $0x4b8] ss:$20 sps:$4 sm:$0xff]  }
 0x2d7   : > { %4323 = vmatmul.mubr.bf16.vlgmr.msra.gmra.mrb[8].mxu0 %v7361_v17  ;;  %4409 = vmatmul.mubr.bf16.vlgmr.msra.gmra.mrb[8].mxu1 %v7361_v17  ;;  %v6012_v13 = vld [vmem:[%s6938_s18 + $0x4b0] ss:$20 sps:$4 sm:$0xff]  }
 0x2d8   : > { %4334 = vmatpush1.bf16.msra.mxu0 %v5928_v19  ;;  %4420 = vmatpush1.bf16.msra.mxu1 %v5931_v20  ;;  %v6020_v14 = vld [vmem:[%s6938_s18 + $0x4dc] ss:$20 sps:$4 sm:$0xff]   ;;  %v6023_v15 = vld [vmem:[%s6938_s18 + $0x4e4] ss:$20 sps:$4 sm:$0xff]   ;;  %v6021_v20 = vld [vmem:[%s6938_s18 + $0x4e0] ss:$20 sps:$4 sm:$0xff]  }
 0x2d9   : > { %4365 = vmatprep.mubr.bf16.mxu0 %v7367_v18  ;;  %4451 = vmatprep.mubr.bf16.mxu1 %v7367_v18  ;;  %v6018_v19 = vld [vmem:[%s6938_s18 + $0x4d8] ss:$20 sps:$4 sm:$0xff]  }
 0x2da   : > { %4335 = vmatprep.subr.bf16.mxu0 %v5936_v21  ;;  %4421 = vmatprep.subr.bf16.mxu1 %v5939_v22  ;;  %v6024_v21 = vld [vmem:[%s6938_s18 + $0x150] ss:$20 sps:$4 sm:$0xff]  }
 0x2db   : > { %v6025_v22 = vld [vmem:[%s6938_s18 + $0x3d0] ss:$20 sps:$4 sm:$0xff]  }
 0x2dc   : > { %4336 = vmatpush1.bf16.msra.mxu0 %v5934_v23  ;;  %4422 = vmatpush1.bf16.msra.mxu1 %v5937_v24  ;;  %v6026_v23 = vld [vmem:[%s6938_s18 + $0x10] ss:$20 sps:$4 sm:$0xff]  }
 0x2dd   : > { %4337 = vmatprep.subr.bf16.mxu0 %v5942_v25  ;;  %4423 = vmatprep.subr.bf16.mxu1 %v5945_v26  ;;  %v6027_v24 = vld [vmem:[%s6938_s18 + $0x290] ss:$20 sps:$4 sm:$0xff]   ;;  %v6028_v25 = vld [vmem:[%s6938_s18 + $0x178] ss:$20 sps:$4 sm:$0xff]  }
 0x2de   : > { %v6029_v26 = vld [vmem:[%s6938_s18 + $0x3f8] ss:$20 sps:$4 sm:$0xff]  }
 0x2e0   : > { %4338 = vmatpush1.bf16.msra.mxu0 %v5940_v27  ;;  %4424 = vmatpush1.bf16.msra.mxu1 %v5943_v28  ;;  %v6030_v27 = vld [vmem:[%s6938_s18 + $0x38] ss:$20 sps:$4 sm:$0xff]  }
 0x2e1   : > { %4339 = vmatprep.subr.bf16.mxu0 %v5948_v29  ;;  %4425 = vmatprep.subr.bf16.mxu1 %v5951_v30  ;;  %v6031_v28 = vld [vmem:[%s6938_s18 + $0x2b8] ss:$20 sps:$4 sm:$0xff]   ;;  %v6032_v29 = vld [vmem:[%s6938_s18 + $0x1a0] ss:$20 sps:$4 sm:$0xff]  }
 0x2e2   : > { %v6033_v30 = vld [vmem:[%s6938_s18 + $0x420] ss:$20 sps:$4 sm:$0xff]  }
 0x2e4   : > { %4340 = vmatpush1.bf16.msra.mxu0 %v5946_v31  ;;  %4426 = vmatpush1.bf16.msra.mxu1 %v5949_v32  ;;  %v6034_v31 = vld [vmem:[%s6938_s18 + $0x60] ss:$20 sps:$4 sm:$0xff]   ;;  %v6036_v32 = vld [vmem:[%s6938_s18 + $0x1c8] ss:$20 sps:$4 sm:$0xff]  }
 0x2e5   : > { %4341 = vmatprep.subr.bf16.mxu0 %v5954_v33  ;;  %4427 = vmatprep.subr.bf16.mxu1 %v5957_v34  ;;  %v6037_v33 = vld [vmem:[%s6938_s18 + $0x448] ss:$20 sps:$4 sm:$0xff]  }
 0x2e6   : > { %v6039_v34 = vld [vmem:[%s6938_s18 + $0x308] ss:$20 sps:$4 sm:$0xff]  }
 0x2e8   : > { %4342 = vmatpush1.bf16.msra.mxu0 %v5952_v35  ;;  %4428 = vmatpush1.bf16.msra.mxu1 %v5955_v36  ;;  %v6040_v35 = vld [vmem:[%s6938_s18 + $0x1f0] ss:$20 sps:$4 sm:$0xff]  }
 0x2e9   : > { %4343 = vmatprep.subr.bf16.mxu0 %v5960_v37  ;;  %4429 = vmatprep.subr.bf16.mxu1 %v5963_v38  ;;  %v6041_v36 = vld [vmem:[%s6938_s18 + $0x470] ss:$20 sps:$4 sm:$0xff]  }
 0x2ea   : > { %v6042_v37 = vld [vmem:[%s6938_s18 + $0xb0] ss:$20 sps:$4 sm:$0xff]  }
 0x2eb   : > { %v6043_v38 = vld [vmem:[%s6938_s18 + $0x330] ss:$20 sps:$4 sm:$0xff]  }
 0x2ec   : > { %4344 = vmatpush1.bf16.msra.mxu0 %v5958_v39  ;;  %4430 = vmatpush1.bf16.msra.mxu1 %v5961_v40  ;;  %v6044_v39 = vld [vmem:[%s6938_s18 + $0x218] ss:$20 sps:$4 sm:$0xff]  }
 0x2ed   : > { %4345 = vmatprep.subr.bf16.mxu0 %v5966_v41  ;;  %4431 = vmatprep.subr.bf16.mxu1 %v5969_v42  ;;  %v6045_v40 = vld [vmem:[%s6938_s18 + $0x498] ss:$20 sps:$4 sm:$0xff]  }
 0x2ee   : > { %v6046_v41 = vld [vmem:[%s6938_s18 + $0xd8] ss:$20 sps:$4 sm:$0xff]  }
 0x2ef   : > { %v6047_v42 = vld [vmem:[%s6938_s18 + $0x358] ss:$20 sps:$4 sm:$0xff]  }
 0x2f0   : > { %4346 = vmatpush1.bf16.msra.mxu0 %v5964_v43  ;;  %4432 = vmatpush1.bf16.msra.mxu1 %v5967_v44  ;;  %v6048_v43 = vld [vmem:[%s6938_s18 + $0x240] ss:$20 sps:$4 sm:$0xff]  }
 0x2f1   : > { %4347 = vmatprep.subr.bf16.mxu0 %v5972_v45  ;;  %4433 = vmatprep.subr.bf16.mxu1 %v5975_v46  ;;  %v6049_v44 = vld [vmem:[%s6938_s18 + $0x4c0] ss:$20 sps:$4 sm:$0xff]  }
 0x2f2   : > { %v6050_v45 = vld [vmem:[%s6938_s18 + $0x100] ss:$20 sps:$4 sm:$0xff]  }
 0x2f3   : > { %v6051_v46 = vld [vmem:[%s6938_s18 + $0x380] ss:$20 sps:$4 sm:$0xff]  }
 0x2f4   : > { %4348 = vmatpush1.bf16.msra.mxu0 %v5970_v47  ;;  %4434 = vmatpush1.bf16.msra.mxu1 %v5973_v49  ;;  %v6052_v47 = vld [vmem:[%s6938_s18 + $0x268] ss:$20 sps:$4 sm:$0xff]  }
 0x2f5   : > { %4349 = vmatprep.subr.bf16.mxu0 %v5978_v50  ;;  %4435 = vmatprep.subr.bf16.mxu1 %v5981_v51  ;;  %v6053_v49 = vld [vmem:[%s6938_s18 + $0x4e8] ss:$20 sps:$4 sm:$0xff]  }
 0x2f6   : > { %v6054_v50 = vld [vmem:[%s6938_s18 + $0x128] ss:$20 sps:$4 sm:$0xff]  }
 0x2f7   : > { %v6055_v51 = vld [vmem:[%s6938_s18 + $0x3a8] ss:$20 sps:$4 sm:$0xff]  }
 0x2f8   : > { %4350 = vmatpush1.bf16.msra.mxu0 %v5976_v52  ;;  %4436 = vmatpush1.bf16.msra.mxu1 %v5979_v53  ;;  %v3252_v52 = vld [vmem:[#allocation2] sm:$0xff]  ;;  %v3254_v53 = vld [vmem:[#allocation2 + $0x10] sm:$0xff] }
 0x2f9   : > { %4351 = vmatprep.subr.bf16.mxu0 %v5984_v54  ;;  %4437 = vmatprep.subr.bf16.mxu1 %v5987_v55  ;;  %v3253_v54 = vld [vmem:[#allocation2 + $0x8] sm:$0xff]  ;;  %v3255_v55 = vld [vmem:[#allocation2 + $0x18] sm:$0xff] }
 0x2fc   : > { %4352 = vmatpush1.bf16.msra.mxu0 %v5982_v56  ;;  %4438 = vmatpush1.bf16.msra.mxu1 %v5985_v57 }
 0x2fd   : > { %4353 = vmatprep.subr.bf16.mxu0 %v5990_v58  ;;  %4439 = vmatprep.subr.bf16.mxu1 %v5993_v59  ;;  %v3257_v58 = vld [vmem:[#allocation2 + $0x28] sm:$0xff]  ;;  %v3259_v59 = vld [vmem:[#allocation2 + $0x38] sm:$0xff] }
 0x300   : > { %4354 = vmatpush1.bf16.msra.mxu0 %v5988_v60  ;;  %4440 = vmatpush1.bf16.msra.mxu1 %v5991_v61 }
 0x301   : > { %4355 = vmatprep.subr.bf16.mxu0 %v5996_v63  ;;  %4441 = vmatprep.subr.bf16.mxu1 %v5999_v0 }
 0x304   : > { %4356 = vmatpush1.bf16.msra.mxu0 %v5994_v1  ;;  %4442 = vmatpush1.bf16.msra.mxu1 %v5997_v2  ;;  %v3258_v1 = vld [vmem:[#allocation2 + $0x30] sm:$0xff]  ;;  %v3260_v2 = vld [vmem:[#allocation2 + $0x40] sm:$0xff] }
 0x305   : > { %4357 = vmatprep.subr.bf16.mxu0 %v6002_v3  ;;  %4443 = vmatprep.subr.bf16.mxu1 %v6005_v4 }
 0x308   : > { %4358 = vmatpush1.bf16.msra.mxu0 %v6000_v5  ;;  %4444 = vmatpush1.bf16.msra.mxu1 %v6003_v6 }
 0x309   : > { %4359 = vmatprep.subr.bf16.mxu0 %v6008_v7  ;;  %4445 = vmatprep.subr.bf16.mxu1 %v6011_v8 }
 0x30c   : > { %4360 = vmatpush1.bf16.msra.mxu0 %v6006_v16  ;;  %4446 = vmatpush1.bf16.msra.mxu1 %v6009_v9 }
 0x30d   : > { %4361 = vmatprep.subr.bf16.mxu0 %v6014_v62  ;;  %4447 = vmatprep.subr.bf16.mxu1 %v6017_v10 }
 0x310   : > { %4362 = vmatpush1.bf16.msra.mxu0 %v6012_v13  ;;  %4448 = vmatpush1.bf16.msra.mxu1 %v6015_v11 }
 0x311   : > { %4363 = vmatprep.subr.bf16.mxu0 %v6020_v14  ;;  %4449 = vmatprep.subr.bf16.mxu1 %v6023_v15 }
 0x314   : > { %4364 = vmatpush1.bf16.msra.mxu0 %v6018_v19  ;;  %4450 = vmatpush1.bf16.msra.mxu1 %v6021_v20 }
 0x315   : > { %5211 = vmatprep.subr.bf16.mxu0 %v6024_v21  ;;  %5233 = vmatprep.subr.bf16.mxu1 %v6025_v22  ;;  %v3256_v22 = vld [vmem:[#allocation2 + $0x20] sm:$0xff] }
 0x317   : > { %4366 = vmatmul.mubr.bf16.vlgmr.msra.gmra.mrb[8].mxu0 %v7363_v12  ;;  %4452 = vmatmul.mubr.bf16.vlgmr.msra.gmra.mrb[8].mxu1 %v7363_v12 }
 0x318   : > { %5212 = vmatpush3.bf16.msra.mxu0 %v6026_v23  ;;  %4494 = vmatprep.mubr.bf16.mxu0 %v7365_v48  ;;  %v6035_v48 = vld [vmem:[%s6938_s18 + $0x2e0] ss:$20 sps:$4 sm:$0xff]  }
 0x319   : > { %5234 = vmatpush3.bf16.msra.mxu1 %v6027_v24  ;;  %4535 = vmatprep.mubr.bf16.mxu1 %v7367_v18  ;;  %v6038_v18 = vld [vmem:[%s6938_s18 + $0x88] ss:$20 sps:$4 sm:$0xff]  }
 0x31a   : > { %5213 = vmatprep.subr.bf16.mxu0 %v6028_v25  ;;  %5235 = vmatprep.subr.bf16.mxu1 %v6029_v26 }
 0x31c   : > { %5214 = vmatpush3.bf16.msra.mxu0 %v6030_v27  ;;  %v3261_v27 = vld [vmem:[#allocation2 + $0x48] sm:$0xff] }
 0x31d   : > { %5236 = vmatpush3.bf16.msra.mxu1 %v6031_v28  ;;  %5215 = vmatprep.subr.bf16.mxu0 %v6032_v29 }
 0x31e   : > { %5237 = vmatprep.subr.bf16.mxu1 %v6033_v30 }
 0x320   : > { %5216 = vmatpush3.bf16.msra.mxu0 %v6034_v31 }
 0x321   : > { %5238 = vmatpush3.bf16.msra.mxu1 %v6035_v48  ;;  %5217 = vmatprep.subr.bf16.mxu0 %v6036_v32 }
 0x322   : > { %5239 = vmatprep.subr.bf16.mxu1 %v6037_v33 }
 0x324   : > { %5218 = vmatpush3.bf16.msra.mxu0 %v6038_v18 }
 0x325   : > { %5240 = vmatpush3.bf16.msra.mxu1 %v6039_v34  ;;  %5219 = vmatprep.subr.bf16.mxu0 %v6040_v35 }
 0x326   : > { %5241 = vmatprep.subr.bf16.mxu1 %v6041_v36 }
 0x328   : > { %5220 = vmatpush3.bf16.msra.mxu0 %v6042_v37 }
 0x329   : > { %5242 = vmatpush3.bf16.msra.mxu1 %v6043_v38  ;;  %5221 = vmatprep.subr.bf16.mxu0 %v6044_v39 }
 0x32a   : > { %5243 = vmatprep.subr.bf16.mxu1 %v6045_v40 }
 0x32c   : > { %5222 = vmatpush3.bf16.msra.mxu0 %v6046_v41 }
 0x32d   : > { %5244 = vmatpush3.bf16.msra.mxu1 %v6047_v42  ;;  %5223 = vmatprep.subr.bf16.mxu0 %v6048_v43 }
 0x32e   : > { %5245 = vmatprep.subr.bf16.mxu1 %v6049_v44 }
 0x330   : > { %5224 = vmatpush3.bf16.msra.mxu0 %v6050_v45 }
 0x331   : > { %5246 = vmatpush3.bf16.msra.mxu1 %v6051_v46  ;;  %5225 = vmatprep.subr.bf16.mxu0 %v6052_v47 }
 0x332   : > { %5247 = vmatprep.subr.bf16.mxu1 %v6053_v49 }
 0x334   : > { %5226 = vmatpush3.bf16.msra.mxu0 %v6054_v50 }
 0x335   : > { %5248 = vmatpush3.bf16.msra.mxu1 %v6055_v51 }
 0x337   : > { %4495 = vmatmul.mubr.bf16.vlgmr.msra.gmra.mrb[12].mxu0 %v7361_v17 }
 0x338   : > { %4536 = vmatmul.mubr.bf16.vlgmr.msra.gmra.mrb[12].mxu1 %v7363_v12 }
 0x3ea   : > { %v4367_v56 = vpop.f32.mrb[8].mxu0  ;;  %v4453_v57 = vpop.f32.mrb[8].mxu1 }
 0x3eb   : > { %v4544_v60 = vadd.f32 %v4367_v56, %v3252_v52  ;;  %v4546_v61 = vadd.f32 %v4453_v57, %v3254_v53  ;;  %v4369_v63 = vpop.f32.mrb[9].mxu0  ;;  %v4455_v0 = vpop.f32.mrb[9].mxu1 }
 0x3ec   : > { %v4545_v3 = vadd.f32 %v4369_v63, %v3253_v54  ;;  %v4547_v4 = vadd.f32 %v4455_v0, %v3255_v55  ;;  %v4371_v5 = vpop.f32.mrb[10].mxu0  ;;  %v4457_v17 = vpop.f32.mrb[10].mxu1 }
 0x3ed   : > { %4554 = vst [vmem:[#allocation2] sm:$0xff] %v4544_v60  ;;  %4556 = vst [vmem:[#allocation2 + $0x10] sm:$0xff] %v4546_v61  ;;  %v4549_v12 = vadd.f32 %v4371_v5, %v3257_v58  ;;  %v4551_v6 = vadd.f32 %v4457_v17, %v3259_v59  ;;  %v4373_v7 = vpop.f32.mrb[11].mxu0  ;;  %v4459_v8 = vpop.f32.mrb[11].mxu1 }
 0x3ee   : > { %4555 = vst [vmem:[#allocation2 + $0x8] sm:$0xff] %v4545_v3  ;;  %4557 = vst [vmem:[#allocation2 + $0x18] sm:$0xff] %v4547_v4  ;;  %v4550_v16 = vadd.f32 %v4373_v7, %v3258_v1  ;;  %v4552_v9 = vadd.f32 %v4459_v8, %v3260_v2 }
 0x3ef   : > { %4559 = vst [vmem:[#allocation2 + $0x28] sm:$0xff] %v4549_v12  ;;  %4561 = vst [vmem:[#allocation2 + $0x38] sm:$0xff] %v4551_v6 }
 0x3f0   : > { %4560 = vst [vmem:[#allocation2 + $0x30] sm:$0xff] %v4550_v16  ;;  %4562 = vst [vmem:[#allocation2 + $0x40] sm:$0xff] %v4552_v9 }
 0x3f4   : > { %v4568_v31 = vld [vmem:[#allocation2] sm:$0xff] (!%p5203_p6)  ;;  %v4570_v32 = vld [vmem:[#allocation2 + $0x10] sm:$0xff] (!%p5203_p6) }
 0x3f5   : > { %v4569_v48 = vld [vmem:[#allocation2 + $0x8] sm:$0xff] (!%p5203_p6)  ;;  %4578 = vst [vmem:[%s6944_s27] sm:$0xff] (!%p5203_p6), %v4568_v31  ;;  %4580 = vst [vmem:[%s6944_s27 + $0x10] sm:$0xff] (!%p5203_p6), %v4570_v32  ;;  %v4571_v33 = vld [vmem:[#allocation2 + $0x18] sm:$0xff] (!%p5203_p6) }
 0x3f6   : > { %4579 = vst [vmem:[%s6944_s27 + $0x8] sm:$0xff] (!%p5203_p6), %v4569_v48  ;;  %v4573_v34 = vld [vmem:[#allocation2 + $0x28] sm:$0xff] (!%p5203_p6)  ;;  %4581 = vst [vmem:[%s6944_s27 + $0x18] sm:$0xff] (!%p5203_p6), %v4571_v33  ;;  %v4575_v36 = vld [vmem:[#allocation2 + $0x38] sm:$0xff] (!%p5203_p6) }
 0x3f7   : > { %4583 = vst [vmem:[%s6944_s27 + $0x28] sm:$0xff] (!%p5203_p6), %v4573_v34  ;;  %v4574_v35 = vld [vmem:[#allocation2 + $0x30] sm:$0xff] (!%p5203_p6)  ;;  %v4576_v37 = vld [vmem:[#allocation2 + $0x40] sm:$0xff] (!%p5203_p6)  ;;  %4585 = vst [vmem:[%s6944_s27 + $0x38] sm:$0xff] (!%p5203_p6), %v4575_v36 }
 0x3f8   : > { %4584 = vst [vmem:[%s6944_s27 + $0x30] sm:$0xff] (!%p5203_p6), %v4574_v35  ;;  %4586 = vst [vmem:[%s6944_s27 + $0x40] sm:$0xff] (!%p5203_p6), %v4576_v37 }
 0x40a   : > { %v5227_v62 = vpop.f32.mrb[12].mxu0 }
 0x40b   : > { %v5249_v10 = vpop.f32.mrb[12].mxu1  ;;  %v5228_v13 = vpop.f32.mrb[13].mxu0 }
 0x40c   : > { %v5229_v11 = vadd.f32 %v5228_v13, %v5227_v62  ;;  %v5250_v14 = vpop.f32.mrb[13].mxu1  ;;  %v5230_v15 = vpop.f32.mrb[14].mxu0 }
 0x40d   : > { %v5251_v19 = vadd.f32 %v5250_v14, %v5249_v10  ;;  %v5252_v20 = vpop.f32.mrb[14].mxu1  ;;  %v5231_v21 = vpop.f32.mrb[15].mxu0 }
 0x40e   : > { %v5232_v23 = vadd.f32 %v5231_v21, %v5230_v15  ;;  %v5253_v24 = vpop.f32.mrb[15].mxu1 }
 0x40f   : > { %v4538_v25 = vadd.f32 %v5251_v19, %v5229_v11  ;;  %v5254_v26 = vadd.f32 %v5253_v24, %v5252_v20  ;;  %4567 = sbr.rel (%p5203_p6) target bundleno = 1054 (0x41e), region = 90 }
 0x411   : > { %v4548_v28 = vadd.f32 %v4538_v25, %v3256_v22  ;;  %v4541_v29 = vadd.f32 %v5254_v26, %v5232_v23 }
 0x413   : > { %4558 = vst.msk [vmem:[#allocation2 + $0x20] sm:$0xff] %vm1804_vm1, %v4548_v28  ;;  %v4553_v30 = vadd.f32 %v4541_v29, %v3261_v27 }
 0x415   : > { %4563 = vst.msk [vmem:[#allocation2 + $0x48] sm:$0xff] %vm1804_vm1, %v4553_v30 }
 0x41a   : > { %v4572_v18 = vld [vmem:[#allocation2 + $0x20] sm:$0xff] }
 0x41b   : > { %4582 = vst.msk [vmem:[%s6944_s27 + $0x20] sm:$0xff] %vm1804_vm1, %v4572_v18 }
 0x41c   : > { %v4577_v38 = vld [vmem:[#allocation2 + $0x48] sm:$0xff] }
 0x41d   : > { %4587 = vst.msk [vmem:[%s6944_s27 + $0x48] sm:$0xff] %vm1804_vm1, %v4577_v38 }
 0x41e PF: > { %s5301_s1 = smul.u32 1280, %s6189_s21  ;;  %s4603_s2 = sshll.u32 %s6944_s27, 4  ;;  %s7497_s2 = int_to_ptr.vmem [resolvable:$true] %s4603_s2 }
 0x41f   : > { %s7576_s30 = sand.u32 1, %s6169_s16   ;;  %s6091_s8 = scalar_lea.vmem %s7497_s2, 1280 }
 0x420   : > { %s7495_s26 = scalar_lea.hbm %s7563_s4, %s5301_s1  ;;  %s7501_s6 = scalar_lea.sflag [#allocation6], %s7576_s30 }
 0x421   : > { %p6092_p7 = scmp.ne.s32.totalorder %s7497_s2, %s6091_s8  ;;  %s6205_s21 = smov [#allocation5]  }
 0x422   : > { %s6095_s27 = sshll.u32 %s6205_s21, 4  ;;  %s6096_s27 = int_to_ptr.vmem [resolvable:$false] %s6095_s27 }
 0x423   : > { %p6093_p8 = pnand %p6092_p7, %p6312_p10  ;;  %s6097_s12 = scalar_lea.vmem %s6096_s27, 2560 }
 0x424   : > { %p6098_p11 = scmp.lt.s32.totalorder %s7497_s2, %s6096_s27  ;;  %p6099_p13 = scmp.lt.s32.totalorder %s6097_s12, %s6091_s8 }
 0x425   : > { %p6094_p9 = pneg %p6093_p8 }
 0x426   : > { %p6100_p0 = por %p6099_p13, %p6098_p11 }
 0x428   : > { %p6101_p1 = pnand %p6100_p0, %p6094_p9 }
 0x42a   : > { %6104 = shalt.err (!%p6101_p1)
}
 0x42b   : > { %s6105_s13 = scalar_lea.hbm %s7495_s26, 1280  ;;  %s6109_s5 = scalar_lea.hbm %s7563_s4, 2560 }
 0x42c   : > { %p6106_p2 = scmp.ne.s32.totalorder %s7495_s26, %s6105_s13  ;;  %p6110_p5 = scmp.lt.u32.totalorder %s7495_s26, %s7563_s4 }
 0x42d   : > { %p6111_p6 = scmp.lt.u32.totalorder %s6109_s5, %s6105_s13  ;;  %p6113_p8 = scmp.lt.u32.totalorder %s6105_s13, %s7495_s26 }
 0x42e   : > { %p6107_p3 = pnand %p6106_p2, %p6312_p10 }
 0x42f   : > { %p6112_p7 = por %p6111_p6, %p6110_p5 }
 0x430   : > { %p6108_p4 = pneg %p6107_p3 }
 0x431   : > { %p6114_p9 = por %p6113_p8, %p6112_p7 }
 0x433   : > { %p6115_p11 = pnand %p6114_p9, %p6108_p4 }
 0x435   : > { %6118 = shalt.err (!%p6115_p11)
}
 0x436   : > { %s6206_s1 = smov 640   ;;  %s6207_s20 = smov 40  }
 0x437   : > { %5302 = dma.vmem_to_hbm [thread:$0]  (%p6312_p10), %s7497_s2, 1280, %s7495_s26, %s7501_s6, %s6206_s1, %s6206_s1, %s6207_s20  }
 0x438 PF: > { %p5308_p13 = scmp.ge.s32.totalorder %s6201_s24, 2  ;;  %s4618_s28 = sand.u32 1, %s6165_s15  }
 0x439   : > { %s4619_s30 = scalar_lea.sflag [#allocation6], %s4618_s28 }
 0x43a   : > { %p5305_p0 = pnand %p5308_p13, %p6319_p12 }
 0x43c   : > { %6160 = dma.done.wait (!%p5305_p0), %s4619_s30, 1280  }
 0x43d   : > { %6162 = vsyncadd (!%p5305_p0), %s4619_s30, 4294966016  ;;  %s17_s24 = sadd.s32 1, %s6201_s24   ;;  %s7577_s9 = sld [smem:[#allocation8_spill]] }
 0x43e   : > { %p14_p1 = scmp.ge.s32.totalorder %s17_s24, 8   ;;  %s7578_s2 = sld [smem:[#allocation9_spill]] }
 0x43f   : > { %s7579_s15 = smov %s6169_s16  ;;  %s7580_s16 = smov %s6173_s17 }
 0x440   : > { %s7581_s17 = smov %s6317_s10  ;;  %s7582_s18 = smov %s6181_s19 }
 0x441   : > { %s7583_s19 = smov %s6306_s7  ;;  %s7584_s20 = smov %s6193_s22 }
 0x442   : > { %s7585_s21 = smov %s6197_s23  ;;  %16 = sbr.rel (!%p14_p1) target bundleno = 9 (0x9), region = 144 }
 0x443   : > { %s7586_s22 = smov %s7577_s9 }
 0x444   : > { %s7587_s23 = smov %s7578_s2 }
 0x449   :  { %4624 = vsyncpa [#allocation6], 1 }
 0x44a   :  { %4626 = vsyncpa [#allocation6 + $0x1], 1 }

</bundles_post_ra>
